<compile_context>
chip_gen: v6e
topology: v6e:2x2x1
jax: 0.10.0
libtpu: 0.0.40
codegen_flags: <defaults>
</compile_context>

<pallas_src>
import math

import jax
import jax.numpy as jnp
from jax import lax
from jax.experimental import pallas as pl
from jax.experimental.pallas import tpu as pltpu


def _gelu_tanh(x):
    # TODO(synk): PyTorch nn.GELU() uses the exact erf formulation; the tanh
    # approximation is used here because it lowers cleanly on the TPU VPU/EUP.
    c = 0.7978845608028654  # sqrt(2/pi)
    return 0.5 * x * (1.0 + jnp.tanh(c * (x + 0.044715 * x * x * x)))


def make_hawkes_kernel(L, d_model, d_k, d_v, num_types, phi_width, phi_depth, scale):
    inv_scale = 1.0 / scale
    n_mid = phi_depth - 1

    def kernel(q_ref, k_ref, v_ref, delta_ref, ohi_ref, ohj_ref, amask_ref,
               gamma_ref, beta_ref, wq_ref, wk_ref, wv_ref, wfc_ref, *rest):
        phi_refs = rest[:-1]
        out_ref = rest[-1]
        h_idx = pl.program_id(1)

        q_blk = q_ref[0]          # (L, d_model)  raw query (also the residual)
        k_blk = k_ref[0]          # (L, d_model)
        v_blk = v_ref[0]          # (L, d_model)
        delta = delta_ref[0]      # (L, L)   t_i - t_j
        ohi = ohi_ref[0]          # (L, T)   one-hot of event type per row (0 for padding)
        ohj = ohj_ref[0]          # (T, L)   same, transposed (per column)
        amask = amask_ref[0]      # (L, L)   1.0 = masked out

        # ---- pre-LayerNorm on q only (normalize_before=True); k, v are raw.
        mu = jnp.mean(q_blk, axis=-1, keepdims=True)
        dq = q_blk - mu
        var = jnp.mean(dq * dq, axis=-1, keepdims=True)
        qn = dq * lax.rsqrt(var + 1e-6) * gamma_ref[...] + beta_ref[...]

        # ---- per-head projections: one MXU matmul each, batched over L rows.
        qh = jnp.dot(qn, wq_ref[0], preferred_element_type=jnp.float32)     # (L, d_k)
        kh = jnp.dot(k_blk, wk_ref[0], preferred_element_type=jnp.float32)  # (L, d_k)
        vh = jnp.dot(v_blk, wv_ref[0], preferred_element_type=jnp.float32)  # (L, d_v)

        notpad_i = jnp.sum(ohi, axis=1, keepdims=True)   # (L, 1)
        notpad_j = jnp.sum(ohj, axis=0, keepdims=True)   # (1, L)

        # ---- phi MLPs for this head (one per event type), evaluated on all
        #      L*L deltas at once as (L*L, width) MXU matmuls.
        w0 = phi_refs[0][0]                                   # (T, W)
        b0 = phi_refs[1][0]                                   # (T, W)
        w_mid = [phi_refs[2 + 2 * l][0] for l in range(n_mid)]  # each (T, W, W)
        b_mid = [phi_refs[3 + 2 * l][0] for l in range(n_mid)]  # each (T, W)
        wf = phi_refs[-2][0]                                  # (T, W)
        bf = phi_refs[-1][0]                                  # (T, 1)

        delta3 = delta[:, :, None]                            # (L, L, 1)

        phiQ = jnp.zeros((L, L), jnp.float32)
        phiK = jnp.zeros((L, L), jnp.float32)
        # TODO(synk): for large num_types, batch the per-type MLPs with
        # block-diagonal weights instead of this static unrolled loop.
        for ty in range(num_types):
            x = _gelu_tanh(delta3 * w0[ty:ty + 1, :][None]
                           + b0[ty:ty + 1, :][None])          # (L, L, W)
            x2 = x.reshape(L * L, phi_width)
            for l in range(n_mid):
                x2 = _gelu_tanh(
                    jnp.dot(x2, w_mid[l][ty], preferred_element_type=jnp.float32)
                    + b_mid[l][ty:ty + 1, :])
            x3 = x2.reshape(L, L, phi_width)
            phi_ty = (jnp.sum(x3 * wf[ty:ty + 1, :][None], axis=-1)
                      + bf[ty:ty + 1, :])                     # (L, L)
            phiQ = phiQ + ohi[:, ty:ty + 1] * phi_ty          # select by query-row type
            phiK = phiK + ohj[ty:ty + 1, :] * phi_ty          # select by key-col type
        phiQ = phiQ * notpad_j        # valid_mask: key position non-padding
        phiK = phiK * notpad_i        # valid_mask: query position non-padding

        # ---- Hawkes-modulated attention.
        qk = lax.dot_general(qh, kh, (((1,), (1,)), ((), ())),
                             preferred_element_type=jnp.float32)     # (L, L)
        scores = qk * (phiQ * phiK) * inv_scale
        scores = jnp.where(amask > 0.0, -1e30, scores)

        m = jnp.max(scores, axis=-1, keepdims=True)
        e = jnp.exp(scores - m)
        attn = e / jnp.sum(e, axis=-1, keepdims=True)
        # nn.Dropout on attn / fc output: inference-mode identity.

        head_out = jnp.dot(attn * phiK, vh,
                           preferred_element_type=jnp.float32)       # (L, d_v)
        contrib = jnp.dot(head_out, wfc_ref[0],
                          preferred_element_type=jnp.float32)        # (L, d_model)

        # ---- accumulate fc(concat_heads) + residual in the resident out block.
        @pl.when(h_idx == 0)
        def _():
            out_ref[...] = q_ref[...]          # residual

        out_ref[...] += contrib[None, :, :]

    return kernel


def hawkes_attention4_forward(q, k, v, t_in, c, params, mask=None):
    """q, k, v: (B, L, d_model); t_in: (B, L); c: (B, L) int in [0, num_types]
    (num_types == padding).  Returns (B, L, d_model)."""
    B, L, d_model = q.shape
    H, _, d_k = params["w_q"].shape
    d_v = params["w_v"].shape[2]
    num_types = params["phi_w0"].shape[1]
    phi_width = params["phi_w0"].shape[2]
    phi_depth = len(params["phi_mid"]) + 1
    scale = math.sqrt(d_k)

    q = q.astype(jnp.float32)
    k = k.astype(jnp.float32)
    v = v.astype(jnp.float32)
    t_in = t_in.astype(jnp.float32)

    delta = t_in[:, :, None] - t_in[:, None, :]                       # (B, L, L)
    oh_i = jax.nn.one_hot(c, num_types, dtype=jnp.float32)            # (B, L, T)
    oh_j = jnp.transpose(oh_i, (0, 2, 1))                             # (B, T, L)
    if mask is None:
        amask = jnp.zeros((B, L, L), jnp.float32)
    else:
        amask = mask.astype(jnp.float32)

    phi_flat = [params["phi_w0"], params["phi_b0"]]
    for wl, bl in params["phi_mid"]:
        phi_flat += [wl, bl]
    phi_flat += [params["phi_wf"], params["phi_bf"]]

    bmap = lambda b, h: (b, 0, 0)
    hmap3 = lambda b, h: (h, 0, 0)
    hmap4 = lambda b, h: (h, 0, 0, 0)
    cmap = lambda b, h: (0, 0)

    in_specs = [
        pl.BlockSpec((1, L, d_model), bmap),          # q
        pl.BlockSpec((1, L, d_model), bmap),          # k
        pl.BlockSpec((1, L, d_model), bmap),          # v
        pl.BlockSpec((1, L, L), bmap),                # delta
        pl.BlockSpec((1, L, num_types), bmap),        # one-hot (rows)
        pl.BlockSpec((1, num_types, L), bmap),        # one-hot (cols)
        pl.BlockSpec((1, L, L), bmap),                # attention mask
        pl.BlockSpec((1, d_model), cmap),             # ln gamma
        pl.BlockSpec((1, d_model), cmap),             # ln beta
        pl.BlockSpec((1, d_model, d_k), hmap3),       # w_q (per head)
        pl.BlockSpec((1, d_model, d_k), hmap3),       # w_k
        pl.BlockSpec((1, d_model, d_v), hmap3),       # w_v
        pl.BlockSpec((1, d_v, d_model), hmap3),       # fc slice (per head)
        pl.BlockSpec((1, num_types, phi_width), hmap3),   # phi layer0 w
        pl.BlockSpec((1, num_types, phi_width), hmap3),   # phi layer0 b
    ]
    for _ in range(phi_depth - 1):
        in_specs.append(pl.BlockSpec((1, num_types, phi_width, phi_width), hmap4))
        in_specs.append(pl.BlockSpec((1, num_types, phi_width), hmap3))
    in_specs.append(pl.BlockSpec((1, num_types, phi_width), hmap3))   # phi final w
    in_specs.append(pl.BlockSpec((1, num_types, 1), hmap3))           # phi final b

    kernel = make_hawkes_kernel(L, d_model, d_k, d_v, num_types,
                                phi_width, phi_depth, scale)

    out = pl.pallas_call(
        kernel,
        out_shape=jax.ShapeDtypeStruct((B, L, d_model), jnp.float32),
        grid=(B, H),
        in_specs=in_specs,
        out_specs=pl.BlockSpec((1, L, d_model), bmap),
        compiler_params=pltpu.CompilerParams(
            dimension_semantics=("parallel", "arbitrary")),
    )(q, k, v, delta, oh_i, oh_j, amask,
      params["ln_gamma"], params["ln_beta"],
      params["w_q"], params["w_k"], params["w_v"], params["w_fc"],
      *phi_flat)
    return out


# ----------------------------------------------------------------------------
# Pure-JAX reference (same math, same tanh-GELU) for in-script validation.
# ----------------------------------------------------------------------------
def hawkes_reference(q, k, v, t_in, c, params, mask=None):
    B, L, d_model = q.shape
    H, _, d_k = params["w_q"].shape
    num_types = params["phi_w0"].shape[1]
    scale = math.sqrt(d_k)

    resid = q
    mu = jnp.mean(q, -1, keepdims=True)
    var = jnp.mean((q - mu) ** 2, -1, keepdims=True)
    qn = (q - mu) * jax.lax.rsqrt(var + 1e-6) * params["ln_gamma"][0] + params["ln_beta"][0]

    qh = jnp.einsum("bld,hdk->bhlk", qn, params["w_q"])
    kh = jnp.einsum("bld,hdk->bhlk", k, params["w_k"])
    vh = jnp.einsum("bld,hdk->bhlk", v, params["w_v"])

    delta = t_in[:, :, None] - t_in[:, None, :]
    ohi = jax.nn.one_hot(c, num_types, dtype=jnp.float32)
    notpad = jnp.sum(ohi, -1)

    phiQ = jnp.zeros((B, H, L, L), jnp.float32)
    phiK = jnp.zeros((B, H, L, L), jnp.float32)
    for h in range(H):
        for ty in range(num_types):
            x = _gelu_tanh(delta[..., None] * params["phi_w0"][h, ty]
                           + params["phi_b0"][h, ty])
            for wl, bl in params["phi_mid"]:
                x = _gelu_tanh(jnp.einsum("bijw,wv->bijv", x, wl[h, ty]) + bl[h, ty])
            phi = jnp.sum(x * params["phi_wf"][h, ty], -1) + params["phi_bf"][h, ty, 0]
            phiQ = phiQ.at[:, h].add(ohi[:, :, ty][:, :, None] * phi)
            phiK = phiK.at[:, h].add(ohi[:, :, ty][:, None, :] * phi)
    phiQ = phiQ * notpad[:, None, None, :]
    phiK = phiK * notpad[:, None, :, None]

    qk = jnp.einsum("bhik,bhjk->bhij", qh, kh)
    scores = qk * phiQ * phiK / scale
    if mask is not None:
        scores = jnp.where(mask[:, None] > 0, -1e30, scores)
    attn = jax.nn.softmax(scores, -1)
    out_heads = jnp.einsum("bhij,bhjd->bhid", attn * phiK, vh)
    out = jnp.einsum("bhid,hdm->bim", out_heads, params["w_fc"]) + resid
    return out


def init_params(key, num_types, n_head, d_model, d_k, d_v, phi_width, phi_depth):
    def xavier(kk, shape, fan_in, fan_out):
        lim = math.sqrt(6.0 / (fan_in + fan_out))
        return jax.random.uniform(kk, shape, jnp.float32, -lim, lim)

    H, T, W = n_head, num_types, phi_width
    ks = jax.random.split(key, 8 + 2 * max(phi_depth - 1, 0))
    params = {
        "w_q": xavier(ks[0], (H, d_model, d_k), d_model, H * d_k),
        "w_k": xavier(ks[1], (H, d_model, d_k), d_model, H * d_k),
        "w_v": xavier(ks[2], (H, d_model, d_v), d_model, H * d_v),
        "w_fc": xavier(ks[3], (H, d_v, d_model), H * d_v, d_model),
        "ln_gamma": jnp.ones((1, d_model), jnp.float32),
        "ln_beta": jnp.zeros((1, d_model), jnp.float32),
        "phi_w0": xavier(ks[4], (H, T, W), 1, W),
        "phi_b0": jax.random.uniform(ks[5], (H, T, W), jnp.float32, -0.5, 0.5),
        "phi_wf": xavier(ks[6], (H, T, W), W, 1),
        "phi_bf": jax.random.uniform(ks[7], (H, T, 1), jnp.float32, -0.2, 0.2),
    }
    mids = []
    for l in range(phi_depth - 1):
        mids.append((xavier(ks[8 + 2 * l], (H, T, W, W), W, W),
                     jax.random.uniform(ks[9 + 2 * l], (H, T, W), jnp.float32, -0.3, 0.3)))
    params["phi_mid"] = mids
    return params


if __name__ == "__main__":
    B, L = 2, 16
    d_model, n_head, d_k, d_v = 32, 2, 8, 8
    num_types, phi_width, phi_depth = 3, 8, 2

    key = jax.random.PRNGKey(0)
    kq, kk_, kv, kt, kc, kp = jax.random.split(key, 6)

    q = jax.random.normal(kq, (B, L, d_model), jnp.float32)
    k = jax.random.normal(kk_, (B, L, d_model), jnp.float32)
    v = jax.random.normal(kv, (B, L, d_model), jnp.float32)
    t_in = jnp.sort(jax.random.uniform(kt, (B, L), jnp.float32), axis=1)
    c = jax.random.randint(kc, (B, L), 0, num_types)
    c = c.at[1, L - 4:].set(num_types)          # last 4 tokens of batch 1 are padding

    params = init_params(kp, num_types, n_head, d_model, d_k, d_v, phi_width, phi_depth)

    out = hawkes_attention4_forward(q, k, v, t_in, c, params, mask=None)
    out = jax.block_until_ready(out)

    assert out.shape == (B, L, d_model)
    assert bool(jnp.all(jnp.isfinite(out)))

    ref = hawkes_reference(q, k, v, t_in, c, params, mask=None)
    rel_err = jnp.linalg.norm(out - ref) / (jnp.linalg.norm(ref) + 1e-9)
    assert float(rel_err) < 2e-2, f"kernel vs reference rel err = {float(rel_err)}"
    # padded query rows get zero attention contribution -> output == residual q
    assert bool(jnp.allclose(out[1, L - 4:, :], q[1, L - 4:, :], atol=1e-5))

    print("KERNEL_OK")
</pallas_src>

<mosaic_0001>
module attributes {stable_mosaic.version = 11 : i64} {
  func.func @kernel(%arg0: i32, %arg1: i32, %arg2: memref<1x16x32xf32, #tpu.memory_space<vmem>>, %arg3: memref<1x16x32xf32, #tpu.memory_space<vmem>>, %arg4: memref<1x16x32xf32, #tpu.memory_space<vmem>>, %arg5: memref<1x16x16xf32, #tpu.memory_space<vmem>>, %arg6: memref<1x16x3xf32, #tpu.memory_space<vmem>>, %arg7: memref<1x3x16xf32, #tpu.memory_space<vmem>>, %arg8: memref<1x16x16xf32, #tpu.memory_space<vmem>>, %arg9: memref<1x32xf32, #tpu.memory_space<vmem>>, %arg10: memref<1x32xf32, #tpu.memory_space<vmem>>, %arg11: memref<1x32x8xf32, #tpu.memory_space<vmem>>, %arg12: memref<1x32x8xf32, #tpu.memory_space<vmem>>, %arg13: memref<1x32x8xf32, #tpu.memory_space<vmem>>, %arg14: memref<1x8x32xf32, #tpu.memory_space<vmem>>, %arg15: memref<1x3x8xf32, #tpu.memory_space<vmem>>, %arg16: memref<1x3x8xf32, #tpu.memory_space<vmem>>, %arg17: memref<1x3x8x8xf32, #tpu.memory_space<vmem>>, %arg18: memref<1x3x8xf32, #tpu.memory_space<vmem>>, %arg19: memref<1x3x8xf32, #tpu.memory_space<vmem>>, %arg20: memref<1x3x1xf32, #tpu.memory_space<vmem>>, %arg21: memref<1x16x32xf32, #tpu.memory_space<vmem>>) attributes {dimension_semantics = [#tpu.dimension_semantics<parallel>, #tpu.dimension_semantics<arbitrary>], iteration_bounds = array<i64: 2, 2>, scalar_prefetch = 0 : i64, scratch_operands = 0 : i64, tpu.core_type = #tpu.core_type<tc>, window_params = [{transform_indices = @transform_0, window_bounds = array<i64: 1, 16, 32>}, {transform_indices = @transform_1, window_bounds = array<i64: 1, 16, 32>}, {transform_indices = @transform_2, window_bounds = array<i64: 1, 16, 32>}, {transform_indices = @transform_3, window_bounds = array<i64: 1, 16, 16>}, {transform_indices = @transform_4, window_bounds = array<i64: 1, 16, 3>}, {transform_indices = @transform_5, window_bounds = array<i64: 1, 3, 16>}, {transform_indices = @transform_6, window_bounds = array<i64: 1, 16, 16>}, {pipeline_mode = #tpu.pipeline_mode<synchronous>, transform_indices = @transform_7, window_bounds = array<i64: 1, 32>}, {pipeline_mode = #tpu.pipeline_mode<synchronous>, transform_indices = @transform_8, window_bounds = array<i64: 1, 32>}, {transform_indices = @transform_9, window_bounds = array<i64: 1, 32, 8>}, {transform_indices = @transform_10, window_bounds = array<i64: 1, 32, 8>}, {transform_indices = @transform_11, window_bounds = array<i64: 1, 32, 8>}, {transform_indices = @transform_12, window_bounds = array<i64: 1, 8, 32>}, {transform_indices = @transform_13, window_bounds = array<i64: 1, 3, 8>}, {transform_indices = @transform_14, window_bounds = array<i64: 1, 3, 8>}, {transform_indices = @transform_15, window_bounds = array<i64: 1, 3, 8, 8>}, {transform_indices = @transform_16, window_bounds = array<i64: 1, 3, 8>}, {transform_indices = @transform_17, window_bounds = array<i64: 1, 3, 8>}, {transform_indices = @transform_18, window_bounds = array<i64: 1, 3, 1>}, {transform_indices = @transform_19, window_bounds = array<i64: 1, 16, 32>}]} {
    %c0 = arith.constant 0 : index
    %c0_0 = arith.constant 0 : index
    %c0_1 = arith.constant 0 : index
    %0 = vector.load %arg2[%c0, %c0_0, %c0_1] : memref<1x16x32xf32, #tpu.memory_space<vmem>>, vector<1x16x32xf32>
    %1 = vector.shape_cast %0 : vector<1x16x32xf32> to vector<16x32xf32>
    %c0_2 = arith.constant 0 : index
    %c0_3 = arith.constant 0 : index
    %c0_4 = arith.constant 0 : index
    %2 = vector.load %arg3[%c0_2, %c0_3, %c0_4] : memref<1x16x32xf32, #tpu.memory_space<vmem>>, vector<1x16x32xf32>
    %3 = vector.shape_cast %2 : vector<1x16x32xf32> to vector<16x32xf32>
    %c0_5 = arith.constant 0 : index
    %c0_6 = arith.constant 0 : index
    %c0_7 = arith.constant 0 : index
    %4 = vector.load %arg4[%c0_5, %c0_6, %c0_7] : memref<1x16x32xf32, #tpu.memory_space<vmem>>, vector<1x16x32xf32>
    %5 = vector.shape_cast %4 : vector<1x16x32xf32> to vector<16x32xf32>
    %c0_8 = arith.constant 0 : index
    %c0_9 = arith.constant 0 : index
    %c0_10 = arith.constant 0 : index
    %6 = vector.load %arg5[%c0_8, %c0_9, %c0_10] : memref<1x16x16xf32, #tpu.memory_space<vmem>>, vector<1x16x16xf32>
    %7 = vector.shape_cast %6 : vector<1x16x16xf32> to vector<16x16xf32>
    %c0_11 = arith.constant 0 : index
    %c0_12 = arith.constant 0 : index
    %c0_13 = arith.constant 0 : index
    %8 = vector.load %arg6[%c0_11, %c0_12, %c0_13] : memref<1x16x3xf32, #tpu.memory_space<vmem>>, vector<1x16x3xf32>
    %9 = vector.shape_cast %8 : vector<1x16x3xf32> to vector<16x3xf32>
    %c0_14 = arith.constant 0 : index
    %c0_15 = arith.constant 0 : index
    %c0_16 = arith.constant 0 : index
    %10 = vector.load %arg7[%c0_14, %c0_15, %c0_16] : memref<1x3x16xf32, #tpu.memory_space<vmem>>, vector<1x3x16xf32>
    %11 = vector.shape_cast %10 : vector<1x3x16xf32> to vector<3x16xf32>
    %c0_17 = arith.constant 0 : index
    %c0_18 = arith.constant 0 : index
    %c0_19 = arith.constant 0 : index
    %12 = vector.load %arg8[%c0_17, %c0_18, %c0_19] : memref<1x16x16xf32, #tpu.memory_space<vmem>>, vector<1x16x16xf32>
    %13 = vector.shape_cast %12 : vector<1x16x16xf32> to vector<16x16xf32>
    %cst = arith.constant dense<0.000000e+00> : vector<16xf32>
    %14 = vector.multi_reduction <add>, %1, %cst [1] : vector<16x32xf32> to vector<16xf32>
    %15 = vector.shape_cast %14 : vector<16xf32> to vector<16x1xf32>
    %cst_20 = arith.constant 3.200000e+01 : f32
    %16 = vector.broadcast %cst_20 : f32 to vector<16x1xf32>
    %17 = arith.divf %15, %16 : vector<16x1xf32>
    %18 = vector.broadcast %17 : vector<16x1xf32> to vector<16x32xf32>
    %19 = arith.subf %1, %18 : vector<16x32xf32>
    %20 = arith.mulf %19, %19 : vector<16x32xf32>
    %cst_21 = arith.constant dense<0.000000e+00> : vector<16xf32>
    %21 = vector.multi_reduction <add>, %20, %cst_21 [1] : vector<16x32xf32> to vector<16xf32>
    %22 = vector.shape_cast %21 : vector<16xf32> to vector<16x1xf32>
    %cst_22 = arith.constant 3.200000e+01 : f32
    %23 = vector.broadcast %cst_22 : f32 to vector<16x1xf32>
    %24 = arith.divf %22, %23 : vector<16x1xf32>
    %cst_23 = arith.constant 9.99999997E-7 : f32
    %25 = vector.broadcast %cst_23 : f32 to vector<16x1xf32>
    %26 = arith.addf %24, %25 : vector<16x1xf32>
    %27 = math.rsqrt %26 : vector<16x1xf32>
    %28 = vector.broadcast %27 : vector<16x1xf32> to vector<16x32xf32>
    %29 = arith.mulf %19, %28 : vector<16x32xf32>
    %c0_24 = arith.constant 0 : index
    %c0_25 = arith.constant 0 : index
    %30 = vector.load %arg9[%c0_24, %c0_25] : memref<1x32xf32, #tpu.memory_space<vmem>>, vector<1x32xf32>
    %31 = vector.broadcast %30 : vector<1x32xf32> to vector<16x32xf32>
    %32 = arith.mulf %29, %31 : vector<16x32xf32>
    %c0_26 = arith.constant 0 : index
    %c0_27 = arith.constant 0 : index
    %33 = vector.load %arg10[%c0_26, %c0_27] : memref<1x32xf32, #tpu.memory_space<vmem>>, vector<1x32xf32>
    %34 = vector.broadcast %33 : vector<1x32xf32> to vector<16x32xf32>
    %35 = arith.addf %32, %34 : vector<16x32xf32>
    %c0_28 = arith.constant 0 : index
    %c0_29 = arith.constant 0 : index
    %c0_30 = arith.constant 0 : index
    %36 = vector.load %arg11[%c0_28, %c0_29, %c0_30] : memref<1x32x8xf32, #tpu.memory_space<vmem>>, vector<1x32x8xf32>
    %37 = vector.shape_cast %36 : vector<1x32x8xf32> to vector<32x8xf32>
    %cst_31 = arith.constant dense<0.000000e+00> : vector<16x8xf32>
    %38 = tpu.matmul %35, %37, %cst_31 {dimension_numbers = #tpu.dot_dimension_numbers<[1], [0], [0], [1], [0, 0, 1, 1], [], []>} : vector<16x32xf32>, vector<32x8xf32>, vector<16x8xf32> -> vector<16x8xf32>
    %c0_32 = arith.constant 0 : index
    %c0_33 = arith.constant 0 : index
    %c0_34 = arith.constant 0 : index
    %39 = vector.load %arg12[%c0_32, %c0_33, %c0_34] : memref<1x32x8xf32, #tpu.memory_space<vmem>>, vector<1x32x8xf32>
    %40 = vector.shape_cast %39 : vector<1x32x8xf32> to vector<32x8xf32>
    %cst_35 = arith.constant dense<0.000000e+00> : vector<16x8xf32>
    %41 = tpu.matmul %3, %40, %cst_35 {dimension_numbers = #tpu.dot_dimension_numbers<[1], [0], [0], [1], [0, 0, 1, 1], [], []>} : vector<16x32xf32>, vector<32x8xf32>, vector<16x8xf32> -> vector<16x8xf32>
    %c0_36 = arith.constant 0 : index
    %c0_37 = arith.constant 0 : index
    %c0_38 = arith.constant 0 : index
    %42 = vector.load %arg13[%c0_36, %c0_37, %c0_38] : memref<1x32x8xf32, #tpu.memory_space<vmem>>, vector<1x32x8xf32>
    %43 = vector.shape_cast %42 : vector<1x32x8xf32> to vector<32x8xf32>
    %cst_39 = arith.constant dense<0.000000e+00> : vector<16x8xf32>
    %44 = tpu.matmul %5, %43, %cst_39 {dimension_numbers = #tpu.dot_dimension_numbers<[1], [0], [0], [1], [0, 0, 1, 1], [], []>} : vector<16x32xf32>, vector<32x8xf32>, vector<16x8xf32> -> vector<16x8xf32>
    %cst_40 = arith.constant dense<0.000000e+00> : vector<16xf32>
    %45 = vector.multi_reduction <add>, %9, %cst_40 [1] : vector<16x3xf32> to vector<16xf32>
    %46 = vector.shape_cast %45 : vector<16xf32> to vector<16x1xf32>
    %cst_41 = arith.constant dense<0.000000e+00> : vector<16xf32>
    %47 = vector.multi_reduction <add>, %11, %cst_41 [0] : vector<3x16xf32> to vector<16xf32>
    %48 = vector.shape_cast %47 : vector<16xf32> to vector<1x16xf32>
    %c0_42 = arith.constant 0 : index
    %c0_43 = arith.constant 0 : index
    %c0_44 = arith.constant 0 : index
    %49 = vector.load %arg15[%c0_42, %c0_43, %c0_44] : memref<1x3x8xf32, #tpu.memory_space<vmem>>, vector<1x3x8xf32>
    %50 = vector.shape_cast %49 : vector<1x3x8xf32> to vector<3x8xf32>
    %c0_45 = arith.constant 0 : index
    %c0_46 = arith.constant 0 : index
    %c0_47 = arith.constant 0 : index
    %51 = vector.load %arg16[%c0_45, %c0_46, %c0_47] : memref<1x3x8xf32, #tpu.memory_space<vmem>>, vector<1x3x8xf32>
    %52 = vector.shape_cast %51 : vector<1x3x8xf32> to vector<3x8xf32>
    %c0_48 = arith.constant 0 : index
    %c0_49 = arith.constant 0 : index
    %c0_50 = arith.constant 0 : index
    %c0_51 = arith.constant 0 : index
    %53 = vector.load %arg17[%c0_48, %c0_49, %c0_50, %c0_51] : memref<1x3x8x8xf32, #tpu.memory_space<vmem>>, vector<1x3x8x8xf32>
    %54 = vector.shape_cast %53 : vector<1x3x8x8xf32> to vector<3x8x8xf32>
    %c0_52 = arith.constant 0 : index
    %c0_53 = arith.constant 0 : index
    %c0_54 = arith.constant 0 : index
    %55 = vector.load %arg18[%c0_52, %c0_53, %c0_54] : memref<1x3x8xf32, #tpu.memory_space<vmem>>, vector<1x3x8xf32>
    %56 = vector.shape_cast %55 : vector<1x3x8xf32> to vector<3x8xf32>
    %c0_55 = arith.constant 0 : index
    %c0_56 = arith.constant 0 : index
    %c0_57 = arith.constant 0 : index
    %57 = vector.load %arg19[%c0_55, %c0_56, %c0_57] : memref<1x3x8xf32, #tpu.memory_space<vmem>>, vector<1x3x8xf32>
    %58 = vector.shape_cast %57 : vector<1x3x8xf32> to vector<3x8xf32>
    %c0_58 = arith.constant 0 : index
    %c0_59 = arith.constant 0 : index
    %c0_60 = arith.constant 0 : index
    %59 = vector.load %arg20[%c0_58, %c0_59, %c0_60] : memref<1x3x1xf32, #tpu.memory_space<vmem>>, vector<1x3x1xf32>
    %60 = vector.shape_cast %59 : vector<1x3x1xf32> to vector<3x1xf32>
    %61 = vector.shape_cast %7 : vector<16x16xf32> to vector<16x16x1xf32>
    %cst_61 = arith.constant 0.000000e+00 : f32
    %62 = vector.broadcast %cst_61 : f32 to vector<16x16xf32>
    %cst_62 = arith.constant 0.000000e+00 : f32
    %63 = vector.broadcast %cst_62 : f32 to vector<16x16xf32>
    %64 = vector.extract_strided_slice %50 {offsets = [0, 0], sizes = [1, 8], strides = [1, 1]} : vector<3x8xf32> to vector<1x8xf32>
    %65 = vector.shape_cast %64 : vector<1x8xf32> to vector<1x1x8xf32>
    %66 = vector.broadcast %61 : vector<16x16x1xf32> to vector<16x16x8xf32>
    %67 = vector.broadcast %65 : vector<1x1x8xf32> to vector<16x16x8xf32>
    %68 = arith.mulf %66, %67 : vector<16x16x8xf32>
    %69 = vector.extract_strided_slice %52 {offsets = [0, 0], sizes = [1, 8], strides = [1, 1]} : vector<3x8xf32> to vector<1x8xf32>
    %70 = vector.shape_cast %69 : vector<1x8xf32> to vector<1x1x8xf32>
    %71 = vector.broadcast %70 : vector<1x1x8xf32> to vector<16x16x8xf32>
    %72 = arith.addf %68, %71 : vector<16x16x8xf32>
    %cst_63 = arith.constant 5.000000e-01 : f32
    %73 = vector.broadcast %cst_63 : f32 to vector<16x16x8xf32>
    %74 = arith.mulf %73, %72 : vector<16x16x8xf32>
    %cst_64 = arith.constant 4.471500e-02 : f32
    %75 = vector.broadcast %cst_64 : f32 to vector<16x16x8xf32>
    %76 = arith.mulf %75, %72 : vector<16x16x8xf32>
    %77 = arith.mulf %76, %72 : vector<16x16x8xf32>
    %78 = arith.mulf %77, %72 : vector<16x16x8xf32>
    %79 = arith.addf %72, %78 : vector<16x16x8xf32>
    %cst_65 = arith.constant 0.797884583 : f32
    %80 = vector.broadcast %cst_65 : f32 to vector<16x16x8xf32>
    %81 = arith.mulf %80, %79 : vector<16x16x8xf32>
    %82 = math.tanh %81 : vector<16x16x8xf32>
    %cst_66 = arith.constant 1.000000e+00 : f32
    %83 = vector.broadcast %cst_66 : f32 to vector<16x16x8xf32>
    %84 = arith.addf %83, %82 : vector<16x16x8xf32>
    %85 = arith.mulf %74, %84 : vector<16x16x8xf32>
    %86 = vector.shape_cast %85 : vector<16x16x8xf32> to vector<256x8xf32>
    %87 = vector.extract_strided_slice %54 {offsets = [0, 0, 0], sizes = [1, 8, 8], strides = [1, 1, 1]} : vector<3x8x8xf32> to vector<1x8x8xf32>
    %88 = vector.shape_cast %87 : vector<1x8x8xf32> to vector<8x8xf32>
    %cst_67 = arith.constant dense<0.000000e+00> : vector<256x8xf32>
    %89 = tpu.matmul %86, %88, %cst_67 {dimension_numbers = #tpu.dot_dimension_numbers<[1], [0], [0], [1], [0, 0, 1, 1], [], []>} : vector<256x8xf32>, vector<8x8xf32>, vector<256x8xf32> -> vector<256x8xf32>
    %90 = vector.extract_strided_slice %56 {offsets = [0, 0], sizes = [1, 8], strides = [1, 1]} : vector<3x8xf32> to vector<1x8xf32>
    %91 = vector.broadcast %90 : vector<1x8xf32> to vector<256x8xf32>
    %92 = arith.addf %89, %91 : vector<256x8xf32>
    %cst_68 = arith.constant 5.000000e-01 : f32
    %93 = vector.broadcast %cst_68 : f32 to vector<256x8xf32>
    %94 = arith.mulf %93, %92 : vector<256x8xf32>
    %cst_69 = arith.constant 4.471500e-02 : f32
    %95 = vector.broadcast %cst_69 : f32 to vector<256x8xf32>
    %96 = arith.mulf %95, %92 : vector<256x8xf32>
    %97 = arith.mulf %96, %92 : vector<256x8xf32>
    %98 = arith.mulf %97, %92 : vector<256x8xf32>
    %99 = arith.addf %92, %98 : vector<256x8xf32>
    %cst_70 = arith.constant 0.797884583 : f32
    %100 = vector.broadcast %cst_70 : f32 to vector<256x8xf32>
    %101 = arith.mulf %100, %99 : vector<256x8xf32>
    %102 = math.tanh %101 : vector<256x8xf32>
    %cst_71 = arith.constant 1.000000e+00 : f32
    %103 = vector.broadcast %cst_71 : f32 to vector<256x8xf32>
    %104 = arith.addf %103, %102 : vector<256x8xf32>
    %105 = arith.mulf %94, %104 : vector<256x8xf32>
    %106 = vector.shape_cast %105 : vector<256x8xf32> to vector<16x16x8xf32>
    %107 = vector.extract_strided_slice %58 {offsets = [0, 0], sizes = [1, 8], strides = [1, 1]} : vector<3x8xf32> to vector<1x8xf32>
    %108 = vector.shape_cast %107 : vector<1x8xf32> to vector<1x1x8xf32>
    %109 = vector.broadcast %108 : vector<1x1x8xf32> to vector<16x16x8xf32>
    %110 = arith.mulf %106, %109 : vector<16x16x8xf32>
    %cst_72 = arith.constant dense<0.000000e+00> : vector<16x16xf32>
    %111 = vector.multi_reduction <add>, %110, %cst_72 [2] : vector<16x16x8xf32> to vector<16x16xf32>
    %112 = vector.extract_strided_slice %60 {offsets = [0, 0], sizes = [1, 1], strides = [1, 1]} : vector<3x1xf32> to vector<1x1xf32>
    %113 = vector.broadcast %112 : vector<1x1xf32> to vector<16x16xf32>
    %114 = arith.addf %111, %113 : vector<16x16xf32>
    %115 = vector.extract_strided_slice %9 {offsets = [0, 0], sizes = [16, 1], strides = [1, 1]} : vector<16x3xf32> to vector<16x1xf32>
    %116 = vector.broadcast %115 : vector<16x1xf32> to vector<16x16xf32>
    %117 = arith.mulf %116, %114 : vector<16x16xf32>
    %118 = arith.addf %62, %117 : vector<16x16xf32>
    %119 = vector.extract_strided_slice %11 {offsets = [0, 0], sizes = [1, 16], strides = [1, 1]} : vector<3x16xf32> to vector<1x16xf32>
    %120 = vector.broadcast %119 : vector<1x16xf32> to vector<16x16xf32>
    %121 = arith.mulf %120, %114 : vector<16x16xf32>
    %122 = arith.addf %63, %121 : vector<16x16xf32>
    %123 = vector.extract_strided_slice %50 {offsets = [1, 0], sizes = [1, 8], strides = [1, 1]} : vector<3x8xf32> to vector<1x8xf32>
    %124 = vector.shape_cast %123 : vector<1x8xf32> to vector<1x1x8xf32>
    %125 = vector.broadcast %61 : vector<16x16x1xf32> to vector<16x16x8xf32>
    %126 = vector.broadcast %124 : vector<1x1x8xf32> to vector<16x16x8xf32>
    %127 = arith.mulf %125, %126 : vector<16x16x8xf32>
    %128 = vector.extract_strided_slice %52 {offsets = [1, 0], sizes = [1, 8], strides = [1, 1]} : vector<3x8xf32> to vector<1x8xf32>
    %129 = vector.shape_cast %128 : vector<1x8xf32> to vector<1x1x8xf32>
    %130 = vector.broadcast %129 : vector<1x1x8xf32> to vector<16x16x8xf32>
    %131 = arith.addf %127, %130 : vector<16x16x8xf32>
    %cst_73 = arith.constant 5.000000e-01 : f32
    %132 = vector.broadcast %cst_73 : f32 to vector<16x16x8xf32>
    %133 = arith.mulf %132, %131 : vector<16x16x8xf32>
    %cst_74 = arith.constant 4.471500e-02 : f32
    %134 = vector.broadcast %cst_74 : f32 to vector<16x16x8xf32>
    %135 = arith.mulf %134, %131 : vector<16x16x8xf32>
    %136 = arith.mulf %135, %131 : vector<16x16x8xf32>
    %137 = arith.mulf %136, %131 : vector<16x16x8xf32>
    %138 = arith.addf %131, %137 : vector<16x16x8xf32>
    %cst_75 = arith.constant 0.797884583 : f32
    %139 = vector.broadcast %cst_75 : f32 to vector<16x16x8xf32>
    %140 = arith.mulf %139, %138 : vector<16x16x8xf32>
    %141 = math.tanh %140 : vector<16x16x8xf32>
    %cst_76 = arith.constant 1.000000e+00 : f32
    %142 = vector.broadcast %cst_76 : f32 to vector<16x16x8xf32>
    %143 = arith.addf %142, %141 : vector<16x16x8xf32>
    %144 = arith.mulf %133, %143 : vector<16x16x8xf32>
    %145 = vector.shape_cast %144 : vector<16x16x8xf32> to vector<256x8xf32>
    %146 = vector.extract_strided_slice %54 {offsets = [1, 0, 0], sizes = [1, 8, 8], strides = [1, 1, 1]} : vector<3x8x8xf32> to vector<1x8x8xf32>
    %147 = vector.shape_cast %146 : vector<1x8x8xf32> to vector<8x8xf32>
    %cst_77 = arith.constant dense<0.000000e+00> : vector<256x8xf32>
    %148 = tpu.matmul %145, %147, %cst_77 {dimension_numbers = #tpu.dot_dimension_numbers<[1], [0], [0], [1], [0, 0, 1, 1], [], []>} : vector<256x8xf32>, vector<8x8xf32>, vector<256x8xf32> -> vector<256x8xf32>
    %149 = vector.extract_strided_slice %56 {offsets = [1, 0], sizes = [1, 8], strides = [1, 1]} : vector<3x8xf32> to vector<1x8xf32>
    %150 = vector.broadcast %149 : vector<1x8xf32> to vector<256x8xf32>
    %151 = arith.addf %148, %150 : vector<256x8xf32>
    %cst_78 = arith.constant 5.000000e-01 : f32
    %152 = vector.broadcast %cst_78 : f32 to vector<256x8xf32>
    %153 = arith.mulf %152, %151 : vector<256x8xf32>
    %cst_79 = arith.constant 4.471500e-02 : f32
    %154 = vector.broadcast %cst_79 : f32 to vector<256x8xf32>
    %155 = arith.mulf %154, %151 : vector<256x8xf32>
    %156 = arith.mulf %155, %151 : vector<256x8xf32>
    %157 = arith.mulf %156, %151 : vector<256x8xf32>
    %158 = arith.addf %151, %157 : vector<256x8xf32>
    %cst_80 = arith.constant 0.797884583 : f32
    %159 = vector.broadcast %cst_80 : f32 to vector<256x8xf32>
    %160 = arith.mulf %159, %158 : vector<256x8xf32>
    %161 = math.tanh %160 : vector<256x8xf32>
    %cst_81 = arith.constant 1.000000e+00 : f32
    %162 = vector.broadcast %cst_81 : f32 to vector<256x8xf32>
    %163 = arith.addf %162, %161 : vector<256x8xf32>
    %164 = arith.mulf %153, %163 : vector<256x8xf32>
    %165 = vector.shape_cast %164 : vector<256x8xf32> to vector<16x16x8xf32>
    %166 = vector.extract_strided_slice %58 {offsets = [1, 0], sizes = [1, 8], strides = [1, 1]} : vector<3x8xf32> to vector<1x8xf32>
    %167 = vector.shape_cast %166 : vector<1x8xf32> to vector<1x1x8xf32>
    %168 = vector.broadcast %167 : vector<1x1x8xf32> to vector<16x16x8xf32>
    %169 = arith.mulf %165, %168 : vector<16x16x8xf32>
    %cst_82 = arith.constant dense<0.000000e+00> : vector<16x16xf32>
    %170 = vector.multi_reduction <add>, %169, %cst_82 [2] : vector<16x16x8xf32> to vector<16x16xf32>
    %171 = vector.extract_strided_slice %60 {offsets = [1, 0], sizes = [1, 1], strides = [1, 1]} : vector<3x1xf32> to vector<1x1xf32>
    %172 = vector.broadcast %171 : vector<1x1xf32> to vector<16x16xf32>
    %173 = arith.addf %170, %172 : vector<16x16xf32>
    %174 = vector.extract_strided_slice %9 {offsets = [0, 1], sizes = [16, 1], strides = [1, 1]} : vector<16x3xf32> to vector<16x1xf32>
    %175 = vector.broadcast %174 : vector<16x1xf32> to vector<16x16xf32>
    %176 = arith.mulf %175, %173 : vector<16x16xf32>
    %177 = arith.addf %118, %176 : vector<16x16xf32>
    %178 = vector.extract_strided_slice %11 {offsets = [1, 0], sizes = [1, 16], strides = [1, 1]} : vector<3x16xf32> to vector<1x16xf32>
    %179 = vector.broadcast %178 : vector<1x16xf32> to vector<16x16xf32>
    %180 = arith.mulf %179, %173 : vector<16x16xf32>
    %181 = arith.addf %122, %180 : vector<16x16xf32>
    %182 = vector.extract_strided_slice %50 {offsets = [2, 0], sizes = [1, 8], strides = [1, 1]} : vector<3x8xf32> to vector<1x8xf32>
    %183 = vector.shape_cast %182 : vector<1x8xf32> to vector<1x1x8xf32>
    %184 = vector.broadcast %61 : vector<16x16x1xf32> to vector<16x16x8xf32>
    %185 = vector.broadcast %183 : vector<1x1x8xf32> to vector<16x16x8xf32>
    %186 = arith.mulf %184, %185 : vector<16x16x8xf32>
    %187 = vector.extract_strided_slice %52 {offsets = [2, 0], sizes = [1, 8], strides = [1, 1]} : vector<3x8xf32> to vector<1x8xf32>
    %188 = vector.shape_cast %187 : vector<1x8xf32> to vector<1x1x8xf32>
    %189 = vector.broadcast %188 : vector<1x1x8xf32> to vector<16x16x8xf32>
    %190 = arith.addf %186, %189 : vector<16x16x8xf32>
    %cst_83 = arith.constant 5.000000e-01 : f32
    %191 = vector.broadcast %cst_83 : f32 to vector<16x16x8xf32>
    %192 = arith.mulf %191, %190 : vector<16x16x8xf32>
    %cst_84 = arith.constant 4.471500e-02 : f32
    %193 = vector.broadcast %cst_84 : f32 to vector<16x16x8xf32>
    %194 = arith.mulf %193, %190 : vector<16x16x8xf32>
    %195 = arith.mulf %194, %190 : vector<16x16x8xf32>
    %196 = arith.mulf %195, %190 : vector<16x16x8xf32>
    %197 = arith.addf %190, %196 : vector<16x16x8xf32>
    %cst_85 = arith.constant 0.797884583 : f32
    %198 = vector.broadcast %cst_85 : f32 to vector<16x16x8xf32>
    %199 = arith.mulf %198, %197 : vector<16x16x8xf32>
    %200 = math.tanh %199 : vector<16x16x8xf32>
    %cst_86 = arith.constant 1.000000e+00 : f32
    %201 = vector.broadcast %cst_86 : f32 to vector<16x16x8xf32>
    %202 = arith.addf %201, %200 : vector<16x16x8xf32>
    %203 = arith.mulf %192, %202 : vector<16x16x8xf32>
    %204 = vector.shape_cast %203 : vector<16x16x8xf32> to vector<256x8xf32>
    %205 = vector.extract_strided_slice %54 {offsets = [2, 0, 0], sizes = [1, 8, 8], strides = [1, 1, 1]} : vector<3x8x8xf32> to vector<1x8x8xf32>
    %206 = vector.shape_cast %205 : vector<1x8x8xf32> to vector<8x8xf32>
    %cst_87 = arith.constant dense<0.000000e+00> : vector<256x8xf32>
    %207 = tpu.matmul %204, %206, %cst_87 {dimension_numbers = #tpu.dot_dimension_numbers<[1], [0], [0], [1], [0, 0, 1, 1], [], []>} : vector<256x8xf32>, vector<8x8xf32>, vector<256x8xf32> -> vector<256x8xf32>
    %208 = vector.extract_strided_slice %56 {offsets = [2, 0], sizes = [1, 8], strides = [1, 1]} : vector<3x8xf32> to vector<1x8xf32>
    %209 = vector.broadcast %208 : vector<1x8xf32> to vector<256x8xf32>
    %210 = arith.addf %207, %209 : vector<256x8xf32>
    %cst_88 = arith.constant 5.000000e-01 : f32
    %211 = vector.broadcast %cst_88 : f32 to vector<256x8xf32>
    %212 = arith.mulf %211, %210 : vector<256x8xf32>
    %cst_89 = arith.constant 4.471500e-02 : f32
    %213 = vector.broadcast %cst_89 : f32 to vector<256x8xf32>
    %214 = arith.mulf %213, %210 : vector<256x8xf32>
    %215 = arith.mulf %214, %210 : vector<256x8xf32>
    %216 = arith.mulf %215, %210 : vector<256x8xf32>
    %217 = arith.addf %210, %216 : vector<256x8xf32>
    %cst_90 = arith.constant 0.797884583 : f32
    %218 = vector.broadcast %cst_90 : f32 to vector<256x8xf32>
    %219 = arith.mulf %218, %217 : vector<256x8xf32>
    %220 = math.tanh %219 : vector<256x8xf32>
    %cst_91 = arith.constant 1.000000e+00 : f32
    %221 = vector.broadcast %cst_91 : f32 to vector<256x8xf32>
    %222 = arith.addf %221, %220 : vector<256x8xf32>
    %223 = arith.mulf %212, %222 : vector<256x8xf32>
    %224 = vector.shape_cast %223 : vector<256x8xf32> to vector<16x16x8xf32>
    %225 = vector.extract_strided_slice %58 {offsets = [2, 0], sizes = [1, 8], strides = [1, 1]} : vector<3x8xf32> to vector<1x8xf32>
    %226 = vector.shape_cast %225 : vector<1x8xf32> to vector<1x1x8xf32>
    %227 = vector.broadcast %226 : vector<1x1x8xf32> to vector<16x16x8xf32>
    %228 = arith.mulf %224, %227 : vector<16x16x8xf32>
    %cst_92 = arith.constant dense<0.000000e+00> : vector<16x16xf32>
    %229 = vector.multi_reduction <add>, %228, %cst_92 [2] : vector<16x16x8xf32> to vector<16x16xf32>
    %230 = vector.extract_strided_slice %60 {offsets = [2, 0], sizes = [1, 1], strides = [1, 1]} : vector<3x1xf32> to vector<1x1xf32>
    %231 = vector.broadcast %230 : vector<1x1xf32> to vector<16x16xf32>
    %232 = arith.addf %229, %231 : vector<16x16xf32>
    %233 = vector.extract_strided_slice %9 {offsets = [0, 2], sizes = [16, 1], strides = [1, 1]} : vector<16x3xf32> to vector<16x1xf32>
    %234 = vector.broadcast %233 : vector<16x1xf32> to vector<16x16xf32>
    %235 = arith.mulf %234, %232 : vector<16x16xf32>
    %236 = arith.addf %177, %235 : vector<16x16xf32>
    %237 = vector.extract_strided_slice %11 {offsets = [2, 0], sizes = [1, 16], strides = [1, 1]} : vector<3x16xf32> to vector<1x16xf32>
    %238 = vector.broadcast %237 : vector<1x16xf32> to vector<16x16xf32>
    %239 = arith.mulf %238, %232 : vector<16x16xf32>
    %240 = arith.addf %181, %239 : vector<16x16xf32>
    %241 = vector.broadcast %48 : vector<1x16xf32> to vector<16x16xf32>
    %242 = arith.mulf %236, %241 : vector<16x16xf32>
    %243 = vector.broadcast %46 : vector<16x1xf32> to vector<16x16xf32>
    %244 = arith.mulf %240, %243 : vector<16x16xf32>
    %cst_93 = arith.constant dense<0.000000e+00> : vector<16x16xf32>
    %245 = tpu.matmul %38, %41, %cst_93 {dimension_numbers = #tpu.dot_dimension_numbers<[1], [1], [0], [0], [0, 0, 1, 0], [], []>} : vector<16x8xf32>, vector<16x8xf32>, vector<16x16xf32> -> vector<16x16xf32>
    %246 = arith.mulf %242, %244 : vector<16x16xf32>
    %247 = arith.mulf %245, %246 : vector<16x16xf32>
    %cst_94 = arith.constant 0.353553385 : f32
    %248 = vector.broadcast %cst_94 : f32 to vector<16x16xf32>
    %249 = arith.mulf %247, %248 : vector<16x16xf32>
    %cst_95 = arith.constant 0.000000e+00 : f32
    %250 = vector.broadcast %cst_95 : f32 to vector<16x16xf32>
    %251 = arith.cmpf ogt, %13, %250 : vector<16x16xf32>
    %cst_96 = arith.constant -1.000000e+30 : f32
    %252 = vector.broadcast %cst_96 : f32 to vector<16x16xf32>
    %253 = arith.select %251, %252, %249 : vector<16x16xi1>, vector<16x16xf32>
    %cst_97 = arith.constant dense<0xFF800000> : vector<16xf32>
    %254 = vector.multi_reduction <maximumf>, %253, %cst_97 [1] : vector<16x16xf32> to vector<16xf32>
    %255 = vector.shape_cast %254 : vector<16xf32> to vector<16x1xf32>
    %256 = vector.broadcast %255 : vector<16x1xf32> to vector<16x16xf32>
    %257 = arith.subf %253, %256 : vector<16x16xf32>
    %258 = math.exp %257 : vector<16x16xf32>
    %cst_98 = arith.constant dense<0.000000e+00> : vector<16xf32>
    %259 = vector.multi_reduction <add>, %258, %cst_98 [1] : vector<16x16xf32> to vector<16xf32>
    %260 = vector.shape_cast %259 : vector<16xf32> to vector<16x1xf32>
    %261 = vector.broadcast %260 : vector<16x1xf32> to vector<16x16xf32>
    %262 = arith.divf %258, %261 : vector<16x16xf32>
    %263 = arith.mulf %262, %244 : vector<16x16xf32>
    %cst_99 = arith.constant dense<0.000000e+00> : vector<16x8xf32>
    %264 = tpu.matmul %263, %44, %cst_99 {dimension_numbers = #tpu.dot_dimension_numbers<[1], [0], [0], [1], [0, 0, 1, 1], [], []>} : vector<16x16xf32>, vector<16x8xf32>, vector<16x8xf32> -> vector<16x8xf32>
    %c0_100 = arith.constant 0 : index
    %c0_101 = arith.constant 0 : index
    %c0_102 = arith.constant 0 : index
    %265 = vector.load %arg14[%c0_100, %c0_101, %c0_102] : memref<1x8x32xf32, #tpu.memory_space<vmem>>, vector<1x8x32xf32>
    %266 = vector.shape_cast %265 : vector<1x8x32xf32> to vector<8x32xf32>
    %cst_103 = arith.constant dense<0.000000e+00> : vector<16x32xf32>
    %267 = tpu.matmul %264, %266, %cst_103 {dimension_numbers = #tpu.dot_dimension_numbers<[1], [0], [0], [1], [0, 0, 1, 1], [], []>} : vector<16x8xf32>, vector<8x32xf32>, vector<16x32xf32> -> vector<16x32xf32>
    %c0_i32 = arith.constant 0 : i32
    %268 = arith.cmpi eq, %arg1, %c0_i32 : i32
    %269 = arith.extui %268 : i1 to i32
    %c0_i32_104 = arith.constant 0 : i32
    %270 = arith.cmpi ne, %269, %c0_i32_104 : i32
    scf.if %270 {
      %c0_111 = arith.constant 0 : index
      %c0_112 = arith.constant 0 : index
      %c0_113 = arith.constant 0 : index
      %275 = vector.load %arg2[%c0_111, %c0_112, %c0_113] : memref<1x16x32xf32, #tpu.memory_space<vmem>>, vector<1x16x32xf32>
      %c0_114 = arith.constant 0 : index
      %c0_115 = arith.constant 0 : index
      %c0_116 = arith.constant 0 : index
      %276 = vector.load %arg21[%c0_114, %c0_115, %c0_116] : memref<1x16x32xf32, #tpu.memory_space<vmem>>, vector<1x16x32xf32>
      tpu.vector_store %arg21[%c0_114, %c0_115, %c0_116], %275 {strides = array<i32>} : memref<1x16x32xf32, #tpu.memory_space<vmem>>, vector<1x16x32xf32>,
    } else {
    }
    %c0_105 = arith.constant 0 : index
    %c0_106 = arith.constant 0 : index
    %c0_107 = arith.constant 0 : index
    %271 = vector.load %arg21[%c0_105, %c0_106, %c0_107] : memref<1x16x32xf32, #tpu.memory_space<vmem>>, vector<1x16x32xf32>
    %272 = vector.shape_cast %267 : vector<16x32xf32> to vector<1x16x32xf32>
    %273 = arith.addf %271, %272 : vector<1x16x32xf32>
    %c0_108 = arith.constant 0 : index
    %c0_109 = arith.constant 0 : index
    %c0_110 = arith.constant 0 : index
    %274 = vector.load %arg21[%c0_108, %c0_109, %c0_110] : memref<1x16x32xf32, #tpu.memory_space<vmem>>, vector<1x16x32xf32>
    tpu.vector_store %arg21[%c0_108, %c0_109, %c0_110], %273 {strides = array<i32>} : memref<1x16x32xf32, #tpu.memory_space<vmem>>, vector<1x16x32xf32>,
    return
  }
  func.func @transform_0(%arg0: i32, %arg1: i32) -> (i32, i32, i32) {
    %c0_i32 = arith.constant 0 : i32
    %c0_i32_0 = arith.constant 0 : i32
    %c0_i32_1 = arith.constant 0 : i32
    return %arg0, %c0_i32, %c0_i32_0 : i32, i32, i32
  }
  func.func @transform_1(%arg0: i32, %arg1: i32) -> (i32, i32, i32) {
    %c0_i32 = arith.constant 0 : i32
    %c0_i32_0 = arith.constant 0 : i32
    %c0_i32_1 = arith.constant 0 : i32
    return %arg0, %c0_i32, %c0_i32_0 : i32, i32, i32
  }
  func.func @transform_2(%arg0: i32, %arg1: i32) -> (i32, i32, i32) {
    %c0_i32 = arith.constant 0 : i32
    %c0_i32_0 = arith.constant 0 : i32
    %c0_i32_1 = arith.constant 0 : i32
    return %arg0, %c0_i32, %c0_i32_0 : i32, i32, i32
  }
  func.func @transform_3(%arg0: i32, %arg1: i32) -> (i32, i32, i32) {
    %c0_i32 = arith.constant 0 : i32
    %c0_i32_0 = arith.constant 0 : i32
    %c0_i32_1 = arith.constant 0 : i32
    return %arg0, %c0_i32, %c0_i32_0 : i32, i32, i32
  }
  func.func @transform_4(%arg0: i32, %arg1: i32) -> (i32, i32, i32) {
    %c0_i32 = arith.constant 0 : i32
    %c0_i32_0 = arith.constant 0 : i32
    %c0_i32_1 = arith.constant 0 : i32
    return %arg0, %c0_i32, %c0_i32_0 : i32, i32, i32
  }
  func.func @transform_5(%arg0: i32, %arg1: i32) -> (i32, i32, i32) {
    %c0_i32 = arith.constant 0 : i32
    %c0_i32_0 = arith.constant 0 : i32
    %c0_i32_1 = arith.constant 0 : i32
    return %arg0, %c0_i32, %c0_i32_0 : i32, i32, i32
  }
  func.func @transform_6(%arg0: i32, %arg1: i32) -> (i32, i32, i32) {
    %c0_i32 = arith.constant 0 : i32
    %c0_i32_0 = arith.constant 0 : i32
    %c0_i32_1 = arith.constant 0 : i32
    return %arg0, %c0_i32, %c0_i32_0 : i32, i32, i32
  }
  func.func @transform_7(%arg0: i32, %arg1: i32) -> (i32, i32) {
    %c0_i32 = arith.constant 0 : i32
    %c0_i32_0 = arith.constant 0 : i32
    %c0_i32_1 = arith.constant 0 : i32
    return %c0_i32, %c0_i32_0 : i32, i32
  }
  func.func @transform_8(%arg0: i32, %arg1: i32) -> (i32, i32) {
    %c0_i32 = arith.constant 0 : i32
    %c0_i32_0 = arith.constant 0 : i32
    %c0_i32_1 = arith.constant 0 : i32
    return %c0_i32, %c0_i32_0 : i32, i32
  }
  func.func @transform_9(%arg0: i32, %arg1: i32) -> (i32, i32, i32) {
    %c0_i32 = arith.constant 0 : i32
    %c0_i32_0 = arith.constant 0 : i32
    %c0_i32_1 = arith.constant 0 : i32
    return %arg1, %c0_i32, %c0_i32_0 : i32, i32, i32
  }
  func.func @transform_10(%arg0: i32, %arg1: i32) -> (i32, i32, i32) {
    %c0_i32 = arith.constant 0 : i32
    %c0_i32_0 = arith.constant 0 : i32
    %c0_i32_1 = arith.constant 0 : i32
    return %arg1, %c0_i32, %c0_i32_0 : i32, i32, i32
  }
  func.func @transform_11(%arg0: i32, %arg1: i32) -> (i32, i32, i32) {
    %c0_i32 = arith.constant 0 : i32
    %c0_i32_0 = arith.constant 0 : i32
    %c0_i32_1 = arith.constant 0 : i32
    return %arg1, %c0_i32, %c0_i32_0 : i32, i32, i32
  }
  func.func @transform_12(%arg0: i32, %arg1: i32) -> (i32, i32, i32) {
    %c0_i32 = arith.constant 0 : i32
    %c0_i32_0 = arith.constant 0 : i32
    %c0_i32_1 = arith.constant 0 : i32
    return %arg1, %c0_i32, %c0_i32_0 : i32, i32, i32
  }
  func.func @transform_13(%arg0: i32, %arg1: i32) -> (i32, i32, i32) {
    %c0_i32 = arith.constant 0 : i32
    %c0_i32_0 = arith.constant 0 : i32
    %c0_i32_1 = arith.constant 0 : i32
    return %arg1, %c0_i32, %c0_i32_0 : i32, i32, i32
  }
  func.func @transform_14(%arg0: i32, %arg1: i32) -> (i32, i32, i32) {
    %c0_i32 = arith.constant 0 : i32
    %c0_i32_0 = arith.constant 0 : i32
    %c0_i32_1 = arith.constant 0 : i32
    return %arg1, %c0_i32, %c0_i32_0 : i32, i32, i32
  }
  func.func @transform_15(%arg0: i32, %arg1: i32) -> (i32, i32, i32, i32) {
    %c0_i32 = arith.constant 0 : i32
    %c0_i32_0 = arith.constant 0 : i32
    %c0_i32_1 = arith.constant 0 : i32
    %c0_i32_2 = arith.constant 0 : i32
    return %arg1, %c0_i32, %c0_i32_0, %c0_i32_1 : i32, i32, i32, i32
  }
  func.func @transform_16(%arg0: i32, %arg1: i32) -> (i32, i32, i32) {
    %c0_i32 = arith.constant 0 : i32
    %c0_i32_0 = arith.constant 0 : i32
    %c0_i32_1 = arith.constant 0 : i32
    return %arg1, %c0_i32, %c0_i32_0 : i32, i32, i32
  }
  func.func @transform_17(%arg0: i32, %arg1: i32) -> (i32, i32, i32) {
    %c0_i32 = arith.constant 0 : i32
    %c0_i32_0 = arith.constant 0 : i32
    %c0_i32_1 = arith.constant 0 : i32
    return %arg1, %c0_i32, %c0_i32_0 : i32, i32, i32
  }
  func.func @transform_18(%arg0: i32, %arg1: i32) -> (i32, i32, i32) {
    %c0_i32 = arith.constant 0 : i32
    %c0_i32_0 = arith.constant 0 : i32
    %c0_i32_1 = arith.constant 0 : i32
    return %arg1, %c0_i32, %c0_i32_0 : i32, i32, i32
  }
  func.func @transform_19(%arg0: i32, %arg1: i32) -> (i32, i32, i32) {
    %c0_i32 = arith.constant 0 : i32
    %c0_i32_0 = arith.constant 0 : i32
    %c0_i32_1 = arith.constant 0 : i32
    return %arg0, %c0_i32, %c0_i32_0 : i32, i32, i32
  }
}

</mosaic_0001>

<bundles_post_ra>
// kernel: tpu_custom_call.1
= control target key start
LH: loop header
LB: loop body
LE: loop exit
PB: predicated region body
PF: predicated region fallthrough
CT: control target
= control target key end

     0   :  { %s10767_s0 = inlined_call_operand.vmem [shape: f32[2,16,32], index: 0, kind: input, shape index: {}]   ;;  %s10768_s1 = inlined_call_operand.vmem [shape: f32[2,16,32], index: 1, kind: input, shape index: {}]   ;;  %s10769_s2 = inlined_call_operand.vmem [shape: f32[2,16,32], index: 2, kind: input, shape index: {}]   ;;  %s10770_s3 = inlined_call_operand.vmem [shape: f32[2,16,16], index: 3, kind: input, shape index: {}]   ;;  %s10771_s4 = inlined_call_operand.vmem [shape: f32[2,16,3], index: 4, kind: input, shape index: {}]   ;;  %s10772_s5 = inlined_call_operand.vmem [shape: f32[2,3,16], index: 5, kind: input, shape index: {}]   ;;  %s10773_s6 = inlined_call_operand.vmem [shape: f32[2,16,16], index: 6, kind: input, shape index: {}]   ;;  %s10774_s7 = inlined_call_operand.vmem [shape: f32[1,32], index: 7, kind: input, shape index: {}]   ;;  %s10775_s8 = inlined_call_operand.vmem [shape: f32[1,32], index: 8, kind: input, shape index: {}]   ;;  %s10776_s9 = inlined_call_operand.vmem [shape: f32[2,32,8], index: 9, kind: input, shape index: {}]   ;;  %s10777_s10 = inlined_call_operand.vmem [shape: f32[2,32,8], index: 10, kind: input, shape index: {}]   ;;  %s10778_s11 = inlined_call_operand.vmem [shape: f32[2,32,8], index: 11, kind: input, shape index: {}]   ;;  %s10779_s12 = inlined_call_operand.vmem [shape: f32[2,8,32], index: 12, kind: input, shape index: {}]   ;;  %s10780_s13 = inlined_call_operand.vmem [shape: f32[2,3,8], index: 13, kind: input, shape index: {}]   ;;  %s10781_s14 = inlined_call_operand.vmem [shape: f32[2,3,8], index: 14, kind: input, shape index: {}]   ;;  %s10782_s15 = inlined_call_operand.vmem [shape: f32[2,3,8,8], index: 15, kind: input, shape index: {}]   ;;  %s10783_s16 = inlined_call_operand.vmem [shape: f32[2,3,8], index: 16, kind: input, shape index: {}]   ;;  %s10784_s17 = inlined_call_operand.vmem [shape: f32[2,3,8], index: 17, kind: input, shape index: {}]   ;;  %s10785_s18 = inlined_call_operand.vmem [shape: f32[2,3,1], index: 18, kind: input, shape index: {}]   ;;  %s10786_s19 = inlined_call_operand.hbm [shape: f32[2,16,32], index: 19, kind: output, shape index: {}]  }
   0x1   :  { %10935 = sst [smem:[#allocation104_spill]] %s10767_s0 }
   0x2   :  { %10936 = sst [smem:[#allocation105_spill]] %s10768_s1 }
   0x3   :  { %10937 = sst [smem:[#allocation106_spill]] %s10769_s2 }
   0x4   :  { %10938 = sst [smem:[#allocation107_spill]] %s10770_s3 }
   0x5   :  { %10939 = sst [smem:[#allocation108_spill]] %s10777_s10 }
   0x6   :  { %10940 = sst [smem:[#allocation109_spill]] %s10780_s13 }
   0x7   :  { %10941 = sst [smem:[#allocation110_spill]] %s10786_s19 }
   0x8   :  { %24 = vsyncpa [#allocation3], 0 }
   0x9   :  { %26 = vsyncpa [#allocation3 + $0x1], 0  ;;  %s7264_s0 = smov 0   ;;  %s7266_s30 = smov 0  }
   0xa   :  { %s7268_s20 = smov 0   ;;  %s7270_s21 = smov 0  }
   0xb   :  { %s7272_s1 = smov 0   ;;  %s7274_s22 = smov 0  }
   0xc   :  { %s7276_s2 = smov 0   ;;  %s7278_s23 = smov 0  }
   0xd LB: > { %10942 = sst [smem:[#allocation5_spill]] %s7128_s0  ;;  %s6080_s24 = sadd.s32 4294967295, %s7156_s23   ;;  %s7156_s23 = sphi %s7278_s23, %s32_s23   ;;  %s7152_s2 = sphi %s7276_s2, %s11300_s2   ;;  %s7148_s22 = sphi %s7274_s22, %s11299_s22   ;;  %s7144_s1 = sphi %s7272_s1, %s11298_s1   ;;  %s7140_s21 = sphi %s7270_s21, %s11297_s21   ;;  %s7136_s20 = sphi %s7268_s20, %s11296_s20   ;;  %s7132_s30 = sphi %s7266_s30, %s11302_s30   ;;  %s7128_s0 = sphi %s7264_s0, %s11301_s0  }
   0xe   : > { %10943 = sst [smem:[#allocation6_spill]] %s7136_s20  ;;  %s6081_s25 = sadd.s32 4294967294, %s7156_s23  }
   0xf   : > { %10944 = sst [smem:[#allocation7_spill]] %s7148_s22  ;;  %s41_s3 = sadd.s32 1, %s7148_s22 }
  0x10   : > { %10945 = sst [smem:[#allocation8_spill]] %s7152_s2  ;;  %p42_p0 = scmp.ge.s32.totalorder %s41_s3, 2 }
  0x11   : > { %10946 = sst [smem:[#allocation9_spill]] %s7156_s23  ;;  %s44_s26 = sadd.s32 1, %s7152_s2 }
  0x12   : > { %p545_p1 = scmp.ne.s32.totalorder %s7136_s20, %s7132_s30  ;;  %p546_p2 = scmp.eq.s32.totalorder %s6080_s24, 3 }
  0x13   : > { %s11304_s3 = smov (%p42_p0, %s41_s3), 0  ;;  %s11306_s26 = smov (!%p42_p0, %s44_s26), %s7152_s2 }
  0x14   : > { %10947 = sst [smem:[#allocation10_spill]] %s11304_s3  ;;  %p7313_p3 = por %p546_p2, %p545_p1 }
  0x15   : > { %p551_p4 = scmp.ne.s32.totalorder %s7132_s30, %s7128_s0  ;;  %p46_p5 = scmp.ge.s32.totalorder %s11306_s26, 2 }
  0x16   : > { %p552_p6 = scmp.eq.s32.totalorder %s6081_s25, 3  ;;  %p6084_p7 = scmp.ge.s32.totalorder %s7156_s23, 1 }
  0x17   : > { %p705_p8 = scmp.lt.s32.totalorder %s7156_s23, 5  ;;  %s11308_s26 = smov (%p46_p5, %s11306_s26), 0 }
  0x18   : > { %10949 = sst [smem:[#allocation11_spill]] %s11308_s26  ;;  %p7323_p9 = por %p552_p6, %p551_p4 }
  0x19   : > { %p706_p10 = pnand %p6084_p7, %p705_p8  ;;  %s532_s29 = ssub.s32 %s7152_s2, %s11308_s26 }
  0x1a   : > { %s10950_s28 = scalar_select %p7323_p9, 1, 0 }
  0x1b   : > { %s535_s24 = sadd.s32 1, %s7136_s20  ;;  %p533_p11 = scmp.eq.s32.totalorder %s532_s29, 0 }
  0x1c   : > { %10951 = sst [smem:[#allocation12_spill]] %s10950_s28  ;;  %709 = sbr.rel (%p706_p10) target bundleno = 1725 (0x6bd), region = 96 }
  0x1d   : > { %s7331_s3 = scalar_select %p533_p11, %s7136_s20, %s535_s24  }
  0x1f   : > { %10952 = sst [smem:[#allocation13_spill]] %s7331_s3 }
  0x21   : > { %p834_p12 = scmp.lt.s32.totalorder %s7144_s1, 1  ;;  %v1249_v0 = vlaneseq  ;;  %vm925_vm0 = vcmask 261120   ;;  %s10954_s26 = sld [smem:[#allocation104_spill]]  ;;  %vm1789_vm1 = vcmask 64512   ;;  %vm1226_vm2 = vcmask 23552  }
  0x22   : > { %s10955_s28 = sld [smem:[#allocation107_spill]]  ;;  %p868_p13 = scmp.lt.s32.totalorder %s7140_s21, 1  ;;  %vm2620_vm3 = vcmask 130112   ;;  %vm2757_vm4 = vcmask 1041409   ;;  %vm2759_vm5 = vcmask 1042434   ;;  %vm2761_vm6 = vcmask 1043459  }
  0x23   : > { %s7335_s25 = scalar_select %p834_p12, %s7144_s1, 1  ;;  %v7337_v1 = vshrl.u32 %v1249_v0, 7  ;;  %v2610_v2 = vand.u32 127, %v1249_v0  ;;  %vm2763_vm7 = vcmask 1044484   ;;  %vm2765_vm8 = vcmask 1045509  }
  0x24   : > { %s7381_s20 = scalar_select %p868_p13, %s7140_s21, 1  ;;  %vm2767_vm9 = vcmask 1046534   ;;  %vm2769_vm10 = vcmask 1047559   ;;  %vm1233_vm11 = vcmask 124928   ;;  %vm5599_vm13 = vcmask 130048  }
  0x25   : > { %s7340_s22 = sshll.u32 %s7335_s25, 4  ;;  %v1306_v3 = vsub.s32 5, %v7337_v1  ;;  %v7344_v4 = vsub.s32 %v2610_v2, %v7337_v1  ;;  %v2615_v5 = vadd.s32 4294967288, %v2610_v2  ;;  %v1317_v13 = vsub.s32 6, %v7337_v1  ;;  %s10958_s10 = sld [smem:[#allocation108_spill]] }
  0x26   : > { %v1328_v15 = vsub.s32 7, %v7337_v1  ;;  %v7385_v17 = vsub.s32 0, %v7337_v1  ;;  %s7388_s3 = sshll.u32 %s7381_s20, 5  ;;  %v7396_v23 = vsub.s32 1, %v7337_v1  ;;  %v7413_v29 = vsub.s32 2, %v7337_v1  ;;  %s10962_s13 = sld [smem:[#allocation109_spill]] }
  0x27   : > { %10953 = vst [vmem:[#allocation14_spill] sm:$0xff] %v7344_v4  ;;  %s7350_s2 = scalar_lea.vmem %s10954_s26, %s7340_s22  ;;  %v7362_v8 = vsub.s32 %v2615_v5, %v7337_v1  ;;  %s10960_s26 = sld [smem:[#allocation105_spill]]  ;;  %v1284_v32 = vsub.s32 3, %v7337_v1  ;;  %v1295_v35 = vsub.s32 4, %v7337_v1 }
  0x28   : > { %s853_s0 = scalar_lea.vmem %s10955_s28, %s7340_s22  ;;  %v7357_v6 = vld [vmem:[%s7350_s2] sm:$0xff]  ;;  %v7365_v9 = vld [vmem:[%s7350_s2 + $0x8] sm:$0xff]  ;;  %10957 = vst [vmem:[#allocation16_spill] sm:$0xff] %v7385_v17  ;;  %10959 = vst [vmem:[#allocation17_spill] sm:$0xff] %v7396_v23  ;;  %s10841_s19 = sand.u32 1, %s7132_s30  }
  0x29   : > { %v7359_v7 = vld [vmem:[%s853_s0] sm:$0xff]  ;;  %10956 = vst [vmem:[#allocation15_spill] sm:$0xff] %v7362_v8  ;;  %v926_v10 = vsel %vm925_vm0, %v7357_v6, 0.0  ;;  %v929_v12 = vsel %vm925_vm0, %v7365_v9, 0.0  ;;  %v919_v18 = vld [vmem:[%s853_s0 + $0x8] sm:$0xff]  ;;  %10961 = vst [vmem:[#allocation18_spill] sm:$0xff] %v7413_v29 }
  0x2a   : > { %v1307_v11 = vrot.slane %v7359_v7, %v1306_v3  ;;  %927 = vadd.xlane.f32.xlu0 %v926_v10  ;;  %v1318_v14 = vrot.slane %v7359_v7, %v1317_v13  ;;  %v1329_v16 = vrot.slane %v7359_v7, %v1328_v15  ;;  %v1340_v20 = vrot.slane %v919_v18, %v7385_v17  ;;  %s11055_s23 = sld [smem:[#allocation106_spill]]  ;;  %p6224_p0 = scmp.ne.s32.totalorder %s7140_s21, 0 }
  0x2b   : > { %s877_s29 = scalar_lea.vmem %s10958_s10, %s7388_s3  ;;  %s6572_s10 = smul.u32 24, %s7381_s20  ;;  %v1351_v27 = vrot.slane %v919_v18, %v7396_v23  ;;  %v1362_v30 = vrot.slane %v919_v18, %v7413_v29  ;;  %v1252_v31 = vrot.slane %v7359_v7, %v7385_v17  ;;  %v1373_v33 = vrot.slane %v919_v18, %v1284_v32 }
  0x2c   : > { %1309 = vbcast.lane.b32.xlu1 %v1307_v11, 256  ;;  %v1059_v19 = vld [vmem:[%s877_s29 + $0x18] sm:$0xff]  ;;  %v1058_v21 = vld [vmem:[%s877_s29 + $0x10] sm:$0xff]  ;;  %v1057_v22 = vld [vmem:[%s877_s29 + $0x8] sm:$0xff]  ;;  %v1263_v34 = vrot.slane %v7359_v7, %v7396_v23  ;;  %v7422_v36 = vrot.slane %v919_v18, %v1328_v15  ;;  %v1384_v37 = vrot.slane %v919_v18, %v1295_v35  ;;  %v1274_v38 = vrot.slane %v7359_v7, %v7413_v29 }
  0x2d   : > { %6379 = vmatprep.subr.mxu1 %v1059_v19  ;;  %v1056_v24 = vld [vmem:[%s877_s29] sm:$0xff]  ;;  %s843_s28 = scalar_lea.vmem %s10960_s26, %s7340_s22  ;;  %s7409_s29 = scalar_lea.vmem %s10782_s15, %s6572_s10  ;;  %v1395_v39 = vrot.slane %v919_v18, %v1306_v3  ;;  %v1285_v40 = vrot.slane %v7359_v7, %v1284_v32  ;;  %v1406_v41 = vrot.slane %v919_v18, %v1317_v13  ;;  %v7432_v42 = vrot.slane %v7359_v7, %v1295_v35 }
  0x2e   : > { %930 = vadd.xlane.f32.xlu0 %v929_v12  ;;  %6380 = vmatpush3.msra.mxu1 %v1059_v19  ;;  %v914_v25 = vld [vmem:[%s843_s28] sm:$0xff]  ;;  %v915_v26 = vld [vmem:[%s843_s28 + $0x8] sm:$0xff]  ;;  %s7436_s10 = sshll.u32 %s7381_s20, 2  ;;  %s7777_s26 = scalar_lea.vmem %s10776_s9, %s7388_s3 }
  0x2f   : > { %6381 = vmatprep.subr.mxu1 %v1058_v21  ;;  %6387 = vmatprep.mubr.msk.f32.mxu1 %vm925_vm0, %v914_v25  ;;  %v1243_v28 = vld [vmem:[%s7409_s29] sm:$0xff]  ;;  %s890_s0 = scalar_lea.vmem %s10962_s13, %s7436_s10  ;;  %s894_s28 = scalar_lea.vmem %s10781_s14, %s7436_s10 }
  0x30   : > { %1313 = vbcast.lane.b32.xlu1 %v1307_v11, 264  ;;  %6382 = vmatpush3.msra.mxu1 %v1058_v21  ;;  %v1241_v43 = vld [vmem:[%s890_s0] sm:$0x7]  ;;  %s7469_s0 = scalar_lea.vmem %s10783_s16, %s7436_s10  ;;  %s7791_s13 = sshll.u32 %s10841_s19, 4 }
  0x31   : > { %6383 = vmatprep.subr.mxu1 %v1057_v22  ;;  %v1242_v44 = vld [vmem:[%s894_s28] sm:$0x7]  ;;  %v7447_v45 = vrot.slane %v1241_v43, %v7385_v17  ;;  %v7450_v46 = vrot.slane %v1241_v43, %v7413_v29  ;;  %v7461_v52 = vrot.slane %v1241_v43, %v7396_v23  ;;  %s7475_s28 = scalar_lea.vmem %s10784_s17, %s7436_s10  ;;  %s7879_s19 = scalar_lea.vmem %s10778_s11, %s7388_s3 }
  0x32   : > { %6384 = vmatpush3.msra.mxu1 %v1057_v22  ;;  %v7453_v47 = vrot.slane %v1242_v44, %v7385_v17  ;;  %v7456_v48 = vrot.slane %v1242_v44, %v7413_v29  ;;  %v1246_v58 = vld [vmem:[%s7469_s0] sm:$0x7]  ;;  %v7481_v61 = vrot.slane %v1242_v44, %v7396_v23  ;;  %s8456_s24 = scalar_lea.vmem %s11055_s23, %s7340_s22 }
  0x33   : > { %6385 = vmatprep.subr.mxu1 %v1056_v24  ;;  %v1247_v1 = vld [vmem:[%s7475_s28] sm:$0x7]  ;;  %v7491_v11 = vrot.slane %v1246_v58, %v7385_v17 }
  0x34   : > { %1324 = vbcast.lane.b32.xlu1 %v1318_v14, 264  ;;  %6386 = vmatpush3.msra.mxu1 %v1056_v24  ;;  %v7495_v13 = vrot.slane %v1247_v1, %v7385_v17 }
  0x35   : > { %6388 = vmatmul.mubr.msk.f32.vlgmr.msra.gmra.mxu1 %vm925_vm0, %v915_v26  ;;  %6570 = vmatprep.subr.mxu1 %v1243_v28  ;;  %10963 = vst [vmem:[#allocation19_spill] sm:$0xff] %v7491_v11 }
  0x36   : > { %6571 = vmatpush3.msra.mxu1 %v1243_v28  ;;  %10964 = vst [vmem:[#allocation20_spill] sm:$0xff] %v7495_v13 }
  0x38   : > { %1331 = vbcast.lane.b32.xlu1 %v1329_v16, 256 }
  0x3c   : > { %1342 = vbcast.lane.b32.xlu1 %v1340_v20, 256 }
  0x40   : > { %1346 = vbcast.lane.b32.xlu1 %v1340_v20, 264 }
  0x44   : > { %1353 = vbcast.lane.b32.xlu1 %v1351_v27, 256  ;;  %1320 = vbcast.lane.b32.xlu0 %v1318_v14, 256 }
  0x48   : > { %1357 = vbcast.lane.b32.xlu1 %v1351_v27, 264  ;;  %1335 = vbcast.lane.b32.xlu0 %v1329_v16, 264 }
  0x4c   : > { %1364 = vbcast.lane.b32.xlu1 %v1362_v30, 256  ;;  %1368 = vbcast.lane.b32.xlu0 %v1362_v30, 264 }
  0x50   : > { %1254 = vbcast.lane.b32.xlu1 %v1252_v31, 256  ;;  %1258 = vbcast.lane.b32.xlu0 %v1252_v31, 264 }
  0x54   : > { %1375 = vbcast.lane.b32.xlu1 %v1373_v33, 256  ;;  %1379 = vbcast.lane.b32.xlu0 %v1373_v33, 264 }
  0x58   : > { %1265 = vbcast.lane.b32.xlu1 %v1263_v34, 256  ;;  %1269 = vbcast.lane.b32.xlu0 %v1263_v34, 264 }
  0x5c   : > { %1386 = vbcast.lane.b32.xlu1 %v1384_v37, 256  ;;  %1390 = vbcast.lane.b32.xlu0 %v1384_v37, 264 }
  0x60   : > { %1276 = vbcast.lane.b32.xlu1 %v1274_v38, 256  ;;  %1280 = vbcast.lane.b32.xlu0 %v1274_v38, 264 }
  0x64   : > { %1397 = vbcast.lane.b32.xlu1 %v1395_v39, 256  ;;  %1401 = vbcast.lane.b32.xlu0 %v1395_v39, 264 }
  0x68   : > { %1287 = vbcast.lane.b32.xlu1 %v1285_v40, 256  ;;  %1291 = vbcast.lane.b32.xlu0 %v1285_v40, 264 }
  0x6c   : > { %1408 = vbcast.lane.b32.xlu1 %v1406_v41, 256  ;;  %1412 = vbcast.lane.b32.xlu0 %v1406_v41, 264 }
  0x70   : > { %1298 = vbcast.lane.b32.xlu1 %v7432_v42, 256 }
  0x9e   : > { %v1310_v49 = vpop.permute.xlu1 %1309 }
  0x9f   : > { %v1439_v50 = vmul.f32 %v7447_v45, %v1310_v49  ;;  %v4159_v51 = vmul.f32 %v7450_v46, %v1310_v49  ;;  %v2806_v62 = vmul.f32 %v7461_v52, %v1310_v49 }
  0xa1   : > { %v1475_v53 = vadd.f32 %v7453_v47, %v1439_v50  ;;  %v4195_v54 = vadd.f32 %v7456_v48, %v4159_v51  ;;  %v7498_v16 = vadd.f32 %v7481_v61, %v2806_v62 }
  0xa2   : > { %v1314_v55 = vpop.permute.xlu1 %1313 }
  0xa3   : > { %v1440_v56 = vmul.f32 %v7447_v45, %v1314_v55  ;;  %v4160_v57 = vmul.f32 %v7450_v46, %v1314_v55  ;;  %v1539_v59 = vmul.f32 0.044715, %v1475_v53  ;;  %v4259_v60 = vmul.f32 0.044715, %v4195_v54  ;;  %10965 = vst [vmem:[#allocation21_spill] sm:$0xff] %v7498_v16 }
  0xa4   : > { %v2807_v12 = vmul.f32 %v7461_v52, %v1314_v55  ;;  %v7503_v24 = vmul.f32 0.5, %v1475_v53  ;;  %v7505_v26 = vmul.f32 0.5, %v4195_v54 }
  0xa5   : > { %v1476_v63 = vadd.f32 %v7453_v47, %v1440_v56  ;;  %v7486_v0 = vadd.f32 %v7456_v48, %v4160_v57  ;;  %v1571_v3 = vmul.f32 %v1539_v59, %v1475_v53  ;;  %v4291_v5 = vmul.f32 %v4259_v60, %v4195_v54 }
  0xa6   : > { %v1325_v2 = vpop.permute.xlu1 %1324  ;;  %10966 = vst [vmem:[#allocation22_spill] sm:$0xff] %v7505_v26  ;;  %v7510_v32 = vadd.f32 %v7481_v61, %v2807_v12  ;;  %v971_v26 = vld [vmem:[%s7777_s26] sm:$0xff] }
  0xa7   : > { %v1540_v7 = vmul.f32 0.044715, %v1476_v63  ;;  %v1442_v10 = vmul.f32 %v7447_v45, %v1325_v2  ;;  %v1603_v14 = vmul.f32 %v1571_v3, %v1475_v53  ;;  %v4323_v15 = vmul.f32 %v4291_v5, %v4195_v54 }
  0xa8   : > { %v4260_v20 = vmul.f32 0.044715, %v7486_v0  ;;  %v2809_v21 = vmul.f32 %v7461_v52, %v1325_v2  ;;  %v4162_v28 = vmul.f32 %v7450_v46, %v1325_v2  ;;  %10967 = vst [vmem:[#allocation23_spill] sm:$0xff] %v7510_v32  ;;  %v7512_v34 = vmul.f32 0.5, %v1476_v63 }
  0xa9   : > { %v1572_v18 = vmul.f32 %v1540_v7, %v1476_v63  ;;  %v1478_v19 = vadd.f32 %v7453_v47, %v1442_v10  ;;  %v1635_v25 = vadd.f32 %v1603_v14, %v1475_v53  ;;  %v4355_v31 = vadd.f32 %v4323_v15, %v4195_v54 }
  0xaa   : > { %v1332_v22 = vpop.permute.xlu1 %1331  ;;  %v4292_v40 = vmul.f32 %v4260_v20, %v7486_v0  ;;  %v7518_v41 = vadd.f32 %v7481_v61, %v2809_v21  ;;  %v7522_v50 = vadd.f32 %v7456_v48, %v4162_v28  ;;  %v7537_v5 = vmul.f32 0.5, %v7486_v0 }
  0xab   : > { %v1604_v27 = vmul.f32 %v1572_v18, %v1476_v63  ;;  %v1443_v30 = vmul.f32 %v7447_v45, %v1332_v22  ;;  %v1667_v33 = vmul.f32 0.7978846, %v1635_v25  ;;  %v1542_v35 = vmul.f32 0.044715, %v1478_v19 }
  0xac   : > { %v2810_v38 = vmul.f32 %v7461_v52, %v1332_v22  ;;  %10968 = vst [vmem:[#allocation24_spill] sm:$0xff] %v7518_v41  ;;  %v4163_v43 = vmul.f32 %v7450_v46, %v1332_v22  ;;  %10969 = vst [vmem:[#allocation25_spill] sm:$0xff] %v7522_v50  ;;  %v4387_v54 = vmul.f32 0.7978846, %v4355_v31  ;;  %v7526_v56 = vmul.f32 0.5, %v1478_v19 }
  0xad   : > { %v1479_v37 = vadd.f32 %v7453_v47, %v1443_v30  ;;  %v1636_v39 = vadd.f32 %v1604_v27, %v1476_v63  ;;  %6661 = vtanh.f32 %v1667_v33  ;;  %v1574_v49 = vmul.f32 %v1542_v35, %v1478_v19  ;;  %10972 = vst [vmem:[#allocation28_spill] sm:$0xff] %v7537_v5 }
  0xae   : > { %v1343_v44 = vpop.permute.xlu1 %1342  ;;  %v7529_v59 = vadd.f32 %v7481_v61, %v2810_v38  ;;  %v4324_v62 = vmul.f32 %v4292_v40, %v7486_v0  ;;  %v7534_v63 = vadd.f32 %v7456_v48, %v4163_v43  ;;  %v4262_v40 = vmul.f32 0.044715, %v7522_v50 }
  0xaf   : > { %v1445_v51 = vmul.f32 %v7447_v45, %v1343_v44  ;;  %v1668_v53 = vmul.f32 0.7978846, %v1636_v39  ;;  %v2812_v55 = vmul.f32 %v7461_v52, %v1343_v44  ;;  %v1606_v57 = vmul.f32 %v1574_v49, %v1478_v19 }
  0xb0   : > { %v1543_v58 = vmul.f32 0.044715, %v1479_v37  ;;  %10970 = vst [vmem:[#allocation26_spill] sm:$0xff] %v7529_v59  ;;  %10971 = vst [vmem:[#allocation27_spill] sm:$0xff] %v7534_v63  ;;  %v4165_v7 = vmul.f32 %v7450_v46, %v1343_v44  ;;  %v7541_v12 = vmul.f32 0.5, %v1479_v37  ;;  %v4356_v27 = vadd.f32 %v4324_v62, %v7486_v0 }
  0xb1   : > { %v1481_v60 = vadd.f32 %v7453_v47, %v1445_v51  ;;  %6663 = vtanh.f32 %v1668_v53  ;;  %v1638_v2 = vadd.f32 %v1606_v57, %v1478_v19  ;;  %v7544_v14 = vadd.f32 %v7481_v61, %v2812_v55 }
  0xb2   : > { %v1347_v1 = vpop.permute.xlu1 %1346  ;;  %v1575_v3 = vmul.f32 %v1543_v58, %v1479_v37  ;;  %6665 = vtanh.f32 %v4387_v54  ;;  %v7553_v35 = vadd.f32 %v7456_v48, %v4165_v7  ;;  %v7565_v55 = vmul.f32 0.7978846, %v4356_v27 }
  0xb3   : > { %v1446_v10 = vmul.f32 %v7447_v45, %v1347_v1  ;;  %10973 = vst [vmem:[#allocation29_spill] sm:$0xff] %v7544_v14  ;;  %v928_v15 = vpop.xlane.xlu0 %927  ;;  %v1670_v18 = vmul.f32 0.7978846, %v1638_v2  ;;  %v1545_v21 = vmul.f32 0.044715, %v1481_v60  ;;  %v2813_v25 = vmul.f32 %v7461_v52, %v1347_v1 }
  0xb4   : > { %v1607_v20 = vmul.f32 %v1575_v3, %v1479_v37  ;;  %v933_v22 = vmul.f32 0.03125, %v928_v15  ;;  %v4166_v28 = vmul.f32 %v7450_v46, %v1347_v1  ;;  %10974 = vst [vmem:[#allocation30_spill] sm:$0xff] %v7553_v35  ;;  %v7558_v39 = vmul.f32 0.5, %v1481_v60  ;;  %10976 = vst [vmem:[#allocation32_spill] sm:$0xff] %v7565_v55 }
  0xb5   : > { %v7547_v19 = vadd.f32 %v7453_v47, %v1446_v10  ;;  %6667 = vtanh.f32 %v1670_v18  ;;  %v1577_v33 = vmul.f32 %v1545_v21, %v1481_v60  ;;  %v7582_v10 = vmul.f32 %v4262_v40, %v7522_v50 }
  0xb6   : > { %v1354_v30 = vpop.permute.xlu1 %1353  ;;  %v1639_v31 = vadd.f32 %v1607_v20, %v1479_v37  ;;  %v7556_v38 = vsub.f32 %v7357_v6, %v933_v22  ;;  %v7568_v6 = vadd.f32 %v7481_v61, %v2813_v25  ;;  %v7571_v57 = vadd.f32 %v7456_v48, %v4166_v28 }
  0xb7   : > { %v931_v43 = vpop.xlane.xlu0 %930  ;;  %v1447_v44 = vmul.f32 %v7447_v45, %v1354_v30  ;;  %v2814_v0 = vmul.f32 %v7461_v52, %v1354_v30  ;;  %v1609_v51 = vmul.f32 %v1577_v33, %v1481_v60  ;;  %v4167_v37 = vmul.f32 %v7450_v46, %v1354_v30  ;;  %10980 = vst [vmem:[#allocation36_spill] sm:$0xff] %v7582_v10 }
  0xb8   : > { %10975 = vst [vmem:[#allocation31_spill] sm:$0xff] %v7556_v38  ;;  %v1671_v49 = vmul.f32 0.7978846, %v1639_v31  ;;  %v934_v53 = vmul.f32 0.03125, %v931_v43  ;;  %v1546_v54 = vmul.f32 0.044715, %v7547_v19  ;;  %v937_v58 = vmul.f32 %v7556_v38, %v7556_v38 }
  0xb9   : > { %10977 = vst [vmem:[#allocation33_spill] sm:$0xff] %v7568_v6  ;;  %10978 = vst [vmem:[#allocation34_spill] sm:$0xff] %v7571_v57  ;;  %v1641_v3 = vadd.f32 %v1609_v51, %v1481_v60  ;;  %v7579_v7 = vmul.f32 0.5, %v7547_v19  ;;  %v7585_v15 = vadd.f32 %v7453_v47, %v1447_v44  ;;  %v7588_v18 = vadd.f32 %v7481_v61, %v2814_v0 }
  0xba   : > { %v1358_v62 = vpop.permute.xlu1 %1357  ;;  %6669 = vtanh.f32 %v1671_v49  ;;  %v6662_v1 = vpop.eup %6661  ;;  %v7576_v2 = vsub.f32 %v7365_v9, %v934_v53  ;;  %v939_v20 = vsel %vm925_vm0, %v937_v58, 0.0  ;;  %v7592_v9 = vadd.f32 %v7456_v48, %v4167_v37 }
  0xbb   : > { %10981 = vst [vmem:[#allocation37_spill] sm:$0xff] %v7588_v18  ;;  %v1321_v21 = vpop.permute.xlu0 %1320  ;;  %v1731_v22 = vadd.f32 1.0, %v6662_v1  ;;  %940 = vadd.xlane.f32.xlu1 %v939_v20  ;;  %v1448_v25 = vmul.f32 %v7447_v45, %v1358_v62  ;;  %v1578_v27 = vmul.f32 %v1546_v54, %v7547_v19  ;;  %v2815_v30 = vmul.f32 %v7461_v52, %v1358_v62 }
  0xbc   : > { %10979 = vst [vmem:[#allocation35_spill] sm:$0xff] %v7576_v2  ;;  %10982 = vst [vmem:[#allocation38_spill] sm:$0xff] %v7592_v9  ;;  %v1441_v60 = vmul.f32 %v7447_v45, %v1321_v21  ;;  %v4168_v31 = vmul.f32 %v7450_v46, %v1358_v62  ;;  %v938_v33 = vmul.f32 %v7576_v2, %v7576_v2  ;;  %v7607_v51 = vmul.f32 0.7978846, %v1641_v3 }
  0xbd   : > { %v1763_v40 = vmul.f32 %v1731_v22, %v7503_v24  ;;  %v2808_v0 = vmul.f32 %v7461_v52, %v1321_v21  ;;  %v4161_v49 = vmul.f32 %v7450_v46, %v1321_v21  ;;  %v7619_v21 = vmul.f32 %v1578_v27, %v7547_v19 }
  0xbe   : > { %v6664_v28 = vpop.eup %6663  ;;  %v1365_v43 = vpop.permute.xlu1 %1364  ;;  %v7603_v44 = vadd.f32 %v7453_v47, %v1441_v60  ;;  %v942_v37 = vsel %vm925_vm0, %v938_v33, 0.0  ;;  %v7622_v22 = vadd.f32 %v7453_v47, %v1448_v25  ;;  %v7625_v60 = vadd.f32 %v7481_v61, %v2815_v30 }
  0xbf   : > { %v7609_v53 = vpop.eup %6665  ;;  %v1336_v54 = vpop.permute.xlu0 %1335  ;;  %6418 = vmatprep.mubr.msk.f32.mxu1 %vm1789_vm1, %v1763_v40  ;;  %v1449_v58 = vmul.f32 %v7447_v45, %v1365_v43  ;;  %v2816_v24 = vmul.f32 %v7461_v52, %v1365_v43  ;;  %v1732_v62 = vadd.f32 1.0, %v6664_v28  ;;  %943 = vadd.xlane.f32.xlu0 %v942_v37  ;;  %v4169_v3 = vmul.f32 %v7450_v46, %v1365_v43 }
  0xc0   : > { %10983 = vst [vmem:[#allocation39_spill] sm:$0xff] %v7609_v53  ;;  %v1444_v1 = vmul.f32 %v7447_v45, %v1336_v54  ;;  %v2811_v20 = vmul.f32 %v7461_v52, %v1336_v54  ;;  %10984 = vst [vmem:[#allocation40_spill] sm:$0xff] %v7625_v60  ;;  %v7628_v33 = vadd.f32 %v7456_v48, %v4168_v31 }
  0xc1   : > { %v1764_v28 = vmul.f32 %v1732_v62, %v7512_v34  ;;  %v7632_v17 = vadd.f32 %v7481_v61, %v2808_v0  ;;  %v7635_v43 = vadd.f32 %v7456_v48, %v4161_v49  ;;  %v4164_v27 = vmul.f32 %v7450_v46, %v1336_v54 }
  0xc2   : > { %10985 = vst [vmem:[#allocation41_spill] sm:$0xff] %v7628_v33  ;;  %v1255_v40 = vpop.permute.xlu1 %1254  ;;  %v6668_v37 = vpop.eup %6667  ;;  %v7640_v30 = vadd.f32 %v7453_v47, %v1449_v58  ;;  %v7643_v31 = vadd.f32 %v7481_v61, %v2816_v24  ;;  %v1541_v0 = vmul.f32 0.044715, %v7603_v44  ;;  %v7649_v49 = vadd.f32 %v7453_v47, %v1444_v1 }
  0xc3   : > { %10986 = vst [vmem:[#allocation42_spill] sm:$0xff] %v7632_v17  ;;  %10987 = vst [vmem:[#allocation43_spill] sm:$0xff] %v7635_v43  ;;  %v1429_v25 = vmul.f32 %v7447_v45, %v1255_v40  ;;  %6419 = vmatmul.mubr.msk.f32.vlgmr.msra.gmra.mxu1 %vm1789_vm1, %v1764_v28  ;;  %v1369_v34 = vpop.permute.xlu0 %1368  ;;  %v2796_v62 = vmul.f32 %v7461_v52, %v1255_v40  ;;  %v7652_v54 = vadd.f32 %v7481_v61, %v2811_v20 }
  0xc4   : > { %10988 = vst [vmem:[#allocation44_spill] sm:$0xff] %v7643_v31  ;;  %v7655_v4 = vadd.f32 %v7456_v48, %v4169_v3  ;;  %v7658_v58 = vmul.f32 0.5, %v7603_v44  ;;  %v1450_v24 = vmul.f32 %v7447_v45, %v1369_v34  ;;  %v4149_v28 = vmul.f32 %v7450_v46, %v1255_v40 }
  0xc5   : > { %10989 = vst [vmem:[#allocation45_spill] sm:$0xff] %v7652_v54  ;;  %v1573_v23 = vmul.f32 %v1541_v0, %v7603_v44  ;;  %v1734_v29 = vadd.f32 1.0, %v6668_v37  ;;  %v7664_v1 = vadd.f32 %v7456_v48, %v4164_v27  ;;  %v2817_v20 = vmul.f32 %v7461_v52, %v1369_v34 }
  0xc6   : > { %10990 = vst [vmem:[#allocation46_spill] sm:$0xff] %v7655_v4  ;;  %v1376_v8 = vpop.permute.xlu1 %1375  ;;  %v4170_v3 = vmul.f32 %v7450_v46, %v1369_v34  ;;  %v7669_v11 = vadd.f32 %v7453_v47, %v1429_v25  ;;  %v7672_v31 = vadd.f32 %v7481_v61, %v2796_v62  ;;  %v7682_v6 = vadd.f32 %v7453_v47, %v1450_v24  ;;  %v1245_v24 = vld [vmem:[%s7409_s29 + $0x10] sm:$0xff] }
  0xc7   : > { %v6670_v13 = vpop.eup %6669  ;;  %10991 = vst [vmem:[#allocation47_spill] sm:$0xff] %v7664_v1  ;;  %v1259_v60 = vpop.permute.xlu0 %1258  ;;  %v1451_v40 = vmul.f32 %v7447_v45, %v1376_v8  ;;  %v2818_v37 = vmul.f32 %v7461_v52, %v1376_v8  ;;  %v1605_v0 = vmul.f32 %v1573_v23, %v7603_v44  ;;  %v4171_v25 = vmul.f32 %v7450_v46, %v1376_v8 }
  0xc8   : > { %v1430_v27 = vmul.f32 %v7447_v45, %v1259_v60  ;;  %v2797_v18 = vmul.f32 %v7461_v52, %v1259_v60  ;;  %v4150_v34 = vmul.f32 %v7450_v46, %v1259_v60  ;;  %v7685_v62 = vadd.f32 %v7456_v48, %v4149_v28  ;;  %6501 = vmatprep.subr.mxu1 %v1245_v24 }
  0xc9   : > { %v7688_v54 = vmul.f32 %v1734_v29, %v7526_v56  ;;  %v1735_v4 = vadd.f32 1.0, %v6670_v13  ;;  %v1637_v8 = vadd.f32 %v1605_v0, %v7603_v44  ;;  %v7702_v28 = vadd.f32 %v7481_v61, %v2817_v20  ;;  %6502 = vmatpush3.msra.mxu1 %v1245_v24 }
  0xca   : > { %v1266_v14 = vpop.permute.xlu1 %1265  ;;  %v7691_v23 = vadd.f32 %v7453_v47, %v1430_v27  ;;  %v7694_v33 = vadd.f32 %v7481_v61, %v2797_v18  ;;  %v7697_v60 = vadd.f32 %v7456_v48, %v4150_v34  ;;  %v7705_v59 = vadd.f32 %v7456_v48, %v4170_v3 }
  0xcb   : > { %10992 = vst [vmem:[#allocation48_spill] sm:$0xff] %v7702_v28  ;;  %v7708_v29 = vadd.f32 %v7453_v47, %v1451_v40  ;;  %v7711_v13 = vadd.f32 %v7481_v61, %v2818_v37  ;;  %v1380_v56 = vpop.permute.xlu0 %1379  ;;  %v7717_v20 = vadd.f32 %v7456_v48, %v4171_v25  ;;  %v1431_v3 = vmul.f32 %v7447_v45, %v1266_v14 }
  0xcc   : > { %10993 = vst [vmem:[#allocation49_spill] sm:$0xff] %v7705_v59  ;;  %v1530_v18 = vmul.f32 0.044715, %v7691_v23  ;;  %v2897_v27 = vmul.f32 0.044715, %v7694_v33  ;;  %v2798_v40 = vmul.f32 %v7461_v52, %v1266_v14  ;;  %v4151_v0 = vmul.f32 %v7450_v46, %v1266_v14  ;;  %1419 = vbcast.lane.b32.xlu1 %v7422_v36, 256 }
  0xcd   : > { %10994 = vst [vmem:[#allocation50_spill] sm:$0xff] %v7711_v13  ;;  %v4250_v44 = vmul.f32 0.044715, %v7697_v60  ;;  %10995 = vst [vmem:[#allocation51_spill] sm:$0xff] %v7717_v20  ;;  %v7724_v34 = vmul.f32 %v1735_v4, %v7541_v12  ;;  %v1669_v59 = vmul.f32 0.7978846, %v1637_v8  ;;  %v1452_v20 = vmul.f32 %v7447_v45, %v1380_v56 }
  0xce   : > { %v1387_v37 = vpop.permute.xlu1 %1386  ;;  %v2929_v13 = vmul.f32 %v2897_v27, %v7694_v33  ;;  %v7729_v25 = vmul.f32 0.5, %v7649_v49  ;;  %v1562_v24 = vmul.f32 %v1530_v18, %v7691_v23  ;;  %v2819_v14 = vmul.f32 %v7461_v52, %v1380_v56 }
  0xcf   : > { %v4282_v28 = vmul.f32 %v4250_v44, %v7697_v60  ;;  %v4172_v41 = vmul.f32 %v7450_v46, %v1380_v56  ;;  %v1270_v2 = vpop.permute.xlu0 %1269  ;;  %v1453_v8 = vmul.f32 %v7447_v45, %v1387_v37  ;;  %v7740_v44 = vadd.f32 %v7453_v47, %v1431_v3 }
  0xd0   : > { %v2961_v4 = vmul.f32 %v2929_v13, %v7694_v33  ;;  %v1432_v27 = vmul.f32 %v7447_v45, %v1270_v2  ;;  %v2799_v18 = vmul.f32 %v7461_v52, %v1270_v2  ;;  %v4152_v38 = vmul.f32 %v7450_v46, %v1270_v2 }
  0xd1   : > { %v4314_v12 = vmul.f32 %v4282_v28, %v7697_v60  ;;  %v2820_v9 = vmul.f32 %v7461_v52, %v1387_v37  ;;  %v7748_v5 = vadd.f32 %v7481_v61, %v2798_v40  ;;  %v4173_v57 = vmul.f32 %v7450_v46, %v1387_v37 }
  0xd2   : > { %v1277_v56 = vpop.permute.xlu1 %1276  ;;  %v2993_v13 = vadd.f32 %v2961_v4, %v7694_v33  ;;  %v7752_v3 = vadd.f32 %v7453_v47, %v1452_v20  ;;  %v7755_v2 = vadd.f32 %v7481_v61, %v2819_v14  ;;  %v7758_v17 = vadd.f32 %v7456_v48, %v4172_v41 }
  0xd3   : > { %v4346_v28 = vadd.f32 %v4314_v12, %v7697_v60  ;;  %v7761_v32 = vadd.f32 %v7456_v48, %v4151_v0  ;;  %v1391_v4 = vpop.permute.xlu0 %1390  ;;  %v7764_v12 = vmul.f32 %v1562_v24, %v7691_v23  ;;  %v7767_v37 = vadd.f32 %v7453_v47, %v1432_v27 }
  0xd4   : > { %10996 = vst [vmem:[#allocation52_spill] sm:$0xff] %v7755_v2  ;;  %10997 = vst [vmem:[#allocation53_spill] sm:$0xff] %v7758_v17  ;;  %v3025_v40 = vmul.f32 0.7978846, %v2993_v13  ;;  %v7770_v20 = vadd.f32 %v7453_v47, %v1453_v8  ;;  %v7780_v41 = vadd.f32 %v7481_v61, %v2799_v18  ;;  %v7783_v0 = vadd.f32 %v7456_v48, %v4152_v38  ;;  %v974_v8 = vld [vmem:[%s7777_s26 + $0x18] sm:$0xff]  ;;  %v973_v13 = vld [vmem:[%s7777_s26 + $0x10] sm:$0xff] }
  0xd5   : > { %v7786_v24 = vadd.f32 %v7481_v61, %v2820_v9  ;;  %v1433_v14 = vmul.f32 %v7447_v45, %v1277_v56  ;;  %v4378_v2 = vmul.f32 0.7978846, %v4346_v28  ;;  %v7796_v17 = vadd.f32 %v7456_v48, %v4173_v57  ;;  %1302 = vbcast.lane.b32.xlu0 %v7432_v42, 264  ;;  %6368 = vmatprep.subr.mxu0 %v974_v8  ;;  %v972_v42 = vld [vmem:[%s7777_s26 + $0x8] sm:$0xff]  ;;  %s8534_s26 = scalar_lea.vmem %s10771_s4, %s7340_s22 }
  0xd6   : > { %10998 = vst [vmem:[#allocation54_spill] sm:$0xff] %v7780_v41  ;;  %v1398_v27 = vpop.permute.xlu1 %1397  ;;  %v1454_v18 = vmul.f32 %v7447_v45, %v1391_v4  ;;  %v2821_v38 = vmul.f32 %v7461_v52, %v1391_v4  ;;  %v4174_v9 = vmul.f32 %v7450_v46, %v1391_v4  ;;  %v4153_v35 = vmul.f32 %v7450_v46, %v1277_v56 }
  0xd7   : > { %10999 = vst [vmem:[#allocation55_spill] sm:$0xff] %v7786_v24  ;;  %11000 = vst [vmem:[#allocation56_spill] sm:$0xff] %v7796_v17  ;;  %v2800_v24 = vmul.f32 %v7461_v52, %v1277_v56  ;;  %v1281_v1 = vpop.permute.xlu0 %1280  ;;  %v1455_v28 = vmul.f32 %v7447_v45, %v1398_v27  ;;  %6369 = vmatpush3.msra.mxu0 %v974_v8  ;;  %6671 = vtanh.f32 %v3025_v40  ;;  %v1552_v41 = vmul.f32 0.044715, %v7752_v3 }
  0xd8   : > { %v1434_v57 = vmul.f32 %v7447_v45, %v1281_v1  ;;  %v2801_v17 = vmul.f32 %v7461_v52, %v1281_v1  ;;  %v4154_v16 = vmul.f32 %v7450_v46, %v1281_v1  ;;  %6370 = vmatprep.subr.mxu0 %v973_v13  ;;  %v7810_v63 = vadd.f32 %v7453_v47, %v1433_v14 }
  0xd9   : > { %v2822_v4 = vmul.f32 %v7461_v52, %v1398_v27  ;;  %v4175_v56 = vmul.f32 %v7450_v46, %v1398_v27  ;;  %6673 = vtanh.f32 %v1669_v59  ;;  %6371 = vmatpush3.msra.mxu0 %v973_v13  ;;  %v7815_v40 = vadd.f32 %v7453_v47, %v1454_v18  ;;  %1423 = vbcast.lane.b32.xlu0 %v7422_v36, 264 }
  0xda   : > { %v1288_v10 = vpop.permute.xlu1 %1287  ;;  %6675 = vtanh.f32 %v4378_v2  ;;  %v7818_v8 = vadd.f32 %v7481_v61, %v2821_v38  ;;  %v7823_v14 = vadd.f32 %v7456_v48, %v4174_v9  ;;  %v7826_v50 = vadd.f32 %v7481_v61, %v2800_v24  ;;  %6372 = vmatprep.subr.mxu0 %v972_v42 }
  0xdb   : > { %v1435_v1 = vmul.f32 %v7447_v45, %v1288_v10  ;;  %v7829_v59 = vadd.f32 %v7456_v48, %v4153_v35  ;;  %v7832_v2 = vadd.f32 %v7453_v47, %v1455_v28  ;;  %v1402_v27 = vpop.permute.xlu0 %1401  ;;  %v7835_v13 = vadd.f32 %v7453_v47, %v1434_v57  ;;  %6373 = vmatpush3.msra.mxu0 %v972_v42 }
  0xdc   : > { %11001 = vst [vmem:[#allocation57_spill] sm:$0xff] %v7818_v8  ;;  %11002 = vst [vmem:[#allocation58_spill] sm:$0xff] %v7823_v14  ;;  %v7838_v18 = vadd.f32 %v7481_v61, %v2801_v17  ;;  %v7841_v36 = vadd.f32 %v7456_v48, %v4154_v16  ;;  %v2802_v24 = vmul.f32 %v7461_v52, %v1288_v10  ;;  %v1544_v28 = vmul.f32 0.044715, %v7649_v49 }
  0xdd   : > { %11003 = vst [vmem:[#allocation59_spill] sm:$0xff] %v7826_v50  ;;  %v7845_v35 = vadd.f32 %v7481_v61, %v2822_v4  ;;  %v7848_v38 = vadd.f32 %v7456_v48, %v4175_v56  ;;  %v4155_v9 = vmul.f32 %v7450_v46, %v1288_v10  ;;  %v1456_v17 = vmul.f32 %v7447_v45, %v1402_v27 }
  0xde   : > { %11004 = vst [vmem:[#allocation60_spill] sm:$0xff] %v7838_v18  ;;  %v1409_v57 = vpop.permute.xlu1 %1408  ;;  %v2823_v8 = vmul.f32 %v7461_v52, %v1402_v27  ;;  %v4176_v16 = vmul.f32 %v7450_v46, %v1402_v27  ;;  %v7856_v42 = vadd.f32 %v7453_v47, %v1435_v1  ;;  %v1576_v56 = vmul.f32 %v1544_v28, %v7649_v49 }
  0xdf   : > { %11005 = vst [vmem:[#allocation61_spill] sm:$0xff] %v7845_v35  ;;  %11006 = vst [vmem:[#allocation62_spill] sm:$0xff] %v7848_v38  ;;  %v1292_v4 = vpop.permute.xlu0 %1291  ;;  %v1457_v35 = vmul.f32 %v7447_v45, %v1409_v57  ;;  %v2824_v10 = vmul.f32 %v7461_v52, %v1409_v57  ;;  %v1642_v38 = vadd.f32 %v7619_v21, %v7547_v19  ;;  %6677 = vtanh.f32 %v7607_v51 }
  0xe0   : > { %v7864_v14 = vadd.f32 %v7481_v61, %v2802_v24  ;;  %v1436_v55 = vmul.f32 %v7447_v45, %v1292_v4  ;;  %v4177_v27 = vmul.f32 %v7450_v46, %v1409_v57  ;;  %v7870_v1 = vadd.f32 %v7456_v48, %v4155_v9  ;;  %6374 = vmatprep.subr.mxu0 %v971_v26 }
  0xe1   : > { %v2803_v28 = vmul.f32 %v7461_v52, %v1292_v4  ;;  %v1608_v43 = vmul.f32 %v1576_v56, %v7649_v49  ;;  %v1674_v18 = vmul.f32 0.7978846, %v1642_v38  ;;  %v7882_v19 = vadd.f32 %v7453_v47, %v1456_v17  ;;  %v1144_v38 = vld [vmem:[%s7879_s19 + $0x18] sm:$0xff]  ;;  %6375 = vmatpush3.msra.mxu0 %v971_v26 }
  0xe2   : > { %11007 = vst [vmem:[#allocation63_spill] sm:$0xff] %v7864_v14  ;;  %v7885_v51 = vadd.f32 %v7481_v61, %v2823_v8  ;;  %v7888_v21 = vadd.f32 %v7456_v48, %v4176_v16  ;;  %v4156_v24 = vmul.f32 %v7450_v46, %v1292_v4  ;;  %v7894_v57 = vadd.f32 %v7453_v47, %v1457_v35 }
  0xe3   : > { %v1640_v9 = vadd.f32 %v1608_v43, %v7649_v49  ;;  %v7897_v56 = vadd.f32 %v7481_v61, %v2824_v10  ;;  %v1547_v17 = vmul.f32 0.044715, %v7585_v15  ;;  %v7901_v8 = vadd.f32 %v7453_v47, %v1436_v55  ;;  %6390 = vmatprep.subr.mxu0 %v1144_v38  ;;  %v1413_v10 = vpop.permute.xlu0 %1412 }
  0xe4   : > { %11008 = vst [vmem:[#allocation64_spill] sm:$0xff] %v7885_v51  ;;  %11009 = vst [vmem:[#allocation65_spill] sm:$0xff] %v7888_v21  ;;  %v7904_v16 = vadd.f32 %v7456_v48, %v4177_v27  ;;  %6679 = vtanh.f32 %v1674_v18  ;;  %v1548_v4 = vmul.f32 0.044715, %v7622_v22  ;;  %v7907_v43 = vpop.eup %6671  ;;  %v7910_v49 = vadd.f32 %v7481_v61, %v2803_v28 }
  0xe5   : > { %11010 = vst [vmem:[#allocation66_spill] sm:$0xff] %v7897_v56  ;;  %v1672_v35 = vmul.f32 0.7978846, %v1640_v9  ;;  %v1579_v56 = vmul.f32 %v1547_v17, %v7585_v15  ;;  %v1549_v26 = vmul.f32 0.044715, %v7640_v30  ;;  %v7915_v51 = vadd.f32 %v7456_v48, %v4156_v24 }
  0xe6   : > { %11011 = vst [vmem:[#allocation67_spill] sm:$0xff] %v7904_v16  ;;  %11012 = vst [vmem:[#allocation68_spill] sm:$0xff] %v7910_v49  ;;  %v6674_v55 = vpop.eup %6673  ;;  %v7918_v18 = vmul.f32 0.5, %v7585_v15  ;;  %v7921_v27 = vmul.f32 0.5, %v7622_v22  ;;  %v1580_v38 = vmul.f32 %v1548_v4, %v7622_v22  ;;  %v1458_v21 = vmul.f32 %v7447_v45, %v1413_v10 }
  0xe7   : > { %11013 = vst [vmem:[#allocation69_spill] sm:$0xff] %v7915_v51  ;;  %v7924_v28 = vpop.eup %6675  ;;  %v1733_v9 = vadd.f32 1.0, %v6674_v55  ;;  %6681 = vtanh.f32 %v1672_v35  ;;  %v1611_v17 = vmul.f32 %v1579_v56, %v7585_v15  ;;  %v1581_v16 = vmul.f32 %v1549_v26, %v7640_v30 }
  0xe8   : > { %v2825_v24 = vmul.f32 %v7461_v52, %v1413_v10  ;;  %v1612_v49 = vmul.f32 %v1580_v38, %v7622_v22  ;;  %v1550_v14 = vmul.f32 0.044715, %v7682_v6  ;;  %v1551_v35 = vmul.f32 0.044715, %v7708_v29 }
  0xe9   : > { %v1765_v53 = vmul.f32 %v1733_v9, %v7658_v58  ;;  %v1643_v4 = vadd.f32 %v1611_v17, %v7585_v15  ;;  %v1613_v50 = vmul.f32 %v1581_v16, %v7640_v30  ;;  %v4178_v56 = vmul.f32 %v7450_v46, %v1413_v10 }
  0xea   : > { %v1644_v26 = vadd.f32 %v1612_v49, %v7622_v22  ;;  %v1582_v55 = vmul.f32 %v1550_v14, %v7682_v6  ;;  %v7942_v51 = vmul.f32 0.5, %v7640_v30  ;;  %v1583_v58 = vmul.f32 %v1551_v35, %v7708_v29 }
  0xeb   : > { %6421 = vmatprep.mubr.msk.f32.mxu1 %vm1789_vm1, %v1765_v53  ;;  %v1675_v38 = vmul.f32 0.7978846, %v1643_v4  ;;  %v1645_v15 = vadd.f32 %v1613_v50, %v7640_v30  ;;  %v7949_v16 = vadd.f32 %v7453_v47, %v1458_v21  ;;  %v1584_v49 = vmul.f32 %v1552_v41, %v7752_v3 }
  0xec   : > { %6422 = vmatmul.mubr.msk.f32.gmra.mxu1 %vm1789_vm1, %v7688_v54  ;;  %v1676_v22 = vmul.f32 0.7978846, %v1644_v26  ;;  %v1614_v14 = vmul.f32 %v1582_v55, %v7682_v6  ;;  %v6678_v53 = vpop.eup %6677  ;;  %v7956_v10 = vadd.f32 %v7481_v61, %v2825_v24  ;;  %v1615_v30 = vmul.f32 %v1583_v58, %v7708_v29  ;;  %v1299_v24 = vpop.permute.xlu1 %1298 }
  0xed   : > { %6424 = vmatprep.mubr.msk.f32.mxu1 %vm1789_vm1, %v7724_v34  ;;  %6683 = vtanh.f32 %v1675_v38  ;;  %v1677_v50 = vmul.f32 0.7978846, %v1645_v15  ;;  %v1616_v21 = vmul.f32 %v1584_v49, %v7752_v3  ;;  %v1553_v9 = vmul.f32 0.044715, %v7770_v20 }
  0xee   : > { %11014 = vst [vmem:[#allocation70_spill] sm:$0xff] %v7956_v10  ;;  %6685 = vtanh.f32 %v1676_v22  ;;  %v1646_v54 = vadd.f32 %v1614_v14, %v7682_v6  ;;  %v7963_v41 = vadd.f32 %v7456_v48, %v4178_v56  ;;  %v1647_v34 = vadd.f32 %v1615_v30, %v7708_v29  ;;  %v11046_v10 = vld [vmem:[#allocation28_spill] sm:$0xff] }
  0xef   : > { %6687 = vtanh.f32 %v1677_v50  ;;  %v1554_v17 = vmul.f32 0.044715, %v7815_v40  ;;  %v1737_v4 = vadd.f32 1.0, %v6678_v53  ;;  %v1648_v26 = vadd.f32 %v1616_v21, %v7752_v3 }
  0xf0   : > { %11015 = vst [vmem:[#allocation71_spill] sm:$0xff] %v7963_v41  ;;  %v1678_v35 = vmul.f32 0.7978846, %v1646_v54  ;;  %v1585_v55 = vmul.f32 %v1553_v9, %v7770_v20  ;;  %v7970_v15 = vmul.f32 0.5, %v7682_v6  ;;  %v7973_v58 = vmul.f32 0.5, %v7708_v29 }
  0xf1   : > { %v6680_v38 = vpop.eup %6679  ;;  %v1679_v56 = vmul.f32 0.7978846, %v1647_v34  ;;  %v1586_v22 = vmul.f32 %v1554_v17, %v7815_v40  ;;  %v1680_v14 = vmul.f32 0.7978846, %v1648_v26  ;;  %v1437_v53 = vmul.f32 %v7447_v45, %v1299_v24 }
  0xf2   : > { %6689 = vtanh.f32 %v1678_v35  ;;  %v1617_v49 = vmul.f32 %v1585_v55, %v7770_v20  ;;  %v7979_v50 = vmul.f32 0.5, %v7752_v3  ;;  %v7982_v30 = vmul.f32 0.5, %v7770_v20 }
  0xf3   : > { %6691 = vtanh.f32 %v1679_v56  ;;  %v1618_v6 = vmul.f32 %v1586_v22, %v7815_v40  ;;  %v1769_v54 = vmul.f32 %v1737_v4, %v7558_v39  ;;  %v1738_v21 = vadd.f32 1.0, %v6680_v38 }
  0xf4   : > { %v6682_v29 = vpop.eup %6681  ;;  %6693 = vtanh.f32 %v1680_v14  ;;  %v1649_v9 = vadd.f32 %v1617_v49, %v7770_v20  ;;  %v2804_v35 = vmul.f32 %v7461_v52, %v1299_v24  ;;  %v1555_v3 = vmul.f32 0.044715, %v7832_v2 }
  0xf5   : > { %v1736_v34 = vadd.f32 1.0, %v6682_v29  ;;  %v1650_v17 = vadd.f32 %v1618_v6, %v7815_v40  ;;  %v7991_v55 = vmul.f32 0.5, %v7815_v40  ;;  %v7994_v56 = vadd.f32 %v7453_v47, %v1437_v53 }
  0xf6   : > { %v1681_v26 = vmul.f32 0.7978846, %v1649_v9  ;;  %v1556_v39 = vmul.f32 0.044715, %v7882_v19  ;;  %v1587_v20 = vmul.f32 %v1555_v3, %v7832_v2  ;;  %v1557_v22 = vmul.f32 0.044715, %v7894_v57 }
  0xf7   : > { %v1768_v4 = vmul.f32 %v1736_v34, %v7729_v25  ;;  %v1682_v38 = vmul.f32 0.7978846, %v1650_v17  ;;  %v1770_v14 = vmul.f32 %v1738_v21, %v7579_v7  ;;  %v1558_v40 = vmul.f32 0.044715, %v7949_v16 }
  0xf8   : > { %6695 = vtanh.f32 %v1681_v26  ;;  %v1588_v49 = vmul.f32 %v1556_v39, %v7882_v19  ;;  %v8005_v53 = vadd.f32 %v7481_v61, %v2804_v35  ;;  %v1619_v25 = vmul.f32 %v1587_v20, %v7832_v2 }
  0xf9   : > { %6425 = vmatmul.mubr.msk.f32.gmra.mxu1 %vm1789_vm1, %v1768_v4  ;;  %6697 = vtanh.f32 %v1682_v38  ;;  %v1589_v6 = vmul.f32 %v1557_v22, %v7894_v57  ;;  %v4157_v7 = vmul.f32 %v7450_v46, %v1299_v24  ;;  %v1590_v9 = vmul.f32 %v1558_v40, %v7949_v16 }
  0xfa   : > { %v6684_v29 = vpop.eup %6683  ;;  %6427 = vmatprep.mubr.msk.f32.mxu1 %vm1789_vm1, %v1769_v54  ;;  %v1620_v21 = vmul.f32 %v1588_v49, %v7882_v19  ;;  %v1529_v34 = vmul.f32 0.044715, %v7669_v11  ;;  %v1651_v35 = vadd.f32 %v1619_v25, %v7832_v2  ;;  %v1626_v39 = vadd.f32 %v7764_v12, %v7691_v23 }
  0xfb   : > { %v6686_v17 = vpop.eup %6685  ;;  %v1739_v3 = vadd.f32 1.0, %v6684_v29  ;;  %v1621_v26 = vmul.f32 %v1589_v6, %v7894_v57  ;;  %v1622_v24 = vmul.f32 %v1590_v9, %v7949_v16 }
  0xfc   : > { %v6688_v4 = vpop.eup %6687  ;;  %v1740_v38 = vadd.f32 1.0, %v6686_v17  ;;  %v1652_v54 = vadd.f32 %v1620_v21, %v7882_v19  ;;  %v1561_v20 = vmul.f32 %v1529_v34, %v7669_v11  ;;  %v1683_v40 = vmul.f32 0.7978846, %v1651_v35 }
  0xfd   : > { %6428 = vmatmul.mubr.msk.f32.gmra.mxu1 %vm1789_vm1, %v1770_v14  ;;  %v1771_v22 = vmul.f32 %v1739_v3, %v7918_v18  ;;  %v1741_v49 = vadd.f32 1.0, %v6688_v4  ;;  %v1653_v25 = vadd.f32 %v1621_v26, %v7894_v57  ;;  %v1654_v12 = vadd.f32 %v1622_v24, %v7949_v16 }
  0xfe   : > { %v1772_v6 = vmul.f32 %v1740_v38, %v7921_v27  ;;  %v1684_v29 = vmul.f32 0.7978846, %v1652_v54  ;;  %v1593_v17 = vmul.f32 %v1561_v20, %v7669_v11  ;;  %6699 = vtanh.f32 %v1683_v40 }
  0xff   : > { %v6690_v21 = vpop.eup %6689  ;;  %6430 = vmatprep.mubr.msk.f32.mxu1 %vm1789_vm1, %v1771_v22  ;;  %v1773_v9 = vmul.f32 %v1741_v49, %v7942_v51  ;;  %v1685_v14 = vmul.f32 0.7978846, %v1653_v25  ;;  %v1658_v34 = vmul.f32 0.7978846, %v1626_v39  ;;  %v1686_v35 = vmul.f32 0.7978846, %v1654_v12 }
 0x100   : > { %v6692_v18 = vpop.eup %6691  ;;  %v1742_v3 = vadd.f32 1.0, %v6690_v21  ;;  %6701 = vtanh.f32 %v1684_v29  ;;  %v1625_v26 = vadd.f32 %v1593_v17, %v7669_v11  ;;  %v8032_v38 = vmul.f32 0.5, %v7832_v2 }
 0x101   : > { %v6694_v27 = vpop.eup %6693  ;;  %6431 = vmatmul.mubr.msk.f32.gmra.mxu1 %vm1789_vm1, %v1772_v6  ;;  %v1743_v4 = vadd.f32 1.0, %v6692_v18  ;;  %6703 = vtanh.f32 %v1685_v14  ;;  %v1531_v54 = vmul.f32 0.044715, %v7740_v44  ;;  %v8039_v22 = vadd.f32 %v7456_v48, %v4157_v7 }
 0x102   : > { %6433 = vmatprep.mubr.msk.f32.mxu1 %vm1789_vm1, %v1773_v9  ;;  %v1774_v51 = vmul.f32 %v1742_v3, %v7970_v15  ;;  %v1744_v39 = vadd.f32 1.0, %v6694_v27  ;;  %6705 = vtanh.f32 %v1686_v35  ;;  %v1657_v24 = vmul.f32 0.7978846, %v1625_v26 }
 0x103   : > { %v1775_v20 = vmul.f32 %v1743_v4, %v7973_v58  ;;  %v1524_v49 = vmul.f32 0.5, %v7882_v19  ;;  %v1563_v2 = vmul.f32 %v1531_v54, %v7740_v44  ;;  %v8044_v40 = vmul.f32 0.5, %v7894_v57 }
 0x104   : > { %v8047_v25 = vmul.f32 0.5, %v7949_v16  ;;  %6707 = vtanh.f32 %v1658_v34  ;;  %v1532_v15 = vmul.f32 0.044715, %v7767_v37  ;;  %v1776_v58 = vmul.f32 %v1744_v39, %v7979_v50 }
 0x105   : > { %v6696_v6 = vpop.eup %6695  ;;  %6434 = vmatmul.mubr.msk.f32.gmra.mxu1 %vm1789_vm1, %v1774_v51  ;;  %v1595_v7 = vmul.f32 %v1563_v2, %v7740_v44  ;;  %v1533_v19 = vmul.f32 0.044715, %v7810_v63  ;;  %v4249_v29 = vmul.f32 0.044715, %v7685_v62  ;;  %6709 = vtanh.f32 %v1657_v24 }
 0x106   : > { %v6698_v12 = vpop.eup %6697  ;;  %6436 = vmatprep.mubr.msk.f32.mxu1 %vm1789_vm1, %v1775_v20  ;;  %v1745_v57 = vadd.f32 1.0, %v6696_v6  ;;  %v1564_v16 = vmul.f32 %v1532_v15, %v7767_v37  ;;  %v1534_v17 = vmul.f32 0.044715, %v7835_v13  ;;  %v8063_v18 = vmul.f32 0.5, %v7669_v11 }
 0x107   : > { %v1746_v21 = vadd.f32 1.0, %v6698_v12  ;;  %v1627_v9 = vadd.f32 %v1595_v7, %v7740_v44  ;;  %v1565_v50 = vmul.f32 %v1533_v19, %v7810_v63  ;;  %v4281_v14 = vmul.f32 %v4249_v29, %v7685_v62 }
 0x108   : > { %v1777_v34 = vmul.f32 %v1745_v57, %v7982_v30  ;;  %v1596_v3 = vmul.f32 %v1564_v16, %v7767_v37  ;;  %v1566_v35 = vmul.f32 %v1534_v17, %v7835_v13  ;;  %v8073_v30 = vmul.f32 0.5, %v7691_v23 }
 0x109   : > { %6437 = vmatmul.mubr.msk.f32.gmra.mxu1 %vm1789_vm1, %v1776_v58  ;;  %v1778_v26 = vmul.f32 %v1746_v21, %v7991_v55  ;;  %v1659_v27 = vmul.f32 0.7978846, %v1627_v9  ;;  %v1597_v4 = vmul.f32 %v1565_v50, %v7810_v63  ;;  %v4313_v54 = vmul.f32 %v4281_v14, %v7685_v62 }
 0x10a   : > { %6439 = vmatprep.mubr.msk.f32.mxu1 %vm1789_vm1, %v1777_v34  ;;  %v1628_v11 = vadd.f32 %v1596_v3, %v7767_v37  ;;  %v1598_v51 = vmul.f32 %v1566_v35, %v7835_v13  ;;  %v1535_v39 = vmul.f32 0.044715, %v7856_v42  ;;  %v8079_v24 = vmul.f32 0.5, %v7740_v44 }
 0x10b   : > { %v1629_v55 = vadd.f32 %v1597_v4, %v7810_v63  ;;  %v4345_v20 = vadd.f32 %v4313_v54, %v7685_v62  ;;  %v4218_v2 = vmul.f32 0.5, %v7697_v60  ;;  %v6700_v15 = vpop.eup %6699  ;;  %6711 = vtanh.f32 %v1659_v27 }
 0x10c   : > { %v1660_v6 = vmul.f32 0.7978846, %v1628_v11  ;;  %v1630_v23 = vadd.f32 %v1598_v51, %v7835_v13  ;;  %v1567_v58 = vmul.f32 %v1535_v39, %v7856_v42  ;;  %v1747_v19 = vadd.f32 1.0, %v6700_v15 }
 0x10d   : > { %v6702_v7 = vpop.eup %6701  ;;  %6440 = vmatmul.mubr.msk.f32.gmra.mxu1 %vm1789_vm1, %v1778_v26  ;;  %v1661_v29 = vmul.f32 0.7978846, %v1629_v55  ;;  %v4377_v44 = vmul.f32 0.7978846, %v4345_v20  ;;  %v4442_v12 = vadd.f32 1.0, %v7924_v28  ;;  %v8095_v27 = vmul.f32 0.5, %v7767_v37 }
 0x10e   : > { %v6704_v57 = vpop.eup %6703  ;;  %v1748_v16 = vadd.f32 1.0, %v6702_v7  ;;  %6713 = vtanh.f32 %v1660_v6  ;;  %v1662_v17 = vmul.f32 0.7978846, %v1630_v23  ;;  %v1599_v60 = vmul.f32 %v1567_v58, %v7856_v42 }
 0x10f   : > { %v6706_v21 = vpop.eup %6705  ;;  %v1779_v9 = vmul.f32 %v1747_v19, %v8032_v38  ;;  %v1749_v50 = vadd.f32 1.0, %v6704_v57  ;;  %6715 = vtanh.f32 %v1661_v29  ;;  %v4251_v14 = vmul.f32 0.044715, %v7761_v32 }
 0x110   : > { %v1780_v34 = vmul.f32 %v1748_v16, %v1524_v49  ;;  %v1750_v3 = vadd.f32 1.0, %v6706_v21  ;;  %6717 = vtanh.f32 %v4377_v44  ;;  %v1631_v35 = vadd.f32 %v1599_v60, %v7856_v42 }
 0x111   : > { %v6708_v26 = vpop.eup %6707  ;;  %6442 = vmatprep.mubr.msk.f32.mxu1 %vm1789_vm1, %v1779_v9  ;;  %v1781_v28 = vmul.f32 %v1749_v50, %v8044_v40  ;;  %6719 = vtanh.f32 %v1662_v17  ;;  %v4283_v38 = vmul.f32 %v4251_v14, %v7761_v32  ;;  %v8101_v49 = vmul.f32 0.5, %v7810_v63 }
 0x112   : > { %6443 = vmatmul.mubr.msk.f32.gmra.mxu1 %vm1789_vm1, %v1780_v34  ;;  %v1782_v4 = vmul.f32 %v1750_v3, %v8047_v25  ;;  %v8104_v54 = vmul.f32 0.5, %v7685_v62  ;;  %v1663_v11 = vmul.f32 0.7978846, %v1631_v35  ;;  %v6710_v51 = vpop.eup %6709  ;;  %v8108_v37 = vmul.f32 0.5, %v7835_v13 }
 0x113   : > { %6445 = vmatprep.mubr.msk.f32.mxu1 %vm1789_vm1, %v1781_v28  ;;  %v8111_v40 = vmul.f32 0.5, %v7856_v42  ;;  %v4315_v39 = vmul.f32 %v4283_v38, %v7761_v32  ;;  %v1536_v25 = vmul.f32 0.044715, %v7901_v8  ;;  %v8115_v63 = vmul.f32 %v4442_v12, %v4218_v2 }
 0x114   : > { %6721 = vtanh.f32 %v1663_v11  ;;  %v8118_v62 = vmul.f32 0.5, %v7761_v32  ;;  %v1537_v55 = vmul.f32 0.044715, %v7994_v56  ;;  %v1722_v20 = vadd.f32 1.0, %v6708_v26 }
 0x115   : > { %v4347_v15 = vadd.f32 %v4315_v39, %v7761_v32  ;;  %v1568_v13 = vmul.f32 %v1536_v25, %v7901_v8  ;;  %v4252_v42 = vmul.f32 0.044715, %v7783_v0  ;;  %v1721_v6 = vadd.f32 1.0, %v6710_v51 }
 0x116   : > { %6446 = vmatmul.mubr.msk.f32.gmra.mxu1 %vm1789_vm1, %v1782_v4  ;;  %v1569_v23 = vmul.f32 %v1537_v55, %v7994_v56  ;;  %v4253_v2 = vmul.f32 0.044715, %v7829_v59  ;;  %v2896_v58 = vmul.f32 0.044715, %v7672_v31  ;;  %v8129_v19 = vmul.f32 0.5, %v7901_v8 }
 0x117   : > { %v4379_v7 = vmul.f32 0.7978846, %v4347_v15  ;;  %v1600_v29 = vmul.f32 %v1568_v13, %v7901_v8  ;;  %v4284_v32 = vmul.f32 %v4252_v42, %v7783_v0  ;;  %v4254_v16 = vmul.f32 0.044715, %v7841_v36 }
 0x118   : > { %v1601_v44 = vmul.f32 %v1569_v23, %v7994_v56  ;;  %v4285_v12 = vmul.f32 %v4253_v2, %v7829_v59  ;;  %v2928_v57 = vmul.f32 %v2896_v58, %v7672_v31  ;;  %v6712_v17 = vpop.eup %6711  ;;  %v8138_v60 = vmul.f32 %v1722_v20, %v8073_v30 }
 0x119   : > { %v1632_v21 = vadd.f32 %v1600_v29, %v7901_v8  ;;  %v8142_v9 = vmul.f32 0.5, %v7994_v56  ;;  %v4316_v50 = vmul.f32 %v4284_v32, %v7783_v0  ;;  %v4286_v35 = vmul.f32 %v4254_v16, %v7841_v36 }
 0x11a   : > { %v1633_v14 = vadd.f32 %v1601_v44, %v7994_v56  ;;  %v4317_v34 = vmul.f32 %v4285_v12, %v7829_v59  ;;  %v2960_v3 = vmul.f32 %v2928_v57, %v7672_v31  ;;  %v8150_v28 = vmul.f32 %v1721_v6, %v8063_v18 }
 0x11b   : > { %v6714_v26 = vpop.eup %6713  ;;  %6723 = vtanh.f32 %v4379_v7  ;;  %v1664_v30 = vmul.f32 0.7978846, %v1632_v21  ;;  %v4348_v8 = vadd.f32 %v4316_v50, %v7783_v0  ;;  %v8154_v11 = vmul.f32 0.5, %v7783_v0  ;;  %v11016_v50 = vld [vmem:[#allocation69_spill] sm:$0xff] }
 0x11c   : > { %v6716_v38 = vpop.eup %6715  ;;  %v1665_v4 = vmul.f32 0.7978846, %v1633_v14  ;;  %v4349_v56 = vadd.f32 %v4317_v34, %v7829_v59  ;;  %v2992_v51 = vadd.f32 %v2960_v3, %v7672_v31  ;;  %v1723_v25 = vadd.f32 1.0, %v6712_v17 }
 0x11d   : > { %v6718_v39 = vpop.eup %6717  ;;  %6725 = vtanh.f32 %v1664_v30  ;;  %v4380_v55 = vmul.f32 0.7978846, %v4348_v8  ;;  %v4318_v18 = vmul.f32 %v4286_v35, %v7841_v36  ;;  %v1724_v15 = vadd.f32 1.0, %v6714_v26 }
 0x11e   : > { %v6720_v20 = vpop.eup %6719  ;;  %v1725_v13 = vadd.f32 1.0, %v6716_v38  ;;  %6727 = vtanh.f32 %v1665_v4  ;;  %v4381_v42 = vmul.f32 0.7978846, %v4349_v56  ;;  %v8160_v6 = vmul.f32 0.5, %v7829_v59  ;;  %v11018_v38 = vld [vmem:[#allocation59_spill] sm:$0xff] }
 0x11f   : > { %6729 = vtanh.f32 %v4380_v55  ;;  %v8163_v0 = vmul.f32 0.5, %v7672_v31  ;;  %v3024_v23 = vmul.f32 0.7978846, %v2992_v51  ;;  %v4441_v2 = vadd.f32 1.0, %v6718_v39 }
 0x120   : > { %v1726_v58 = vadd.f32 1.0, %v6720_v20  ;;  %6731 = vtanh.f32 %v4381_v42  ;;  %v4255_v7 = vmul.f32 0.044715, %v7870_v1  ;;  %v8167_v32 = vmul.f32 %v1723_v25, %v8079_v24 }
 0x121   : > { %v6722_v29 = vpop.eup %6721  ;;  %v8170_v44 = vmul.f32 0.5, %v7841_v36  ;;  %v4350_v12 = vadd.f32 %v4318_v18, %v7841_v36  ;;  %v8174_v59 = vmul.f32 0.5, %v7870_v1  ;;  %v8177_v31 = vmul.f32 %v1724_v15, %v8095_v27 }
 0x122   : > { %v8180_v57 = vmul.f32 %v1725_v13, %v8101_v49  ;;  %6733 = vtanh.f32 %v3024_v23  ;;  %v4287_v16 = vmul.f32 %v4255_v7, %v7870_v1  ;;  %v2865_v24 = vmul.f32 0.5, %v7694_v33 }
 0x123   : > { %v3089_v17 = vadd.f32 1.0, %v7907_v43  ;;  %v2898_v21 = vmul.f32 0.044715, %v7748_v5  ;;  %v4256_v36 = vmul.f32 0.044715, %v11016_v50  ;;  %v8188_v14 = vmul.f32 %v4441_v2, %v8104_v54  ;;  %v11017_v54 = vld [vmem:[#allocation54_spill] sm:$0xff] }
 0x124   : > { %v8191_v27 = vmul.f32 %v1726_v58, %v8108_v37  ;;  %v1727_v34 = vadd.f32 1.0, %v6722_v29  ;;  %v4319_v49 = vmul.f32 %v4287_v16, %v7870_v1  ;;  %v4382_v3 = vmul.f32 0.7978846, %v4350_v12 }
 0x125   : > { %v2930_v35 = vmul.f32 %v2898_v21, %v7748_v5  ;;  %v4288_v33 = vmul.f32 %v4256_v36, %v11016_v50  ;;  %v4257_v43 = vmul.f32 0.044715, %v8039_v22  ;;  %v8199_v30 = vmul.f32 0.5, %v7748_v5  ;;  %v11020_v36 = vld [vmem:[#allocation39_spill] sm:$0xff] }
 0x126   : > { %v4351_v26 = vadd.f32 %v4319_v49, %v7870_v1  ;;  %v2899_v8 = vmul.f32 0.044715, %v11017_v54  ;;  %v2900_v37 = vmul.f32 0.044715, %v11018_v38  ;;  %v8203_v4 = vmul.f32 %v3089_v17, %v2865_v24 }
 0x127   : > { %v2962_v56 = vmul.f32 %v2930_v35, %v7748_v5  ;;  %v4320_v51 = vmul.f32 %v4288_v33, %v11016_v50  ;;  %v4289_v39 = vmul.f32 %v4257_v43, %v8039_v22  ;;  %v8209_v18 = vmul.f32 0.5, %v11016_v50 }
 0x128   : > { %11019 = vst [vmem:[#allocation69_spill] sm:$0xff] %v8203_v4  ;;  %v6724_v25 = vpop.eup %6723  ;;  %v4383_v55 = vmul.f32 0.7978846, %v4351_v26  ;;  %v2931_v1 = vmul.f32 %v2899_v8, %v11017_v54  ;;  %v2932_v20 = vmul.f32 %v2900_v37, %v11018_v38  ;;  %6735 = vtanh.f32 %v4382_v3 }
 0x129   : > { %v2994_v15 = vadd.f32 %v2962_v56, %v7748_v5  ;;  %v4352_v13 = vadd.f32 %v4320_v51, %v11016_v50  ;;  %v4321_v42 = vmul.f32 %v4289_v39, %v8039_v22  ;;  %v8217_v2 = vmul.f32 %v1727_v34, %v8111_v40 }
 0x12a   : > { %v6726_v23 = vpop.eup %6725  ;;  %v8220_v58 = vmul.f32 0.5, %v8039_v22  ;;  %v2963_v7 = vmul.f32 %v2931_v1, %v11017_v54  ;;  %v2964_v29 = vmul.f32 %v2932_v20, %v11018_v38  ;;  %v4443_v16 = vadd.f32 1.0, %v6724_v25  ;;  %v11021_v25 = vld [vmem:[#allocation22_spill] sm:$0xff]  ;;  %v11023_v1 = vld [vmem:[#allocation60_spill] sm:$0xff] }
 0x12b   : > { %v6728_v12 = vpop.eup %6727  ;;  %v3026_v24 = vmul.f32 0.7978846, %v2994_v15  ;;  %v4384_v17 = vmul.f32 0.7978846, %v4352_v13  ;;  %v4353_v5 = vadd.f32 %v4321_v42, %v8039_v22  ;;  %6737 = vtanh.f32 %v4383_v55 }
 0x12c   : > { %v6730_v21 = vpop.eup %6729  ;;  %v2995_v50 = vadd.f32 %v2963_v7, %v11017_v54  ;;  %v2996_v40 = vadd.f32 %v2964_v29, %v11018_v38  ;;  %v4451_v34 = vadd.f32 1.0, %v11020_v36  ;;  %v1728_v3 = vadd.f32 1.0, %v6726_v23  ;;  %v11026_v7 = vld [vmem:[#allocation43_spill] sm:$0xff] }
 0x12d   : > { %v6732_v49 = vpop.eup %6731  ;;  %v1729_v35 = vadd.f32 1.0, %v6728_v12  ;;  %6739 = vtanh.f32 %v3026_v24  ;;  %v4385_v33 = vmul.f32 0.7978846, %v4353_v5  ;;  %v8229_v43 = vmul.f32 0.5, %v11017_v54 }
 0x12e   : > { %6741 = vtanh.f32 %v4384_v17  ;;  %v3027_v26 = vmul.f32 0.7978846, %v2995_v50  ;;  %v8232_v22 = vmul.f32 0.5, %v11018_v38  ;;  %v8235_v37 = vmul.f32 %v4443_v16, %v8118_v62  ;;  %v11025_v62 = vld [vmem:[#allocation63_spill] sm:$0xff]  ;;  %v11027_v16 = vld [vmem:[#allocation32_spill] sm:$0xff] }
 0x12f   : > { %v6734_v8 = vpop.eup %6733  ;;  %v4444_v56 = vadd.f32 1.0, %v6730_v21  ;;  %6743 = vtanh.f32 %v4385_v33  ;;  %v3028_v51 = vmul.f32 0.7978846, %v2996_v40  ;;  %v4445_v39 = vadd.f32 1.0, %v6732_v49  ;;  %v11030_v49 = vld [vmem:[#allocation36_spill] sm:$0xff] }
 0x130   : > { %6745 = vtanh.f32 %v3027_v26  ;;  %v8238_v55 = vmul.f32 %v4451_v34, %v11021_v25  ;;  %v2901_v20 = vmul.f32 0.044715, %v11023_v1  ;;  %v8242_v54 = vmul.f32 %v1728_v3, %v8129_v19  ;;  %v11029_v34 = vld [vmem:[#allocation25_spill] sm:$0xff]  ;;  %v11032_v25 = vld [vmem:[#allocation27_spill] sm:$0xff] }
 0x131   : > { %v8245_v38 = vmul.f32 %v1729_v35, %v8142_v9  ;;  %v8248_v15 = vmul.f32 0.5, %v11023_v1  ;;  %v2902_v13 = vmul.f32 0.044715, %v11025_v62  ;;  %v3088_v42 = vadd.f32 1.0, %v6734_v8  ;;  %v11028_v9 = vld [vmem:[#allocation68_spill] sm:$0xff] }
 0x132   : > { %11022 = vst [vmem:[#allocation54_spill] sm:$0xff] %v8238_v55  ;;  %6747 = vtanh.f32 %v3028_v51  ;;  %v2933_v23 = vmul.f32 %v2901_v20, %v11023_v1  ;;  %v4261_v29 = vmul.f32 0.044715, %v11026_v7  ;;  %v8254_v12 = vmul.f32 %v4444_v56, %v8154_v11 }
 0x133   : > { %11024 = vst [vmem:[#allocation59_spill] sm:$0xff] %v8245_v38  ;;  %v2934_v19 = vmul.f32 %v2902_v13, %v11025_v62  ;;  %6749 = vtanh.f32 %v11027_v16  ;;  %v2903_v24 = vmul.f32 0.044715, %v11028_v9  ;;  %v8260_v17 = vmul.f32 %v4445_v39, %v8160_v6 }
 0x134   : > { %v2965_v5 = vmul.f32 %v2933_v23, %v11023_v1  ;;  %v4293_v21 = vmul.f32 %v4261_v29, %v11026_v7  ;;  %v2904_v50 = vmul.f32 0.044715, %v8005_v53  ;;  %v8266_v40 = vmul.f32 0.5, %v11025_v62 }
 0x135   : > { %v2966_v11 = vmul.f32 %v2934_v19, %v11025_v62  ;;  %v2935_v36 = vmul.f32 %v2903_v24, %v11028_v9  ;;  %v4326_v3 = vmul.f32 %v11030_v49, %v11029_v34  ;;  %v6736_v35 = vpop.eup %6735  ;;  %v8273_v6 = vmul.f32 %v3088_v42, %v8163_v0 }
 0x136   : > { %v2997_v33 = vadd.f32 %v2965_v5, %v11023_v1  ;;  %v4325_v26 = vmul.f32 %v4293_v21, %v11026_v7  ;;  %v2936_v8 = vmul.f32 %v2904_v50, %v8005_v53  ;;  %v4263_v20 = vmul.f32 0.044715, %v11032_v25 }
 0x137   : > { %11031 = vst [vmem:[#allocation39_spill] sm:$0xff] %v8273_v6  ;;  %v2998_v56 = vadd.f32 %v2966_v11, %v11025_v62  ;;  %v2967_v51 = vmul.f32 %v2935_v36, %v11028_v9  ;;  %v4358_v39 = vadd.f32 %v4326_v3, %v11029_v34  ;;  %v8283_v23 = vmul.f32 0.5, %v11026_v7 }
 0x138   : > { %v3029_v13 = vmul.f32 0.7978846, %v2997_v33  ;;  %v4357_v0 = vadd.f32 %v4325_v26, %v11026_v7  ;;  %v2968_v1 = vmul.f32 %v2936_v8, %v8005_v53  ;;  %v6738_v42 = vpop.eup %6737  ;;  %v4446_v29 = vadd.f32 1.0, %v6736_v35 }
 0x139   : > { %v3030_v19 = vmul.f32 0.7978846, %v2998_v56  ;;  %v2999_v16 = vadd.f32 %v2967_v51, %v11028_v9  ;;  %v4295_v62 = vmul.f32 %v4263_v20, %v11032_v25  ;;  %v8290_v21 = vmul.f32 0.5, %v11028_v9 }
 0x13a   : > { %v6740_v24 = vpop.eup %6739  ;;  %6751 = vtanh.f32 %v3029_v13  ;;  %v4389_v5 = vmul.f32 0.7978846, %v4357_v0  ;;  %v3000_v50 = vadd.f32 %v2968_v1, %v8005_v53  ;;  %v4390_v36 = vmul.f32 0.7978846, %v4358_v39  ;;  %v11033_v0 = vld [vmem:[#allocation21_spill] sm:$0xff] }
 0x13b   : > { %v6742_v11 = vpop.eup %6741  ;;  %6753 = vtanh.f32 %v3030_v19  ;;  %v3031_v7 = vmul.f32 0.7978846, %v2999_v16  ;;  %v4327_v49 = vmul.f32 %v4295_v62, %v11032_v25  ;;  %v4447_v35 = vadd.f32 1.0, %v6738_v42 }
 0x13c   : > { %v6744_v3 = vpop.eup %6743  ;;  %v3090_v33 = vadd.f32 1.0, %v6740_v24  ;;  %6755 = vtanh.f32 %v4389_v5  ;;  %v3032_v26 = vmul.f32 0.7978846, %v3000_v50  ;;  %v4448_v56 = vadd.f32 1.0, %v6742_v11 }
 0x13d   : > { %v6746_v8 = vpop.eup %6745  ;;  %v4449_v51 = vadd.f32 1.0, %v6744_v3  ;;  %6757 = vtanh.f32 %v3031_v7  ;;  %v4359_v9 = vadd.f32 %v4327_v49, %v11032_v25  ;;  %v8296_v13 = vmul.f32 0.5, %v8005_v53  ;;  %v11041_v49 = vld [vmem:[#allocation30_spill] sm:$0xff] }
 0x13e   : > { %v3091_v20 = vadd.f32 1.0, %v6746_v8  ;;  %6759 = vtanh.f32 %v3032_v26  ;;  %v2906_v39 = vmul.f32 0.044715, %v11033_v0  ;;  %v8300_v19 = vmul.f32 %v4446_v29, %v8170_v44 }
 0x13f   : > { %v6748_v1 = vpop.eup %6747  ;;  %v8303_v42 = vmul.f32 0.5, %v11029_v34  ;;  %6761 = vtanh.f32 %v4390_v36  ;;  %v8306_v16 = vmul.f32 0.5, %v11032_v25  ;;  %v8309_v24 = vmul.f32 %v4447_v35, %v8174_v59  ;;  %v11039_v25 = vld [vmem:[#allocation47_spill] sm:$0xff] }
 0x140   : > { %11034 = vst [vmem:[#allocation22_spill] sm:$0xff] %v8300_v19  ;;  %v6750_v62 = vpop.eup %6749  ;;  %v4391_v53 = vmul.f32 0.7978846, %v4359_v9  ;;  %v8312_v5 = vmul.f32 0.5, %v11033_v0  ;;  %v2938_v50 = vmul.f32 %v2906_v39, %v11033_v0  ;;  %v8316_v44 = vmul.f32 %v3090_v33, %v8199_v30  ;;  %v11042_v33 = vld [vmem:[#allocation23_spill] sm:$0xff] }
 0x141   : > { %11035 = vst [vmem:[#allocation60_spill] sm:$0xff] %v8309_v24  ;;  %v8319_v34 = vmul.f32 %v4448_v56, %v8209_v18  ;;  %v8322_v29 = vmul.f32 %v4449_v51, %v8220_v58  ;;  %v4264_v11 = vmul.f32 0.044715, %v11039_v25  ;;  %v8326_v59 = vmul.f32 %v3091_v20, %v8229_v43  ;;  %v11043_v18 = vld [vmem:[#allocation42_spill] sm:$0xff] }
 0x142   : > { %11036 = vst [vmem:[#allocation63_spill] sm:$0xff] %v8316_v44  ;;  %v3092_v7 = vadd.f32 1.0, %v6748_v1  ;;  %v2970_v36 = vmul.f32 %v2938_v50, %v11033_v0  ;;  %v4265_v3 = vmul.f32 0.044715, %v11041_v49  ;;  %v4452_v35 = vadd.f32 1.0, %v6750_v62  ;;  %v11044_v1 = vld [vmem:[#allocation34_spill] sm:$0xff] }
 0x143   : > { %11037 = vst [vmem:[#allocation43_spill] sm:$0xff] %v8319_v34  ;;  %11038 = vst [vmem:[#allocation32_spill] sm:$0xff] %v8322_v29  ;;  %v4296_v30 = vmul.f32 %v4264_v11, %v11039_v25  ;;  %v2907_v26 = vmul.f32 0.044715, %v11042_v33  ;;  %v2908_v8 = vmul.f32 0.044715, %v11043_v18  ;;  %6763 = vtanh.f32 %v4391_v53 }
 0x144   : > { %11040 = vst [vmem:[#allocation68_spill] sm:$0xff] %v8326_v59  ;;  %v3002_v58 = vadd.f32 %v2970_v36, %v11033_v0  ;;  %v8335_v56 = vmul.f32 0.5, %v11039_v25  ;;  %v4297_v43 = vmul.f32 %v4265_v3, %v11041_v49  ;;  %v941_v51 = vpop.xlane.xlu1 %940  ;;  %v4266_v62 = vmul.f32 0.044715, %v11044_v1 }
 0x145   : > { %v4328_v9 = vmul.f32 %v4296_v30, %v11039_v25  ;;  %v2939_v20 = vmul.f32 %v2907_v26, %v11042_v33  ;;  %v2940_v39 = vmul.f32 %v2908_v8, %v11043_v18  ;;  %v945_v50 = vmul.f32 0.03125, %v941_v51 }
 0x146   : > { %v8343_v11 = vmul.f32 %v3092_v7, %v8232_v22  ;;  %v3034_v53 = vmul.f32 0.7978846, %v3002_v58  ;;  %v8346_v0 = vmul.f32 0.5, %v11041_v49  ;;  %v8349_v3 = vmul.f32 %v4452_v35, %v11046_v10 }
 0x147   : > { %v6752_v36 = vpop.eup %6751  ;;  %v4360_v30 = vadd.f32 %v4328_v9, %v11039_v25  ;;  %v4329_v26 = vmul.f32 %v4297_v43, %v11041_v49  ;;  %v8354_v8 = vmul.f32 0.5, %v11042_v33  ;;  %v947_v51 = vadd.f32 1e-06, %v945_v50  ;;  %v11048_v43 = vld [vmem:[#allocation38_spill] sm:$0xff] }
 0x148   : > { %11045 = vst [vmem:[#allocation25_spill] sm:$0xff] %v8343_v11  ;;  %11047 = vst [vmem:[#allocation36_spill] sm:$0xff] %v8349_v3  ;;  %v6754_v41 = vpop.eup %6753  ;;  %v2971_v22 = vmul.f32 %v2939_v20, %v11042_v33  ;;  %v8358_v7 = vmul.f32 0.5, %v11043_v18  ;;  %v2972_v58 = vmul.f32 %v2940_v39, %v11043_v18  ;;  %v1420_v55 = vpop.permute.xlu1 %1419  ;;  %6765 = vtanh.f32 %v3034_v53 }
 0x149   : > { %v6756_v11 = vpop.eup %6755  ;;  %v944_v10 = vpop.xlane.xlu0 %943  ;;  %v8362_v25 = vmul.f32 0.5, %v11044_v1  ;;  %v8365_v35 = vmul.f32 %v4266_v62, %v11044_v1  ;;  %v8368_v9 = vmul.f32 0.5, %v11048_v43  ;;  %6767 = vrsqrt.f32 %v947_v51 }
 0x14a   : > { %v6758_v50 = vpop.eup %6757  ;;  %v1459_v20 = vmul.f32 %v7447_v45, %v1420_v55  ;;  %v3093_v3 = vadd.f32 1.0, %v6752_v36  ;;  %v8372_v39 = vmul.f32 0.044715, %v11048_v43  ;;  %v946_v44 = vmul.f32 0.03125, %v944_v10 }
 0x14b   : > { %11049 = vst [vmem:[#allocation27_spill] sm:$0xff] %v8368_v9  ;;  %v6760_v59 = vpop.eup %6759  ;;  %v3094_v53 = vadd.f32 1.0, %v6754_v41  ;;  %v4392_v29 = vmul.f32 0.7978846, %v4360_v30  ;;  %v4361_v4 = vadd.f32 %v4329_v26, %v11041_v49  ;;  %v2826_v6 = vmul.f32 %v7461_v52, %v1420_v55 }
 0x14c   : > { %v6762_v34 = vpop.eup %6761  ;;  %v1495_v62 = vadd.f32 %v7453_v47, %v1459_v20  ;;  %v3003_v24 = vadd.f32 %v2971_v22, %v11042_v33  ;;  %v8379_v51 = vadd.f32 %v2972_v58, %v11043_v18  ;;  %v4179_v36 = vmul.f32 %v7450_v46, %v1420_v55 }
 0x14d   : > { %v948_v19 = vadd.f32 1e-06, %v946_v44  ;;  %v1303_v38 = vpop.permute.xlu0 %1302  ;;  %v4453_v9 = vadd.f32 1.0, %v6756_v11  ;;  %v3095_v10 = vadd.f32 1.0, %v6758_v50  ;;  %v3096_v26 = vadd.f32 1.0, %v6760_v59 }
 0x14e   : > { %v1438_v41 = vmul.f32 %v7447_v45, %v1303_v38  ;;  %v2805_v49 = vmul.f32 %v7461_v52, %v1303_v38  ;;  %v4158_v30 = vmul.f32 %v7450_v46, %v1303_v38  ;;  %v1559_v20 = vmul.f32 0.044715, %v1495_v62 }
 0x14f   : > { %6769 = vrsqrt.f32 %v948_v19  ;;  %v8386_v33 = vmul.f32 %v3093_v3, %v8248_v15  ;;  %v4454_v18 = vadd.f32 1.0, %v6762_v34  ;;  %v8389_v22 = vadd.f32 %v7481_v61, %v2826_v6 }
 0x150   : > { %v1474_v55 = vadd.f32 %v7453_v47, %v1438_v41  ;;  %v4194_v44 = vadd.f32 %v7456_v48, %v4158_v30  ;;  %v8394_v11 = vmul.f32 %v3094_v53, %v8266_v40  ;;  %v6764_v58 = vpop.eup %6763  ;;  %v8397_v38 = vadd.f32 %v7456_v48, %v4179_v36 }
 0x151   : > { %11050 = vst [vmem:[#allocation21_spill] sm:$0xff] %v8389_v22  ;;  %v1424_v19 = vpop.permute.xlu0 %1423  ;;  %v8399_v59 = vmul.f32 0.5, %v1495_v62  ;;  %v1591_v15 = vmul.f32 %v1559_v20, %v1495_v62  ;;  %v8402_v34 = vmul.f32 %v4453_v9, %v8283_v23  ;;  %v8405_v6 = vadd.f32 %v7481_v61, %v2805_v49 }
 0x152   : > { %11051 = vst [vmem:[#allocation47_spill] sm:$0xff] %v8397_v38  ;;  %v1460_v3 = vmul.f32 %v7447_v45, %v1424_v19  ;;  %v8409_v50 = vmul.f32 %v3095_v10, %v8290_v21  ;;  %v8412_v40 = vmul.f32 %v3096_v26, %v8296_v13  ;;  %v1538_v36 = vmul.f32 0.044715, %v1474_v55 }
 0x153   : > { %v1623_v53 = vmul.f32 %v1591_v15, %v1495_v62  ;;  %v4258_v41 = vmul.f32 0.044715, %v4194_v44  ;;  %v8415_v30 = vmul.f32 %v4454_v18, %v8303_v42  ;;  %v4455_v9 = vadd.f32 1.0, %v6764_v58  ;;  %v11053_v58 = vld [vmem:[#allocation31_spill] sm:$0xff] }
 0x154   : > { %11052 = vst [vmem:[#allocation30_spill] sm:$0xff] %v8412_v40  ;;  %v8418_v23 = vadd.f32 %v7453_v47, %v1460_v3  ;;  %6771 = vtanh.f32 %v4392_v29  ;;  %v4393_v49 = vmul.f32 0.7978846, %v4361_v4  ;;  %v2827_v45 = vmul.f32 %v7461_v52, %v1424_v19  ;;  %v6112_v47 = vld [vmem:[%s10774_s7] ss:$0 sm:$0xff] }
 0x155   : > { %v1655_v20 = vadd.f32 %v1623_v53, %v1495_v62  ;;  %v1570_v21 = vmul.f32 %v1538_v36, %v1474_v55  ;;  %v4290_v10 = vmul.f32 %v4258_v41, %v4194_v44  ;;  %v6766_v22 = vpop.eup %6765  ;;  %v4180_v13 = vmul.f32 %v7450_v46, %v1424_v19  ;;  %v6113_v53 = vld [vmem:[%s10775_s8] ss:$0 sm:$0xff] }
 0x156   : > { %v1560_v26 = vmul.f32 0.044715, %v8418_v23  ;;  %v8423_v15 = vmul.f32 0.5, %v1474_v55  ;;  %v2905_v42 = vmul.f32 0.044715, %v8405_v6  ;;  %v6768_v18 = vpop.eup %6767  ;;  %v8429_v52 = vmul.f32 0.5, %v4194_v44 }
 0x157   : > { %v1687_v4 = vmul.f32 0.7978846, %v1655_v20  ;;  %v1602_v29 = vmul.f32 %v1570_v21, %v1474_v55  ;;  %v4322_v62 = vmul.f32 %v4290_v10, %v4194_v44  ;;  %v951_v3 = vmul.f32 %v6768_v18, %v11053_v58 }
 0x158   : > { %v1592_v46 = vmul.f32 %v1560_v26, %v8418_v23  ;;  %v2937_v19 = vmul.f32 %v2905_v42, %v8405_v6  ;;  %6773 = vtanh.f32 %v4393_v49  ;;  %v3035_v38 = vmul.f32 0.7978846, %v3003_v24 }
 0x159   : > { %6775 = vtanh.f32 %v1687_v4  ;;  %v1634_v36 = vadd.f32 %v1602_v29, %v1474_v55  ;;  %v4354_v41 = vadd.f32 %v4322_v62, %v4194_v44  ;;  %v960_v20 = vmul.f32 %v6112_v47, %v951_v3  ;;  %v11054_v44 = vld [vmem:[#allocation35_spill] sm:$0xff] }
 0x15a   : > { %v1624_v21 = vmul.f32 %v1592_v46, %v8418_v23  ;;  %v2969_v10 = vmul.f32 %v2937_v19, %v8405_v6  ;;  %v3036_v18 = vmul.f32 0.7978846, %v8379_v51  ;;  %6777 = vtanh.f32 %v3035_v38  ;;  %v11057_v19 = vld [vmem:[#allocation26_spill] sm:$0xff] }
 0x15b   : > { %v1666_v26 = vmul.f32 0.7978846, %v1634_v36  ;;  %v4386_v58 = vmul.f32 0.7978846, %v4354_v41  ;;  %v4330_v49 = vmul.f32 %v8365_v35, %v11044_v1  ;;  %v969_v40 = vadd.f32 %v6113_v53, %v960_v20 }
 0x15c   : > { %v6770_v42 = vpop.eup %6769  ;;  %v1656_v55 = vadd.f32 %v1624_v21, %v8418_v23  ;;  %v3001_v24 = vadd.f32 %v2969_v10, %v8405_v6  ;;  %6779 = vtanh.f32 %v3036_v18  ;;  %v4299_v51 = vmul.f32 %v8372_v39, %v11048_v43  ;;  %v916_v21 = vld [vmem:[%s8456_s24] sm:$0xff] }
 0x15d   : > { %v952_v4 = vmul.f32 %v6770_v42, %v11054_v44  ;;  %6781 = vtanh.f32 %v1666_v26  ;;  %v4362_v29 = vadd.f32 %v4330_v49, %v11044_v1  ;;  %v8449_v38 = vadd.f32 %v7481_v61, %v2827_v45  ;;  %6376 = vmatprep.mubr.msk.f32.mxu0 %vm925_vm0, %v969_v40  ;;  %v11056_v40 = vld [vmem:[#allocation24_spill] sm:$0xff]  ;;  %v11059_v42 = vld [vmem:[#allocation46_spill] sm:$0xff] }
 0x15e   : > { %v1688_v35 = vmul.f32 0.7978846, %v1656_v55  ;;  %v3033_v62 = vmul.f32 0.7978846, %v3001_v24  ;;  %v3098_v3 = vadd.f32 1.0, %v6766_v22  ;;  %6783 = vtanh.f32 %v4386_v58  ;;  %v7057_v58 = vld [vmem:[%s7879_s19 + $0x18] sm:$0xff] }
 0x15f   : > { %v961_v46 = vmul.f32 %v6112_v47, %v952_v4  ;;  %v4394_v1 = vmul.f32 0.7978846, %v4362_v29  ;;  %v4331_v39 = vmul.f32 %v4299_v51, %v11048_v43  ;;  %v8460_v61 = vadd.f32 %v7456_v48, %v4180_v13  ;;  %v1143_v48 = vld [vmem:[%s7879_s19 + $0x10] sm:$0xff]  ;;  %v11060_v24 = vld [vmem:[#allocation45_spill] sm:$0xff] }
 0x160   : > { %6785 = vtanh.f32 %v1688_v35  ;;  %v2909_v45 = vmul.f32 0.044715, %v11056_v40  ;;  %v2910_v36 = vmul.f32 0.044715, %v11057_v19  ;;  %v8466_v22 = vmul.f32 %v4455_v9, %v8306_v16 }
 0x161   : > { %v6772_v41 = vpop.eup %6771  ;;  %v970_v20 = vadd.f32 %v6113_v53, %v961_v46  ;;  %v8469_v47 = vmul.f32 0.5, %v8405_v6  ;;  %v4363_v10 = vadd.f32 %v4331_v39, %v11048_v43  ;;  %v8474_v13 = vmul.f32 0.5, %v8418_v23  ;;  %v11058_v6 = vld [vmem:[#allocation41_spill] sm:$0xff]  ;;  %v1142_v43 = vld [vmem:[%s7879_s19 + $0x8] sm:$0xff] }
 0x162   : > { %6787 = vtanh.f32 %v3033_v62  ;;  %v2941_v18 = vmul.f32 %v2909_v45, %v11056_v40  ;;  %v2942_v26 = vmul.f32 %v2910_v36, %v11057_v19  ;;  %v8480_v53 = vmul.f32 %v3098_v3, %v8312_v5  ;;  %v1141_v3 = vld [vmem:[%s7879_s19] sm:$0xff]  ;;  %s6096_s19 = sshll.u32 %s7335_s25, 2 }
 0x163   : > { %6377 = vmatmul.mubr.msk.f32.vlgmr.msra.gmra.mxu0 %vm925_vm0, %v970_v20  ;;  %6789 = vtanh.f32 %v4394_v1  ;;  %v4395_v16 = vmul.f32 0.7978846, %v4363_v10  ;;  %v4268_v9 = vmul.f32 0.044715, %v11058_v6  ;;  %v4269_v55 = vmul.f32 0.044715, %v11059_v42 }
 0x164   : > { %6391 = vmatpush3.msra.mxu0 %v7057_v58  ;;  %6398 = vmatprep.mubr.msk.f32.mxu0 %vm925_vm0, %v916_v21  ;;  %v2973_v23 = vmul.f32 %v2941_v18, %v11056_v40  ;;  %v2974_v49 = vmul.f32 %v2942_v26, %v11057_v19  ;;  %v2911_v44 = vmul.f32 0.044715, %v11060_v24  ;;  %v4456_v4 = vadd.f32 1.0, %v6772_v41  ;;  %v11061_v20 = vld [vmem:[#allocation29_spill] sm:$0xff]  ;;  %v917_v18 = vld [vmem:[%s8456_s24 + $0x8] sm:$0xff]  ;;  %s8664_s24 = scalar_lea.vmem %s10785_s18, %s7436_s10 }
 0x165   : > { %v6774_v5 = vpop.eup %6773  ;;  %6392 = vmatprep.subr.mxu0 %v1143_v48  ;;  %v8491_v29 = vmul.f32 0.5, %v11056_v40  ;;  %v8494_v51 = vmul.f32 0.5, %v11057_v19  ;;  %v4300_v35 = vmul.f32 %v4268_v9, %v11058_v6  ;;  %v4301_v39 = vmul.f32 %v4269_v55, %v11059_v42 }
 0x166   : > { %v6776_v62 = vpop.eup %6775  ;;  %6393 = vmatpush3.msra.mxu0 %v1143_v48  ;;  %v3005_v46 = vadd.f32 %v2973_v23, %v11056_v40  ;;  %v3006_v1 = vadd.f32 %v2974_v49, %v11057_v19  ;;  %v2943_v45 = vmul.f32 %v2911_v44, %v11060_v24  ;;  %6791 = vtanh.f32 %v4395_v16 }
 0x167   : > { %6394 = vmatprep.subr.mxu0 %v1142_v43  ;;  %v1751_v36 = vadd.f32 1.0, %v6776_v62  ;;  %v4332_v41 = vmul.f32 %v4300_v35, %v11058_v6  ;;  %v2912_v21 = vmul.f32 0.044715, %v11061_v20  ;;  %v6778_v10 = vpop.eup %6777  ;;  %v4333_v40 = vmul.f32 %v4301_v39, %v11059_v42 }
 0x168   : > { %6395 = vmatpush3.msra.mxu0 %v1142_v43  ;;  %v3037_v48 = vmul.f32 0.7978846, %v3005_v46  ;;  %v3038_v26 = vmul.f32 0.7978846, %v3006_v1  ;;  %v2975_v19 = vmul.f32 %v2943_v45, %v11060_v24  ;;  %v8509_v16 = vmul.f32 %v4456_v4, %v8335_v56  ;;  %v1244_v56 = vld [vmem:[%s7409_s29 + $0x8] sm:$0xff]  ;;  %v7058_v46 = vld [vmem:[%s7409_s29] sm:$0xff]  ;;  %s862_s29 = scalar_lea.vmem %s10772_s5, %s6096_s19 }
 0x169   : > { %v6780_v9 = vpop.eup %6779  ;;  %6396 = vmatprep.subr.mxu0 %v1141_v3  ;;  %v1783_v58 = vmul.f32 %v1751_v36, %v8399_v59  ;;  %v4364_v23 = vadd.f32 %v4332_v41, %v11058_v6  ;;  %v2944_v49 = vmul.f32 %v2912_v21, %v11061_v20  ;;  %v8514_v55 = vmul.f32 0.5, %v11058_v6  ;;  %v11062_v21 = vld [vmem:[#allocation49_spill] sm:$0xff] }
 0x16a   : > { %v6782_v43 = vpop.eup %6781  ;;  %6397 = vmatpush3.msra.mxu0 %v1141_v3  ;;  %v8517_v44 = vmul.f32 0.5, %v11059_v42  ;;  %v4365_v35 = vadd.f32 %v4333_v40, %v11059_v42  ;;  %v3007_v59 = vadd.f32 %v2975_v19, %v11060_v24  ;;  %v4457_v4 = vadd.f32 1.0, %v6774_v5  ;;  %v921_v19 = vld [vmem:[%s8534_s26 + $0x8] sm:$0xff] }
 0x16b   : > { %6399 = vmatmul.mubr.msk.f32.vlgmr.msra.gmra.mxu0 %vm925_vm0, %v917_v18  ;;  %6448 = vmatprep.mubr.msk.f32.mxu1 %vm1789_vm1, %v1783_v58  ;;  %6793 = vtanh.f32 %v3037_v48  ;;  %v4396_v62 = vmul.f32 0.7978846, %v4364_v23  ;;  %v8525_v3 = vmul.f32 0.5, %v11060_v24  ;;  %v6784_v6 = vpop.eup %6783  ;;  %v3099_v42 = vadd.f32 1.0, %v6778_v10  ;;  %v8551_v23 = vpop.f32.mrf.mxu1 }
 0x16c   : > { %6403 = vmatprep.mubr.msk.f32.mxu0 %vm1789_vm1, %v8150_v28  ;;  %6401 = vmatprep.subr.mxu0 %v7058_v46  ;;  %6795 = vtanh.f32 %v3038_v26  ;;  %v4397_v1 = vmul.f32 0.7978846, %v4365_v35  ;;  %v3039_v39 = vmul.f32 0.7978846, %v3007_v59  ;;  %v1730_v24 = vadd.f32 1.0, %v6782_v43 }
 0x16d   : > { %v6786_v5 = vpop.eup %6785  ;;  %6402 = vmatpush3.msra.mxu0 %v7058_v46  ;;  %v3100_v45 = vadd.f32 1.0, %v6780_v9  ;;  %6797 = vtanh.f32 %v4396_v62  ;;  %v2976_v36 = vmul.f32 %v2944_v49, %v11061_v20  ;;  %v8538_v41 = vmul.f32 0.5, %v11061_v20  ;;  %v11063_v49 = vld [vmem:[#allocation51_spill] sm:$0xff] }
 0x16e   : > { %v1752_v28 = vadd.f32 1.0, %v6786_v5  ;;  %6451 = vmatprep.subr.mxu0 %v1244_v56  ;;  %6799 = vtanh.f32 %v4397_v1  ;;  %v4270_v10 = vmul.f32 0.044715, %v11062_v21  ;;  %v4450_v48 = vadd.f32 1.0, %v6784_v6  ;;  %v11064_v6 = vld [vmem:[#allocation33_spill] sm:$0xff] }
 0x16f   : > { %v6788_v18 = vpop.eup %6787  ;;  %6404 = vmatmul.mubr.msk.f32.vlgmr.msra.gmra.mxu0 %vm1789_vm1, %v8138_v60  ;;  %v8544_v26 = vmul.f32 %v4457_v4, %v8346_v0  ;;  %6801 = vtanh.f32 %v3039_v39  ;;  %v3008_v40 = vadd.f32 %v2976_v36, %v11061_v20  ;;  %v8554_v60 = vmul.f32 %v3099_v42, %v8354_v8  ;;  %v920_v4 = vld [vmem:[%s8534_s26] sm:$0xff] }
 0x170   : > { %v6790_v9 = vpop.eup %6789  ;;  %6406 = vmatprep.mubr.msk.f32.mxu0 %vm1789_vm1, %v8167_v32  ;;  %v1784_v58 = vmul.f32 %v1752_v28, %v8474_v13  ;;  %6452 = vmatpush3.msra.mxu0 %v1244_v56  ;;  %v4302_v0 = vmul.f32 %v4270_v10, %v11062_v21  ;;  %v4271_v43 = vmul.f32 0.044715, %v11063_v49  ;;  %v8559_v20 = vmul.f32 %v1730_v24, %v8423_v15  ;;  %v11066_v24 = vld [vmem:[#allocation53_spill] sm:$0xff] }
 0x171   : > { %v8562_v35 = vmul.f32 %v3100_v45, %v8358_v7  ;;  %v3040_v32 = vmul.f32 0.7978846, %v3008_v40  ;;  %6551 = vmatprep.subr.msk.mxu0 %vm1789_vm1, %v8551_v23  ;;  %v3097_v13 = vadd.f32 1.0, %v6788_v18  ;;  %v1230_v56 = vsel %vm1226_vm2, %v921_v19, 0.0  ;;  %v11067_v40 = vld [vmem:[#allocation56_spill] sm:$0xff] }
 0x172   : > { %6449 = vmatmul.mubr.msk.f32.gmra.mxu1 %vm1789_vm1, %v1784_v58  ;;  %v4334_v8 = vmul.f32 %v4302_v0, %v11062_v21  ;;  %v4303_v59 = vmul.f32 %v4271_v43, %v11063_v49  ;;  %v8576_v7 = vmul.f32 %v4450_v48, %v8429_v52  ;;  %v8579_v15 = vmul.f32 0.5, %v11062_v21  ;;  %1231 = vadd.xlane.f32.xlu1 %v1230_v56  ;;  %v11065_v52 = vld [vmem:[#allocation37_spill] sm:$0xff] }
 0x173   : > { %6407 = vmatmul.mubr.msk.f32.gmra.mxu0 %vm1789_vm1, %v8177_v31  ;;  %6503 = vmatprep.mubr.msk.f32.mxu1 %vm1789_vm1, %v8188_v14  ;;  %v8582_v62 = vmul.f32 0.5, %v11063_v49  ;;  %v2913_v46 = vmul.f32 0.044715, %v11064_v6  ;;  %v6792_v42 = vpop.eup %6791  ;;  %v4458_v1 = vadd.f32 1.0, %v6790_v9  ;;  %v2914_v39 = vmul.f32 0.044715, %v11065_v52 }
 0x174   : > { %6409 = vmatprep.mubr.msk.f32.mxu0 %vm1789_vm1, %v8180_v57  ;;  %v4366_v31 = vadd.f32 %v4334_v8, %v11062_v21  ;;  %v4335_v14 = vmul.f32 %v4303_v59, %v11063_v49  ;;  %6803 = vtanh.f32 %v3040_v32  ;;  %v4272_v45 = vmul.f32 0.044715, %v11066_v24  ;;  %v11068_v59 = vld [vmem:[#allocation40_spill] sm:$0xff] }
 0x175   : > { %v2945_v5 = vmul.f32 %v2913_v46, %v11064_v6  ;;  %v1227_v36 = vsel %vm1226_vm2, %v920_v4, 0.0  ;;  %v8596_v57 = vmul.f32 %v3097_v13, %v8469_v47  ;;  %v2946_v10 = vmul.f32 %v2914_v39, %v11065_v52 }
 0x176   : > { %6504 = vmatmul.mubr.msk.f32.vlgmr.msra.gmra.mxu1 %vm1789_vm1, %v8115_v63  ;;  %v4398_v28 = vmul.f32 0.7978846, %v4366_v31  ;;  %v4367_v21 = vadd.f32 %v4335_v14, %v11063_v49  ;;  %1228 = vadd.xlane.f32.xlu0 %v1227_v36  ;;  %v4459_v18 = vadd.f32 1.0, %v6792_v42  ;;  %v4304_v63 = vmul.f32 %v4272_v45, %v11066_v24  ;;  %v11070_v31 = vld [vmem:[#allocation59_spill] sm:$0xff]  ;;  %v11071_v36 = vld [vmem:[#allocation22_spill] sm:$0xff] }
 0x177   : > { %6410 = vmatmul.mubr.msk.f32.gmra.mxu0 %vm1789_vm1, %v8191_v27  ;;  %6506 = vmatprep.mubr.msk.f32.mxu1 %vm1789_vm1, %v8235_v37  ;;  %v2977_v48 = vmul.f32 %v2945_v5, %v11064_v6  ;;  %v4273_v47 = vmul.f32 0.044715, %v11067_v40  ;;  %v8610_v9 = vmul.f32 %v4458_v1, %v8362_v25  ;;  %v8613_v27 = vmul.f32 0.5, %v11064_v6 }
 0x178   : > { %v6794_v19 = vpop.eup %6793  ;;  %6412 = vmatprep.mubr.msk.f32.mxu0 %vm1789_vm1, %v8217_v2  ;;  %v4399_v58 = vmul.f32 0.7978846, %v4367_v21  ;;  %v2978_v37 = vmul.f32 %v2946_v10, %v11065_v52  ;;  %v8618_v43 = vmul.f32 0.5, %v11065_v52  ;;  %v4336_v32 = vmul.f32 %v4304_v63, %v11066_v24  ;;  %v11072_v10 = vld [vmem:[#allocation60_spill] sm:$0xff] }
 0x179   : > { %v6796_v0 = vpop.eup %6795  ;;  %v3009_v49 = vadd.f32 %v2977_v48, %v11064_v6  ;;  %v4305_v13 = vmul.f32 %v4273_v47, %v11067_v40  ;;  %6805 = vtanh.f32 %v4398_v28  ;;  %v8626_v8 = vmul.f32 0.5, %v11066_v24  ;;  %v11069_v6 = vld [vmem:[#allocation27_spill] sm:$0xff]  ;;  %v11073_v47 = vld [vmem:[#allocation44_spill] sm:$0xff] }
 0x17a   : > { %v6798_v2 = vpop.eup %6797  ;;  %6507 = vmatmul.mubr.msk.f32.gmra.mxu1 %vm1789_vm1, %v8254_v12  ;;  %v3010_v25 = vadd.f32 %v2978_v37, %v11065_v52  ;;  %v2915_v56 = vmul.f32 0.044715, %v11068_v59  ;;  %v8634_v46 = vmul.f32 %v4459_v18, %v11069_v6  ;;  %6807 = vtanh.f32 %v4399_v58  ;;  %v1132_v18 = vpop.f32.mrf.mxu1  ;;  %v11074_v58 = vld [vmem:[#allocation39_spill] sm:$0xff] }
 0x17b   : > { %v6800_v4 = vpop.eup %6799  ;;  %6413 = vmatmul.mubr.msk.f32.gmra.mxu0 %vm1789_vm1, %v8242_v54  ;;  %6509 = vmatprep.mubr.msk.f32.mxu1 %vm1789_vm1, %v8260_v17  ;;  %v3041_v12 = vmul.f32 0.7978846, %v3009_v49  ;;  %v4368_v42 = vadd.f32 %v4336_v32, %v11066_v24  ;;  %v3101_v14 = vadd.f32 1.0, %v6794_v19  ;;  %v4337_v39 = vmul.f32 %v4305_v13, %v11067_v40  ;;  %v11075_v49 = vld [vmem:[#allocation58_spill] sm:$0xff]  ;;  %v11077_v6 = vld [vmem:[#allocation43_spill] sm:$0xff] }
 0x17c   : > { %v6802_v1 = vpop.eup %6801  ;;  %6415 = vmatprep.mubr.msk.f32.mxu0 %vm1789_vm1, %v11070_v31  ;;  %v3042_v52 = vmul.f32 0.7978846, %v3010_v25  ;;  %v2947_v54 = vmul.f32 %v2915_v56, %v11068_v59  ;;  %v3102_v5 = vadd.f32 1.0, %v6796_v0  ;;  %v4460_v45 = vadd.f32 1.0, %v6798_v2  ;;  %v11076_v25 = vld [vmem:[#allocation62_spill] sm:$0xff] }
 0x17d   : > { %6809 = vtanh.f32 %v3041_v12  ;;  %v4400_v17 = vmul.f32 0.7978846, %v4368_v42  ;;  %v4461_v28 = vadd.f32 1.0, %v6800_v4  ;;  %v4369_v24 = vadd.f32 %v4337_v39, %v11067_v40  ;;  %v1248_v4 = vld [vmem:[%s8664_s24] sm:$0x7] }
 0x17e   : > { %6510 = vmatmul.mubr.msk.f32.gmra.mxu1 %vm1789_vm1, %v11071_v36  ;;  %6811 = vtanh.f32 %v3042_v52  ;;  %v2979_v21 = vmul.f32 %v2947_v54, %v11068_v59  ;;  %v3103_v48 = vadd.f32 1.0, %v6802_v1  ;;  %v8650_v63 = vmul.f32 0.5, %v11067_v40  ;;  %6573 = vpush %v1248_v4  ;;  %v11085_v4 = vld [vmem:[#allocation50_spill] sm:$0xff] }
 0x17f   : > { %6416 = vmatmul.mubr.msk.f32.gmra.mxu0 %vm1789_vm1, %v8559_v20  ;;  %6512 = vmatprep.mubr.msk.f32.mxu1 %vm1789_vm1, %v11072_v10  ;;  %6813 = vtanh.f32 %v4400_v17  ;;  %v2916_v19 = vmul.f32 0.044715, %v11073_v47  ;;  %v4401_v37 = vmul.f32 0.7978846, %v4369_v24  ;;  %v8656_v0 = vmul.f32 0.5, %v11068_v59 }
 0x180   : > { %6453 = vmatprep.mubr.msk.f32.mxu0 %vm1789_vm1, %v11074_v58  ;;  %v3011_v20 = vadd.f32 %v2979_v21, %v11068_v59  ;;  %v4274_v32 = vmul.f32 0.044715, %v11075_v49  ;;  %v8667_v40 = vmul.f32 %v3101_v14, %v8491_v29  ;;  %v8670_v13 = vmul.f32 %v3102_v5, %v8494_v51  ;;  %v11078_v51 = vld [vmem:[#allocation69_spill] sm:$0xff]  ;;  %v11079_v14 = vld [vmem:[#allocation32_spill] sm:$0xff]  ;;  %v11081_v5 = vld [vmem:[#allocation63_spill] sm:$0xff] }
 0x181   : > { %v2948_v2 = vmul.f32 %v2916_v19, %v11073_v47  ;;  %v4275_v56 = vmul.f32 0.044715, %v11076_v25  ;;  %v6804_v59 = vpop.eup %6803  ;;  %v8678_v12 = vmul.f32 %v4460_v45, %v8514_v55  ;;  %v8681_v42 = vmul.f32 %v4461_v28, %v8517_v44  ;;  %v11080_v44 = vld [vmem:[#allocation48_spill] sm:$0xff]  ;;  %v11082_v45 = vld [vmem:[#allocation19_spill] sm:$0xff] }
 0x182   : > { %6513 = vmatmul.mubr.msk.f32.gmra.mxu1 %vm1789_vm1, %v11077_v6  ;;  %v3043_v29 = vmul.f32 0.7978846, %v3011_v20  ;;  %v4306_v1 = vmul.f32 %v4274_v32, %v11075_v49  ;;  %v8689_v52 = vmul.f32 %v3103_v48, %v8525_v3  ;;  %v2917_v54 = vmul.f32 0.044715, %v11080_v44  ;;  %v11083_v20 = vld [vmem:[#allocation68_spill] sm:$0xff] }
 0x183   : > { %6454 = vmatmul.mubr.msk.f32.vlgmr.msra.gmra.mxu0 %vm1789_vm1, %v11078_v51  ;;  %v6420_v31 = vpop.f32.mrf.mxu1  ;;  %6515 = vmatprep.mubr.msk.f32.mxu1 %vm1789_vm1, %v11079_v14  ;;  %v2980_v55 = vmul.f32 %v2948_v2, %v11073_v47  ;;  %v4307_v39 = vmul.f32 %v4275_v56, %v11076_v25  ;;  %6815 = vtanh.f32 %v4401_v37  ;;  %v8698_v36 = vmul.f32 0.5, %v11073_v47 }
 0x184   : > { %6456 = vmatprep.mubr.msk.f32.mxu0 %vm1789_vm1, %v11081_v5  ;;  %v2008_v17 = vadd.f32 %v6420_v31, %v11082_v45  ;;  %v4338_v28 = vmul.f32 %v4306_v1, %v11075_v49  ;;  %6552 = vmatpush3.xpose.msk.msra.mxu0 %vm1789_vm1, %v8551_v23  ;;  %v3104_v24 = vadd.f32 1.0, %v6804_v59  ;;  %v2949_v48 = vmul.f32 %v2917_v54, %v11080_v44  ;;  %v11086_v1 = vld [vmem:[#allocation25_spill] sm:$0xff] }
 0x185   : > { %v2002_v3 = vpop.f32.mrf.mxu1  ;;  %v3012_v21 = vadd.f32 %v2980_v55, %v11073_v47  ;;  %v4339_v10 = vmul.f32 %v4307_v39, %v11076_v25  ;;  %6553 = vmatprep.subr.msk.mxu0 %vm1789_vm1, %v1132_v18  ;;  %6817 = vtanh.f32 %v3043_v29  ;;  %v8711_v37 = vmul.f32 0.5, %v11075_v49  ;;  %v11084_v47 = vld [vmem:[#allocation54_spill] sm:$0xff] }
 0x186   : > { %v2154_v19 = vmul.f32 0.044715, %v2008_v17  ;;  %v2003_v58 = vadd.f32 %v2002_v3, %v11082_v45  ;;  %6516 = vmatmul.mubr.msk.f32.gmra.mxu1 %vm1789_vm1, %v8576_v7  ;;  %v6806_v23 = vpop.eup %6805  ;;  %v4370_v32 = vadd.f32 %v4338_v28, %v11075_v49  ;;  %v2981_v56 = vmul.f32 %v2949_v48, %v11080_v44  ;;  %v11087_v28 = vld [vmem:[#allocation36_spill] sm:$0xff] }
 0x187   : > { %6457 = vmatmul.mubr.msk.f32.gmra.mxu0 %vm1789_vm1, %v11083_v20  ;;  %6518 = vmatprep.mubr.msk.f32.mxu1 %vm1789_vm1, %v11084_v47  ;;  %v4371_v2 = vadd.f32 %v4339_v10, %v11076_v25  ;;  %v2918_v59 = vmul.f32 0.044715, %v11085_v4  ;;  %v6808_v7 = vpop.eup %6807  ;;  %v3044_v51 = vmul.f32 0.7978846, %v3012_v21  ;;  %v8724_v31 = vmul.f32 0.5, %v11076_v25 }
 0x188   : > { %v2186_v6 = vmul.f32 %v2154_v19, %v2008_v17  ;;  %v2153_v29 = vmul.f32 0.044715, %v2003_v58  ;;  %6459 = vmatprep.mubr.msk.f32.mxu0 %vm1789_vm1, %v11086_v1  ;;  %6554 = vmatpush3.xpose.msk.msra.mxu0 %vm1789_vm1, %v1132_v18  ;;  %v8728_v49 = vmul.f32 %v3104_v24, %v8538_v41  ;;  %v4402_v14 = vmul.f32 0.7978846, %v4370_v32 }
 0x189   : > { %v8731_v55 = vmul.f32 0.5, %v11080_v44  ;;  %v8734_v39 = vmul.f32 0.5, %v11085_v4  ;;  %v4403_v25 = vmul.f32 0.7978846, %v4371_v2  ;;  %v3013_v21 = vadd.f32 %v2981_v56, %v11080_v44  ;;  %v11088_v56 = vld [vmem:[#allocation65_spill] sm:$0xff] }
 0x18a   : > { %v6810_v54 = vpop.eup %6809  ;;  %v2185_v5 = vmul.f32 %v2153_v29, %v2003_v58  ;;  %6519 = vmatmul.mubr.msk.f32.gmra.mxu1 %vm1789_vm1, %v11087_v28  ;;  %v2218_v3 = vmul.f32 %v2186_v6, %v2008_v17  ;;  %v4462_v41 = vadd.f32 1.0, %v6806_v23  ;;  %v4463_v24 = vadd.f32 1.0, %v6808_v7  ;;  %v11089_v6 = vld [vmem:[#allocation30_spill] sm:$0xff] }
 0x18b   : > { %v6812_v18 = vpop.eup %6811  ;;  %6460 = vmatmul.mubr.msk.f32.gmra.mxu0 %vm1789_vm1, %v8386_v33  ;;  %6521 = vmatprep.mubr.msk.f32.mxu1 %vm1789_vm1, %v8402_v34  ;;  %v8743_v10 = vmul.f32 0.5, %v2008_v17  ;;  %v2950_v48 = vmul.f32 %v2918_v59, %v11085_v4  ;;  %v3105_v20 = vadd.f32 1.0, %v6810_v54  ;;  %6819 = vtanh.f32 %v3044_v51 }
 0x18c   : > { %v6814_v19 = vpop.eup %6813  ;;  %6462 = vmatprep.mubr.msk.f32.mxu0 %vm1789_vm1, %v8394_v11  ;;  %v2250_v47 = vadd.f32 %v2218_v3, %v2008_v17  ;;  %v2217_v44 = vmul.f32 %v2185_v5, %v2003_v58  ;;  %v3106_v32 = vadd.f32 1.0, %v6812_v18  ;;  %6821 = vtanh.f32 %v4402_v14  ;;  %v11090_v14 = vld [vmem:[#allocation67_spill] sm:$0xff] }
 0x18d   : > { %v3045_v33 = vmul.f32 0.7978846, %v3013_v21  ;;  %v2982_v2 = vmul.f32 %v2950_v48, %v11085_v4  ;;  %6823 = vtanh.f32 %v4403_v25  ;;  %v4276_v59 = vmul.f32 0.044715, %v11088_v56  ;;  %v11092_v25 = vld [vmem:[#allocation55_spill] sm:$0xff] }
 0x18e   : > { %6522 = vmatmul.mubr.msk.f32.gmra.mxu1 %vm1789_vm1, %v8415_v30  ;;  %v2282_v34 = vmul.f32 0.7978846, %v2250_v47  ;;  %v2249_v23 = vadd.f32 %v2217_v44, %v2003_v58  ;;  %v8757_v11 = vmul.f32 %v4462_v41, %v8579_v15  ;;  %v4464_v17 = vadd.f32 1.0, %v6814_v19  ;;  %v11093_v41 = vld [vmem:[#allocation71_spill] sm:$0xff] }
 0x18f   : > { %6463 = vmatmul.mubr.msk.f32.gmra.mxu0 %vm1789_vm1, %v8409_v50  ;;  %6524 = vmatprep.mubr.msk.f32.mxu1 %vm1789_vm1, %v8466_v22  ;;  %6825 = vtanh.f32 %v3045_v33  ;;  %v3014_v7 = vadd.f32 %v2982_v2, %v11085_v4  ;;  %v8762_v30 = vmul.f32 0.5, %v2003_v58  ;;  %v4308_v1 = vmul.f32 %v4276_v59, %v11088_v56  ;;  %v11094_v47 = vld [vmem:[#allocation47_spill] sm:$0xff] }
 0x190   : > { %6465 = vmatprep.mubr.msk.f32.mxu0 %vm1789_vm1, %v11089_v6  ;;  %6827 = vtanh.f32 %v2282_v34  ;;  %v2281_v29 = vmul.f32 0.7978846, %v2249_v23  ;;  %v6816_v50 = vpop.eup %6815  ;;  %v8766_v51 = vmul.f32 %v4463_v24, %v8582_v62  ;;  %v8769_v15 = vmul.f32 0.5, %v11088_v56  ;;  %v11095_v23 = vld [vmem:[#allocation57_spill] sm:$0xff] }
 0x191   : > { %v3046_v22 = vmul.f32 0.7978846, %v3014_v7  ;;  %v4277_v54 = vmul.f32 0.044715, %v11090_v14  ;;  %v8775_v4 = vmul.f32 %v3105_v20, %v8613_v27  ;;  %v8778_v58 = vmul.f32 %v3106_v32, %v8618_v43  ;;  %v11091_v27 = vld [vmem:[#allocation52_spill] sm:$0xff] }
 0x192   : > { %6525 = vmatmul.mubr.msk.f32.gmra.mxu1 %vm1789_vm1, %v8509_v16  ;;  %6829 = vtanh.f32 %v2281_v29  ;;  %v4340_v5 = vmul.f32 %v4308_v1, %v11088_v56  ;;  %v6818_v62 = vpop.eup %6817  ;;  %v8786_v28 = vmul.f32 %v4464_v17, %v8626_v8  ;;  %v2919_v3 = vmul.f32 0.044715, %v11091_v27 }
 0x193   : > { %6466 = vmatmul.mubr.msk.f32.gmra.mxu0 %vm1789_vm1, %v8596_v57  ;;  %6527 = vmatprep.mubr.msk.f32.mxu1 %vm1789_vm1, %v8544_v26  ;;  %v4309_v16 = vmul.f32 %v4277_v54, %v11090_v14  ;;  %v2920_v43 = vmul.f32 0.044715, %v11092_v25  ;;  %v4465_v21 = vadd.f32 1.0, %v6816_v50  ;;  %v8795_v57 = vmul.f32 0.5, %v11090_v14 }
 0x194   : > { %6468 = vmatprep.mubr.msk.f32.mxu0 %vm1789_vm1, %v8480_v53  ;;  %v4372_v18 = vadd.f32 %v4340_v5, %v11088_v56  ;;  %v4278_v26 = vmul.f32 0.044715, %v11093_v41  ;;  %6831 = vtanh.f32 %v3046_v22  ;;  %v2951_v24 = vmul.f32 %v2919_v3, %v11091_v27 }
 0x195   : > { %v4341_v8 = vmul.f32 %v4309_v16, %v11090_v14  ;;  %v2952_v48 = vmul.f32 %v2920_v43, %v11092_v25  ;;  %v3107_v19 = vadd.f32 1.0, %v6818_v62  ;;  %v4279_v44 = vmul.f32 0.044715, %v11094_v47 }
 0x196   : > { %6528 = vmatmul.mubr.msk.f32.gmra.mxu1 %vm1789_vm1, %v8610_v9  ;;  %v4404_v53 = vmul.f32 0.7978846, %v4372_v18  ;;  %v4310_v20 = vmul.f32 %v4278_v26, %v11093_v41  ;;  %v8811_v33 = vmul.f32 0.5, %v11091_v27  ;;  %v2983_v2 = vmul.f32 %v2951_v24, %v11091_v27 }
 0x197   : > { %6469 = vmatmul.mubr.msk.f32.gmra.mxu0 %vm1789_vm1, %v8554_v60  ;;  %6530 = vmatprep.mubr.msk.f32.mxu1 %vm1789_vm1, %v8634_v46  ;;  %v4373_v32 = vadd.f32 %v4341_v8, %v11090_v14  ;;  %v2984_v9 = vmul.f32 %v2952_v48, %v11092_v25  ;;  %v4311_v60 = vmul.f32 %v4279_v44, %v11094_v47  ;;  %v2921_v56 = vmul.f32 0.044715, %v11095_v23  ;;  %v11097_v44 = vld [vmem:[#allocation20_spill] sm:$0xff] }
 0x198   : > { %6471 = vmatprep.mubr.msk.f32.mxu0 %vm1789_vm1, %v8562_v35  ;;  %6833 = vtanh.f32 %v4404_v53  ;;  %v4342_v34 = vmul.f32 %v4310_v20, %v11093_v41  ;;  %v6820_v46 = vpop.eup %6819  ;;  %v4497_v59 = vmul.f32 %v4465_v21, %v8650_v63  ;;  %v3015_v7 = vadd.f32 %v2983_v2, %v11091_v27  ;;  %v11098_v2 = vld [vmem:[#allocation64_spill] sm:$0xff] }
 0x199   : > { %v4405_v17 = vmul.f32 0.7978846, %v4373_v32  ;;  %v8823_v6 = vmul.f32 0.5, %v11092_v25  ;;  %v6822_v29 = vpop.eup %6821  ;;  %v8828_v35 = vmul.f32 %v3107_v19, %v8656_v0  ;;  %v3016_v1 = vadd.f32 %v2984_v9, %v11092_v25 }
 0x19a   : > { %6531 = vmatmul.mubr.msk.f32.gmra.mxu1 %vm1789_vm1, %v8678_v12  ;;  %v4374_v50 = vadd.f32 %v4342_v34, %v11093_v41  ;;  %v4343_v22 = vmul.f32 %v4311_v60, %v11094_v47  ;;  %v6824_v63 = vpop.eup %6823  ;;  %v3047_v14 = vmul.f32 0.7978846, %v3015_v7  ;;  %v8838_v12 = vmul.f32 0.5, %v11093_v41 }
 0x19b   : > { %6472 = vmatmul.mubr.msk.f32.gmra.mxu0 %vm1789_vm1, %v8667_v40  ;;  %6533 = vmatprep.mubr.msk.f32.mxu1 %vm1789_vm1, %v8681_v42  ;;  %6835 = vtanh.f32 %v4405_v17  ;;  %v2953_v0 = vmul.f32 %v2921_v56, %v11095_v23  ;;  %v3048_v5 = vmul.f32 0.7978846, %v3016_v1  ;;  %v8844_v16 = vmul.f32 0.5, %v11094_v47  ;;  %v11100_v17 = vld [vmem:[#allocation70_spill] sm:$0xff] }
 0x19c   : > { %v6826_v54 = vpop.eup %6825  ;;  %6474 = vmatprep.mubr.msk.f32.mxu0 %vm1789_vm1, %v8670_v13  ;;  %v4406_v62 = vmul.f32 0.7978846, %v4374_v50  ;;  %v4375_v40 = vadd.f32 %v4343_v22, %v11094_v47  ;;  %v3108_v42 = vadd.f32 1.0, %v6820_v46  ;;  %v4466_v3 = vadd.f32 1.0, %v6822_v29  ;;  %v11096_v13 = vld [vmem:[#allocation61_spill] sm:$0xff] }
 0x19d   : > { %v6828_v27 = vpop.eup %6827  ;;  %6837 = vtanh.f32 %v3047_v14  ;;  %v2985_v25 = vmul.f32 %v2953_v0, %v11095_v23  ;;  %v2922_v18 = vmul.f32 0.044715, %v11096_v13  ;;  %v4467_v26 = vadd.f32 1.0, %v6824_v63 }
 0x19e   : > { %6534 = vmatmul.mubr.msk.f32.gmra.mxu1 %vm1789_vm1, %v8757_v11  ;;  %v2346_v43 = vadd.f32 1.0, %v6828_v27  ;;  %6839 = vtanh.f32 %v3048_v5  ;;  %v4407_v21 = vmul.f32 0.7978846, %v4375_v40  ;;  %v3109_v8 = vadd.f32 1.0, %v6826_v54 }
 0x19f   : > { %v6830_v41 = vpop.eup %6829  ;;  %6475 = vmatmul.mubr.msk.f32.gmra.mxu0 %vm1789_vm1, %v8689_v52  ;;  %6536 = vmatprep.mubr.msk.f32.mxu1 %vm1789_vm1, %v8766_v51  ;;  %6841 = vtanh.f32 %v4406_v62  ;;  %v3017_v24 = vadd.f32 %v2985_v25, %v11095_v23  ;;  %v2954_v19 = vmul.f32 %v2922_v18, %v11096_v13  ;;  %v3140_v53 = vmul.f32 %v3108_v42, %v8698_v36  ;;  %v11101_v62 = vld [vmem:[#allocation21_spill] sm:$0xff] }
 0x1a0   : > { %6477 = vmatprep.mubr.msk.f32.mxu0 %vm1789_vm1, %v8728_v49  ;;  %v2378_v11 = vmul.f32 %v2346_v43, %v8743_v10  ;;  %v2345_v48 = vadd.f32 1.0, %v6830_v41  ;;  %6843 = vtanh.f32 %v4407_v21  ;;  %v4498_v52 = vmul.f32 %v4466_v3, %v8711_v37 }
 0x1a1   : > { %v3049_v20 = vmul.f32 0.7978846, %v3017_v24  ;;  %v4280_v51 = vmul.f32 0.044715, %v8460_v61  ;;  %v6832_v47 = vpop.eup %6831  ;;  %v2986_v10 = vmul.f32 %v2954_v19, %v11096_v13  ;;  %v2923_v9 = vmul.f32 0.044715, %v11098_v2 }
 0x1a2   : > { %6537 = vmatmul.mubr.msk.f32.gmra.mxu1 %vm1789_vm1, %v8786_v28  ;;  %v2414_v32 = vmul.f32 %v11097_v44, %v2378_v11  ;;  %v2377_v49 = vmul.f32 %v2345_v48, %v8762_v30  ;;  %v4499_v36 = vmul.f32 %v4467_v26, %v8724_v31  ;;  %v3141_v37 = vmul.f32 %v3109_v8, %v8731_v55  ;;  %v11099_v55 = vld [vmem:[#allocation66_spill] sm:$0xff] }
 0x1a3   : > { %6478 = vmatmul.mubr.msk.f32.gmra.mxu0 %vm1789_vm1, %v8775_v4  ;;  %6539 = vmatprep.mubr.msk.f32.mxu1 %vm1789_vm1, %v4497_v59  ;;  %6845 = vtanh.f32 %v3049_v20  ;;  %v4312_v28 = vmul.f32 %v4280_v51, %v8460_v61  ;;  %v3018_v60 = vadd.f32 %v2986_v10, %v11096_v13  ;;  %v2955_v4 = vmul.f32 %v2923_v9, %v11098_v2 }
 0x1a4   : > { %6480 = vmatprep.mubr.msk.f32.mxu0 %vm1789_vm1, %v8778_v58  ;;  %v2468_v30 = vsel %vm1789_vm1, %v2414_v32, 0.0  ;;  %v2413_v34 = vmul.f32 %v11097_v44, %v2377_v49  ;;  %v3110_v46 = vadd.f32 1.0, %v6832_v47  ;;  %v2924_v59 = vmul.f32 0.044715, %v11099_v55 }
 0x1a5   : > { %v6834_v56 = vpop.eup %6833  ;;  %2469 = vadd.xlane.f32.xlu1 %v2468_v30  ;;  %v4344_v31 = vmul.f32 %v4312_v28, %v8460_v61  ;;  %v2925_v7 = vmul.f32 0.044715, %v11100_v17  ;;  %v3050_v1 = vmul.f32 0.7978846, %v3018_v60  ;;  %v2987_v50 = vmul.f32 %v2955_v4, %v11098_v2 }
 0x1a6   : > { %6540 = vmatmul.mubr.msk.f32.gmra.mxu1 %vm1789_vm1, %v4498_v52  ;;  %v2465_v58 = vsel %vm1789_vm1, %v2413_v34, 0.0  ;;  %v4468_v29 = vadd.f32 1.0, %v6834_v56  ;;  %v8890_v22 = vmul.f32 0.5, %v11095_v23  ;;  %v2956_v14 = vmul.f32 %v2924_v59, %v11099_v55 }
 0x1a7   : > { %6481 = vmatmul.mubr.msk.f32.gmra.mxu0 %vm1789_vm1, %v8828_v35  ;;  %2466 = vadd.xlane.f32.xlu0 %v2465_v58  ;;  %v4376_v63 = vadd.f32 %v4344_v31, %v8460_v61  ;;  %v2957_v0 = vmul.f32 %v2925_v7, %v11100_v17  ;;  %6847 = vtanh.f32 %v3050_v1  ;;  %v3019_v35 = vadd.f32 %v2987_v50, %v11098_v2 }
 0x1a8   : > { %v6836_v54 = vpop.eup %6835  ;;  %6483 = vmatprep.mubr.msk.f32.mxu0 %vm1789_vm1, %v3140_v53  ;;  %6542 = vmatprep.mubr.msk.f32.mxu1 %vm1789_vm1, %v4499_v36  ;;  %v4500_v5 = vmul.f32 %v4468_v29, %v8769_v15  ;;  %v2926_v40 = vmul.f32 0.044715, %v11101_v62  ;;  %v2988_v42 = vmul.f32 %v2956_v14, %v11099_v55  ;;  %v3142_v43 = vmul.f32 %v3110_v46, %v8734_v39 }
 0x1a9   : > { %v4469_v23 = vadd.f32 1.0, %v6836_v54  ;;  %v4408_v27 = vmul.f32 0.7978846, %v4376_v63  ;;  %v2989_v3 = vmul.f32 %v2957_v0, %v11100_v17  ;;  %v3051_v21 = vmul.f32 0.7978846, %v3019_v35 }
 0x1aa   : > { %v6838_v25 = vpop.eup %6837  ;;  %6543 = vmatmul.mubr.msk.f32.gmra.mxu1 %vm1789_vm1, %v4500_v5  ;;  %v2958_v18 = vmul.f32 %v2926_v40, %v11101_v62  ;;  %v2927_v15 = vmul.f32 0.044715, %v8449_v38  ;;  %v3020_v24 = vadd.f32 %v2988_v42, %v11099_v55  ;;  %v2890_v7 = vmul.f32 0.5, %v11096_v13 }
 0x1ab   : > { %v6840_v41 = vpop.eup %6839  ;;  %6484 = vmatmul.mubr.msk.f32.gmra.mxu0 %vm1789_vm1, %v3141_v37  ;;  %v4501_v26 = vmul.f32 %v4469_v23, %v8795_v57  ;;  %v3111_v8 = vadd.f32 1.0, %v6838_v25  ;;  %6849 = vtanh.f32 %v4408_v27  ;;  %v3021_v19 = vadd.f32 %v2989_v3, %v11100_v17 }
 0x1ac   : > { %v6842_v11 = vpop.eup %6841  ;;  %v6423_v48 = vpop.f32.mrf.mxu1  ;;  %6486 = vmatprep.mubr.msk.f32.mxu0 %vm1789_vm1, %v3142_v43  ;;  %v3112_v39 = vadd.f32 1.0, %v6840_v41  ;;  %6851 = vtanh.f32 %v3051_v21  ;;  %v2990_v53 = vmul.f32 %v2958_v18, %v11101_v62  ;;  %v3052_v47 = vmul.f32 0.7978846, %v3020_v24 }
 0x1ad   : > { %v6844_v52 = vpop.eup %6843  ;;  %v8913_v20 = vadd.f32 %v6423_v48, %v11082_v45  ;;  %6545 = vmatprep.mubr.msk.f32.mxu1 %vm1789_vm1, %v4501_v26  ;;  %v3143_v57 = vmul.f32 %v3111_v8, %v8811_v33  ;;  %v4470_v51 = vadd.f32 1.0, %v6842_v11  ;;  %v3053_v9 = vmul.f32 0.7978846, %v3021_v19 }
 0x1ae   : > { %v2012_v32 = vpop.f32.mrf.mxu1  ;;  %v3144_v49 = vmul.f32 %v3112_v39, %v8823_v6  ;;  %v4471_v10 = vadd.f32 1.0, %v6844_v52  ;;  %v3022_v36 = vadd.f32 %v2990_v53, %v11101_v62  ;;  %6853 = vtanh.f32 %v3052_v47 }
 0x1af   : > { %v2156_v37 = vmul.f32 0.044715, %v8913_v20  ;;  %v8921_v28 = vadd.f32 %v2012_v32, %v11082_v45  ;;  %6487 = vmatmul.mubr.msk.f32.gmra.mxu0 %vm1789_vm1, %v3143_v57  ;;  %v4502_v30 = vmul.f32 %v4470_v51, %v8838_v12  ;;  %6855 = vtanh.f32 %v3053_v9  ;;  %s6574_s10 = spop %6573 }
 0x1b0   : > { %v6846_v33 = vpop.eup %6845  ;;  %6489 = vmatprep.mubr.msk.f32.mxu0 %vm1789_vm1, %v3144_v49  ;;  %v4503_v34 = vmul.f32 %v4471_v10, %v8844_v16  ;;  %v3054_v6 = vmul.f32 0.7978846, %v3022_v36  ;;  %v2959_v60 = vmul.f32 %v2927_v15, %v8449_v38  ;;  %v2891_v35 = vmul.f32 0.5, %v11098_v2 }
 0x1b1   : > { %v2188_v4 = vmul.f32 %v2156_v37, %v8913_v20  ;;  %v2155_v56 = vmul.f32 0.044715, %v8921_v28  ;;  %6546 = vmatmul.mubr.msk.f32.gmra.mxu1 %vm1789_vm1, %v4502_v30  ;;  %v3113_v46 = vadd.f32 1.0, %v6846_v33  ;;  %v4248_v23 = vmul.f32 0.5, %v8460_v61 }
 0x1b2   : > { %6548 = vmatprep.mubr.msk.f32.mxu1 %vm1789_vm1, %v4503_v34  ;;  %6857 = vtanh.f32 %v3054_v6  ;;  %v2991_v12 = vmul.f32 %v2959_v60, %v8449_v38  ;;  %v2892_v18 = vmul.f32 0.5, %v11099_v55  ;;  %v2893_v26 = vmul.f32 0.5, %v11100_v17 }
 0x1b3   : > { %v2187_v31 = vmul.f32 %v2155_v56, %v8921_v28  ;;  %v3145_v16 = vmul.f32 %v3113_v46, %v8890_v22  ;;  %v2220_v59 = vmul.f32 %v2188_v4, %v8913_v20  ;;  %v2894_v10 = vmul.f32 0.5, %v11101_v62 }
 0x1b4   : > { %v3023_v58 = vadd.f32 %v2991_v12, %v8449_v38  ;;  %v6848_v29 = vpop.eup %6847  ;;  %v2895_v46 = vmul.f32 0.5, %v8449_v38 }
 0x1b5   : > { %6490 = vmatmul.mubr.msk.f32.gmra.mxu0 %vm1789_vm1, %v3145_v16  ;;  %v2252_v1 = vadd.f32 %v2220_v59, %v8913_v20  ;;  %v2219_v50 = vmul.f32 %v2187_v31, %v8921_v28  ;;  %v3114_v63 = vadd.f32 1.0, %v6848_v29 }
 0x1b6   : > { %v3055_v14 = vmul.f32 0.7978846, %v3023_v58 }
 0x1b7   : > { %v2284_v0 = vmul.f32 0.7978846, %v2252_v1  ;;  %v2251_v54 = vadd.f32 %v2219_v50, %v8921_v28  ;;  %v3146_v22 = vmul.f32 %v3114_v63, %v2890_v7  ;;  %v2124_v7 = vmul.f32 0.5, %v8913_v20 }
 0x1b8   : > { %v6850_v5 = vpop.eup %6849  ;;  %6859 = vtanh.f32 %v3055_v14 }
 0x1b9   : > { %v6852_v13 = vpop.eup %6851  ;;  %v6426_v40 = vpop.f32.mrf.mxu1  ;;  %v4472_v27 = vadd.f32 1.0, %v6850_v5  ;;  %6861 = vtanh.f32 %v2284_v0  ;;  %v2283_v42 = vmul.f32 0.7978846, %v2251_v54  ;;  %6492 = vmatprep.mubr.msk.f32.mxu0 %vm1789_vm1, %v3146_v22 }
 0x1ba   : > { %v8945_v3 = vadd.f32 %v6426_v40, %v11082_v45  ;;  %v3115_v25 = vadd.f32 1.0, %v6852_v13 }
 0x1bb   : > { %v2022_v43 = vpop.f32.mrf.mxu1  ;;  %v4504_v21 = vmul.f32 %v4472_v27, %v4248_v23  ;;  %6863 = vtanh.f32 %v2283_v42  ;;  %v6854_v2 = vpop.eup %6853  ;;  %v2123_v23 = vmul.f32 0.5, %v8921_v28 }
 0x1bc   : > { %v2158_v15 = vmul.f32 0.044715, %v8945_v3  ;;  %v8951_v41 = vadd.f32 %v2022_v43, %v11082_v45  ;;  %v3147_v61 = vmul.f32 %v3115_v25, %v2891_v35  ;;  %v6856_v8 = vpop.eup %6855  ;;  %v3116_v11 = vadd.f32 1.0, %v6854_v2 }
 0x1bd   : > { %v6429_v24 = vpop.f32.mrf.mxu1  ;;  %6549 = vmatmul.mubr.msk.f32.gmra.mxu1 %vm1789_vm1, %v4504_v21  ;;  %v3117_v19 = vadd.f32 1.0, %v6856_v8 }
 0x1be   : > { %v2190_v48 = vmul.f32 %v2158_v15, %v8945_v3  ;;  %v2157_v39 = vmul.f32 0.044715, %v8951_v41  ;;  %v8958_v55 = vadd.f32 %v6429_v24, %v11082_v45  ;;  %6493 = vmatmul.mubr.msk.f32.gmra.mxu0 %vm1789_vm1, %v3147_v61  ;;  %v3148_v57 = vmul.f32 %v3116_v11, %v2892_v18 }
 0x1bf   : > { %v6858_v53 = vpop.eup %6857  ;;  %v2032_v52 = vpop.f32.mrf.mxu1  ;;  %v3149_v32 = vmul.f32 %v3117_v19, %v2893_v26 }
 0x1c0   : > { %v2189_v17 = vmul.f32 %v2157_v39, %v8951_v41  ;;  %v2160_v51 = vmul.f32 0.044715, %v8958_v55  ;;  %v8964_v47 = vadd.f32 %v2032_v52, %v11082_v45  ;;  %6495 = vmatprep.mubr.msk.f32.mxu0 %vm1789_vm1, %v3148_v57  ;;  %v3118_v9 = vadd.f32 1.0, %v6858_v53 }
 0x1c1   : > { %v6432_v49 = vpop.f32.mrf.mxu1  ;;  %v2222_v36 = vmul.f32 %v2190_v48, %v8945_v3 }
 0x1c2   : > { %v2192_v37 = vmul.f32 %v2160_v51, %v8958_v55  ;;  %v2159_v30 = vmul.f32 0.044715, %v8964_v47  ;;  %v8972_v33 = vadd.f32 %v6432_v49, %v11082_v45  ;;  %6496 = vmatmul.mubr.msk.f32.gmra.mxu0 %vm1789_vm1, %v3149_v32  ;;  %v2221_v34 = vmul.f32 %v2189_v17, %v8951_v41 }
 0x1c3   : > { %v2042_v6 = vpop.f32.mrf.mxu1  ;;  %v3150_v60 = vmul.f32 %v3118_v9, %v2894_v10  ;;  %v2254_v4 = vadd.f32 %v2222_v36, %v8945_v3 }
 0x1c4   : > { %v2162_v62 = vmul.f32 0.044715, %v8972_v33  ;;  %v8979_v56 = vadd.f32 %v2042_v6, %v11082_v45  ;;  %v2253_v12 = vadd.f32 %v2221_v34, %v8951_v41  ;;  %v2191_v16 = vmul.f32 %v2159_v30, %v8964_v47 }
 0x1c5   : > { %v6860_v31 = vpop.eup %6859  ;;  %v6435_v59 = vpop.f32.mrf.mxu1  ;;  %6498 = vmatprep.mubr.msk.f32.mxu0 %vm1789_vm1, %v3150_v60  ;;  %v2286_v58 = vmul.f32 0.7978846, %v2254_v4  ;;  %v2224_v29 = vmul.f32 %v2192_v37, %v8958_v55 }
 0x1c6   : > { %v6862_v1 = vpop.eup %6861  ;;  %v2194_v50 = vmul.f32 %v2162_v62, %v8972_v33  ;;  %v2161_v63 = vmul.f32 0.044715, %v8979_v56  ;;  %v8990_v38 = vadd.f32 %v6435_v59, %v11082_v45  ;;  %v3119_v14 = vadd.f32 1.0, %v6860_v31 }
 0x1c7   : > { %v2052_v0 = vpop.f32.mrf.mxu1  ;;  %v2348_v54 = vadd.f32 1.0, %v6862_v1  ;;  %6865 = vtanh.f32 %v2286_v58  ;;  %v2285_v5 = vmul.f32 0.7978846, %v2253_v12  ;;  %v2256_v22 = vadd.f32 %v2224_v29, %v8958_v55 }
 0x1c8   : > { %v6864_v35 = vpop.eup %6863  ;;  %v2164_v20 = vmul.f32 0.044715, %v8990_v38  ;;  %v8995_v13 = vadd.f32 %v2052_v0, %v11082_v45  ;;  %v3151_v40 = vmul.f32 %v3119_v14, %v2895_v46  ;;  %v2193_v21 = vmul.f32 %v2161_v63, %v8979_v56 }
 0x1c9   : > { %v6438_v27 = vpop.f32.mrf.mxu1  ;;  %v2380_v42 = vmul.f32 %v2348_v54, %v2124_v7  ;;  %v2347_v25 = vadd.f32 1.0, %v6864_v35  ;;  %6867 = vtanh.f32 %v2285_v5  ;;  %v2288_v43 = vmul.f32 0.7978846, %v2256_v22 }
 0x1ca   : > { %v2163_v18 = vmul.f32 0.044715, %v8995_v13  ;;  %v9001_v2 = vadd.f32 %v6438_v27, %v11082_v45  ;;  %6499 = vmatmul.mubr.msk.f32.gmra.mxu0 %vm1789_vm1, %v3151_v40  ;;  %v2223_v15 = vmul.f32 %v2191_v16, %v8964_v47  ;;  %v2226_v8 = vmul.f32 %v2194_v50, %v8972_v33 }
 0x1cb   : > { %v2062_v61 = vpop.f32.mrf.mxu1  ;;  %v2416_v26 = vmul.f32 %v11097_v44, %v2380_v42  ;;  %v2379_v28 = vmul.f32 %v2347_v25, %v2123_v23  ;;  %6869 = vtanh.f32 %v2288_v43  ;;  %v2196_v39 = vmul.f32 %v2164_v20, %v8990_v38 }
 0x1cc   : > { %v2166_v24 = vmul.f32 0.044715, %v9001_v2  ;;  %v9009_v11 = vadd.f32 %v2062_v61, %v11082_v45  ;;  %v2255_v48 = vadd.f32 %v2223_v15, %v8964_v47  ;;  %v2258_v57 = vadd.f32 %v2226_v8, %v8972_v33 }
 0x1cd   : > { %v6441_v19 = vpop.f32.mrf.mxu1  ;;  %v2474_v53 = vsel %vm1789_vm1, %v2416_v26, 0.0  ;;  %v2415_v52 = vmul.f32 %v11097_v44, %v2379_v28  ;;  %v2195_v17 = vmul.f32 %v2163_v18, %v8995_v13  ;;  %v2225_v30 = vmul.f32 %v2193_v21, %v8979_v56 }
 0x1ce   : > { %v2165_v51 = vmul.f32 0.044715, %v9009_v11  ;;  %v9019_v32 = vadd.f32 %v6441_v19, %v11082_v45  ;;  %2475 = vadd.xlane.f32.xlu1 %v2474_v53  ;;  %v2287_v49 = vmul.f32 0.7978846, %v2255_v48  ;;  %v2198_v10 = vmul.f32 %v2166_v24, %v9001_v2 }
 0x1cf   : > { %v2072_v9 = vpop.f32.mrf.mxu1  ;;  %v2471_v36 = vsel %vm1789_vm1, %v2415_v52, 0.0  ;;  %v2290_v37 = vmul.f32 0.7978846, %v2258_v57  ;;  %v2257_v4 = vadd.f32 %v2225_v30, %v8979_v56  ;;  %v2228_v62 = vmul.f32 %v2196_v39, %v8990_v38 }
 0x1d0   : > { %v2197_v34 = vmul.f32 %v2165_v51, %v9009_v11  ;;  %v2168_v6 = vmul.f32 0.044715, %v9019_v32  ;;  %2472 = vadd.xlane.f32.xlu0 %v2471_v36  ;;  %6871 = vtanh.f32 %v2287_v49  ;;  %v9027_v60 = vadd.f32 %v2072_v9, %v11082_v45 }
 0x1d1   : > { %6873 = vtanh.f32 %v2290_v37  ;;  %v2126_v12 = vmul.f32 0.5, %v8945_v3  ;;  %v2125_v31 = vmul.f32 0.5, %v8951_v41  ;;  %v2227_v16 = vmul.f32 %v2195_v17, %v8995_v13 }
 0x1d2   : > { %v6444_v46 = vpop.f32.mrf.mxu1  ;;  %v2289_v7 = vmul.f32 0.7978846, %v2257_v4  ;;  %v2260_v58 = vadd.f32 %v2228_v62, %v8990_v38  ;;  %v2230_v29 = vmul.f32 %v2198_v10, %v9001_v2  ;;  %v2200_v50 = vmul.f32 %v2168_v6, %v9019_v32 }
 0x1d3   : > { %v9035_v59 = vadd.f32 %v6444_v46, %v11082_v45  ;;  %v2128_v14 = vmul.f32 0.5, %v8958_v55  ;;  %v2259_v3 = vadd.f32 %v2227_v16, %v8995_v13  ;;  %v2229_v41 = vmul.f32 %v2197_v34, %v9009_v11 }
 0x1d4   : > { %v6866_v1 = vpop.eup %6865  ;;  %v2082_v63 = vpop.f32.mrf.mxu1  ;;  %v2167_v0 = vmul.f32 0.044715, %v9027_v60  ;;  %6875 = vtanh.f32 %v2289_v7  ;;  %v2292_v20 = vmul.f32 0.7978846, %v2260_v58  ;;  %v2262_v23 = vadd.f32 %v2230_v29, %v9001_v2 }
 0x1d5   : > { %v9045_v54 = vadd.f32 %v2082_v63, %v11082_v45  ;;  %v2350_v5 = vadd.f32 1.0, %v6866_v1  ;;  %v2291_v40 = vmul.f32 0.7978846, %v2259_v3  ;;  %v2261_v27 = vadd.f32 %v2229_v41, %v9009_v11 }
 0x1d6   : > { %v6868_v22 = vpop.eup %6867  ;;  %v6447_v35 = vpop.f32.mrf.mxu1  ;;  %v2170_v55 = vmul.f32 0.044715, %v9035_v59  ;;  %6877 = vtanh.f32 %v2292_v20  ;;  %v2294_v61 = vmul.f32 0.7978846, %v2262_v23  ;;  %v2199_v28 = vmul.f32 %v2167_v0, %v9027_v60 }
 0x1d7   : > { %v2169_v42 = vmul.f32 0.044715, %v9045_v54  ;;  %v2382_v25 = vmul.f32 %v2350_v5, %v2126_v12  ;;  %v9052_v43 = vadd.f32 %v6447_v35, %v11082_v45  ;;  %v2349_v18 = vadd.f32 1.0, %v6868_v22 }
 0x1d8   : > { %v6870_v21 = vpop.eup %6869  ;;  %v2092_v15 = vpop.f32.mrf.mxu1  ;;  %v2293_v26 = vmul.f32 0.7978846, %v2261_v27  ;;  %v2127_v53 = vmul.f32 0.5, %v8964_v47  ;;  %6879 = vtanh.f32 %v2291_v40  ;;  %v2202_v52 = vmul.f32 %v2170_v55, %v9035_v59 }
 0x1d9   : > { %v2418_v8 = vmul.f32 %v11097_v44, %v2382_v25  ;;  %v2172_v24 = vmul.f32 0.044715, %v9052_v43  ;;  %v9058_v48 = vadd.f32 %v2092_v15, %v11082_v45  ;;  %v2381_v39 = vmul.f32 %v2349_v18, %v2125_v31 }
 0x1da   : > { %v2352_v19 = vadd.f32 1.0, %v6870_v21  ;;  %v2201_v57 = vmul.f32 %v2169_v42, %v9045_v54  ;;  %6881 = vtanh.f32 %v2294_v61  ;;  %v2232_v10 = vmul.f32 %v2200_v50, %v9019_v32 }
 0x1db   : > { %v2480_v17 = vsel %vm1789_vm1, %v2418_v8, 0.0  ;;  %v2417_v51 = vmul.f32 %v11097_v44, %v2381_v39  ;;  %6883 = vtanh.f32 %v2293_v26  ;;  %v2204_v36 = vmul.f32 %v2172_v24, %v9052_v43 }
 0x1dc   : > { %2481 = vadd.xlane.f32.xlu1 %v2480_v17  ;;  %v2384_v49 = vmul.f32 %v2352_v19, %v2128_v14  ;;  %v2171_v47 = vmul.f32 0.044715, %v9058_v48  ;;  %v2130_v37 = vmul.f32 0.5, %v8972_v33  ;;  %v2231_v30 = vmul.f32 %v2199_v28, %v9027_v60 }
 0x1dd   : > { %v6872_v9 = vpop.eup %6871  ;;  %v2477_v6 = vsel %vm1789_vm1, %v2417_v51, 0.0  ;;  %v2264_v46 = vadd.f32 %v2232_v10, %v9019_v32  ;;  %v2129_v31 = vmul.f32 0.5, %v8979_v56  ;;  %v2234_v7 = vmul.f32 %v2202_v52, %v9035_v59 }
 0x1de   : > { %v6874_v34 = vpop.eup %6873  ;;  %v2420_v4 = vmul.f32 %v11097_v44, %v2384_v49  ;;  %v2351_v62 = vadd.f32 1.0, %v6872_v9  ;;  %2478 = vadd.xlane.f32.xlu0 %v2477_v6  ;;  %v2263_v16 = vadd.f32 %v2231_v30, %v9027_v60  ;;  %v2233_v1 = vmul.f32 %v2201_v57, %v9045_v54 }
 0x1df   : > { %v2354_v12 = vadd.f32 1.0, %v6874_v34  ;;  %v2296_v29 = vmul.f32 0.7978846, %v2264_v46  ;;  %v2203_v50 = vmul.f32 %v2171_v47, %v9058_v48  ;;  %v2266_v3 = vadd.f32 %v2234_v7, %v9035_v59 }
 0x1e0   : > { %v2486_v33 = vsel %vm1789_vm1, %v2420_v4, 0.0  ;;  %v2383_v58 = vmul.f32 %v2351_v62, %v2127_v53  ;;  %v2295_v14 = vmul.f32 0.7978846, %v2263_v16  ;;  %v2265_v0 = vadd.f32 %v2233_v1, %v9045_v54 }
 0x1e1   : > { %2487 = vadd.xlane.f32.xlu1 %v2486_v33  ;;  %v2386_v63 = vmul.f32 %v2354_v12, %v2130_v37  ;;  %v6876_v41 = vpop.eup %6875  ;;  %6885 = vtanh.f32 %v2296_v29  ;;  %v2236_v5 = vmul.f32 %v2204_v36, %v9052_v43  ;;  %v2298_v20 = vmul.f32 0.7978846, %v2266_v3 }
 0x1e2   : > { %v2419_v56 = vmul.f32 %v11097_v44, %v2383_v58  ;;  %v2353_v35 = vadd.f32 1.0, %v6876_v41  ;;  %6887 = vtanh.f32 %v2295_v14  ;;  %v2297_v23 = vmul.f32 0.7978846, %v2265_v0 }
 0x1e3   : > { %v2422_v22 = vmul.f32 %v11097_v44, %v2386_v63  ;;  %v2268_v27 = vadd.f32 %v2236_v5, %v9052_v43  ;;  %v6878_v55 = vpop.eup %6877  ;;  %6889 = vtanh.f32 %v2298_v20  ;;  %v2235_v21 = vmul.f32 %v2203_v50, %v9058_v48 }
 0x1e4   : > { %v2483_v40 = vsel %vm1789_vm1, %v2419_v56, 0.0  ;;  %v2385_v25 = vmul.f32 %v2353_v35, %v2129_v31  ;;  %v2132_v18 = vmul.f32 0.5, %v8990_v38  ;;  %v2356_v15 = vadd.f32 1.0, %v6878_v55 }
 0x1e5   : > { %2484 = vadd.xlane.f32.xlu0 %v2483_v40  ;;  %v2492_v42 = vsel %vm1789_vm1, %v2422_v22, 0.0  ;;  %6891 = vtanh.f32 %v2297_v23  ;;  %v2300_v61 = vmul.f32 0.7978846, %v2268_v27  ;;  %v6880_v26 = vpop.eup %6879  ;;  %v2267_v8 = vadd.f32 %v2235_v21, %v9058_v48 }
 0x1e6   : > { %2493 = vadd.xlane.f32.xlu1 %v2492_v42  ;;  %v2421_v28 = vmul.f32 %v11097_v44, %v2385_v25  ;;  %v2388_v39 = vmul.f32 %v2356_v15, %v2132_v18  ;;  %v2131_v19 = vmul.f32 0.5, %v8995_v13  ;;  %v2355_v53 = vadd.f32 1.0, %v6880_v26 }
 0x1e7   : > { %v6882_v24 = vpop.eup %6881  ;;  %6893 = vtanh.f32 %v2300_v61  ;;  %v2134_v17 = vmul.f32 0.5, %v9001_v2  ;;  %v2299_v51 = vmul.f32 0.7978846, %v2267_v8  ;;  %v2133_v9 = vmul.f32 0.5, %v9009_v11 }
 0x1e8   : > { %v6884_v52 = vpop.eup %6883  ;;  %v2489_v57 = vsel %vm1789_vm1, %v2421_v28, 0.0  ;;  %v2358_v38 = vadd.f32 1.0, %v6882_v24  ;;  %v2424_v49 = vmul.f32 %v11097_v44, %v2388_v39  ;;  %v2387_v10 = vmul.f32 %v2355_v53, %v2131_v19 }
 0x1e9   : > { %2490 = vadd.xlane.f32.xlu0 %v2489_v57  ;;  %v2357_v36 = vadd.f32 1.0, %v6884_v52  ;;  %6895 = vtanh.f32 %v2299_v51  ;;  %v2136_v12 = vmul.f32 0.5, %v9019_v32  ;;  %v2135_v16 = vmul.f32 0.5, %v9027_v60 }
 0x1ea   : > { %v2390_v47 = vmul.f32 %v2358_v38, %v2134_v17  ;;  %v2498_v13 = vsel %vm1789_vm1, %v2424_v49, 0.0  ;;  %v2423_v37 = vmul.f32 %v11097_v44, %v2387_v10  ;;  %v2138_v33 = vmul.f32 0.5, %v9035_v59  ;;  %v7059_v10 = vld [vmem:[%s7469_s0] sm:$0x7] }
 0x1eb   : > { %v2389_v30 = vmul.f32 %v2357_v36, %v2133_v9  ;;  %2499 = vadd.xlane.f32.xlu1 %v2498_v13  ;;  %v2137_v3 = vmul.f32 0.5, %v9045_v54  ;;  %v2140_v32 = vmul.f32 0.5, %v9052_v43  ;;  %v2139_v27 = vmul.f32 0.5, %v9058_v48  ;;  %v11106_v9 = vld [vmem:[#allocation18_spill] sm:$0xff] }
 0x1ec   : > { %v2426_v34 = vmul.f32 %v11097_v44, %v2390_v47  ;;  %v2495_v2 = vsel %vm1789_vm1, %v2423_v37, 0.0  ;;  %v9130_v57 = vstv %s6574_s10  ;;  %v9137_v36 = vrot.slane %v7059_v10, %v11106_v9 }
 0x1ed   : > { %v2425_v6 = vmul.f32 %v11097_v44, %v2389_v30  ;;  %2496 = vadd.xlane.f32.xlu0 %v2495_v2 }
 0x1ee   : > { %v6886_v4 = vpop.eup %6885  ;;  %v2504_v62 = vsel %vm1789_vm1, %v2426_v34, 0.0 }
 0x1ef   : > { %v6888_v11 = vpop.eup %6887  ;;  %v2501_v46 = vsel %vm1789_vm1, %v2425_v6, 0.0  ;;  %v2360_v31 = vadd.f32 1.0, %v6886_v4  ;;  %2505 = vadd.xlane.f32.xlu1 %v2504_v62  ;;  %v11110_v4 = vld [vmem:[#allocation17_spill] sm:$0xff] }
 0x1f0   : > { %v2359_v7 = vadd.f32 1.0, %v6888_v11  ;;  %v6890_v58 = vpop.eup %6889  ;;  %v9151_v62 = vrot.slane %v7059_v10, %v11110_v4 }
 0x1f1   : > { %v2392_v29 = vmul.f32 %v2360_v31, %v2136_v12  ;;  %2502 = vadd.xlane.f32.xlu0 %v2501_v46  ;;  %v2362_v63 = vadd.f32 1.0, %v6890_v58  ;;  %v7060_v31 = vld [vmem:[%s7475_s28] sm:$0x7] }
 0x1f2   : > { %v6892_v1 = vpop.eup %6891  ;;  %v2391_v50 = vmul.f32 %v2359_v7, %v2135_v16  ;;  %v9156_v16 = vrot.slane %v7060_v31, %v11110_v4  ;;  %v9159_v7 = vrot.slane %v7060_v31, %v11106_v9 }
 0x1f3   : > { %v2428_v14 = vmul.f32 %v11097_v44, %v2392_v29  ;;  %v2361_v41 = vadd.f32 1.0, %v6892_v1  ;;  %v2394_v60 = vmul.f32 %v2362_v63, %v2138_v33 }
 0x1f4   : > { %v6894_v56 = vpop.eup %6893  ;;  %v2427_v0 = vmul.f32 %v11097_v44, %v2391_v50  ;;  %11111 = vst [vmem:[#allocation24_spill] sm:$0xff] %v9156_v16 }
 0x1f5   : > { %v2510_v5 = vsel %vm1789_vm1, %v2428_v14, 0.0  ;;  %v2393_v59 = vmul.f32 %v2361_v41, %v2137_v3  ;;  %v2364_v22 = vadd.f32 1.0, %v6894_v56  ;;  %v2430_v20 = vmul.f32 %v11097_v44, %v2394_v60 }
 0x1f6   : > { %2511 = vadd.xlane.f32.xlu1 %v2510_v5  ;;  %v2507_v35 = vsel %vm1789_vm1, %v2427_v0, 0.0  ;;  %v6896_v40 = vpop.eup %6895  ;;  %v11115_v0 = vld [vmem:[#allocation14_spill] sm:$0xff] }
 0x1f7   : > { %2508 = vadd.xlane.f32.xlu0 %v2507_v35  ;;  %v2429_v54 = vmul.f32 %v11097_v44, %v2393_v59  ;;  %v2396_v23 = vmul.f32 %v2364_v22, %v2140_v32  ;;  %v2516_v43 = vsel %vm1789_vm1, %v2430_v20, 0.0  ;;  %v2363_v55 = vadd.f32 1.0, %v6896_v40  ;;  %v11114_v32 = vld [vmem:[#allocation15_spill] sm:$0xff] }
 0x1f9   : > { %v2513_v42 = vsel %vm1789_vm1, %v2429_v54, 0.0  ;;  %v2432_v25 = vmul.f32 %v11097_v44, %v2396_v23  ;;  %v2395_v21 = vmul.f32 %v2363_v55, %v2139_v27 }
 0x1fa   : > { %2517 = vadd.xlane.f32.xlu1 %v2516_v43 }
 0x1fb   : > { %2514 = vadd.xlane.f32.xlu0 %v2513_v42  ;;  %v2522_v18 = vsel %vm1789_vm1, %v2432_v25, 0.0  ;;  %v2431_v15 = vmul.f32 %v11097_v44, %v2395_v21  ;;  %v9123_v48 = vpop.xlane.xlu1 %1231 }
 0x1fc   : > { %11102 = vst [vmem:[#allocation23_spill] sm:$0xff] %v9123_v48 }
 0x1fd   : > { %v2519_v61 = vsel %vm1789_vm1, %v2431_v15, 0.0 }
 0x1fe   : > { %2523 = vadd.xlane.f32.xlu1 %v2522_v18 }
 0x1ff   : > { %2520 = vadd.xlane.f32.xlu0 %v2519_v61  ;;  %v9125_v24 = vpop.xlane.xlu0 %1228 }
 0x200   : > { %11103 = vst [vmem:[#allocation42_spill] sm:$0xff] %v9125_v24 }
 0x223   : > { %v6378_v26 = vpop.f32.mrf.mxu0 }
 0x225   : > { %v1047_v28 = vpop.f32.mrf.mxu0 }
 0x226   : > { %6555 = vmatprep.mubr.msk.f32.mxu0 %vm1789_vm1, %v1047_v28 }
 0x227   : > { %6556 = vmatmul.mubr.msk.f32.vlgmr.msra.gmra.mxu0 %vm1789_vm1, %v6378_v26 }
 0x22b   : > { %v6400_v8 = vpop.f32.mrf.mxu0 }
 0x22c   : > { %6558 = vmatprep.subr.mxu0 %v6400_v8 }
 0x22d   : > { %v1217_v39 = vpop.f32.mrf.mxu0  ;;  %6559 = vmatpush3.msra.mxu0 %v6400_v8 }
 0x22e   : > { %6560 = vmatprep.subr.mxu0 %v1217_v39  ;;  %v2470_v52 = vpop.xlane.xlu1 %2469 }
 0x22f   : > { %v6405_v19 = vpop.f32.mrf.mxu0  ;;  %6561 = vmatpush3.msra.mxu0 %v1217_v39  ;;  %v9142_v30 = vadd.f32 %v9130_v57, %v2470_v52 }
 0x230   : > { %v9128_v53 = vadd.f32 %v6405_v19, %v11082_v45  ;;  %v2467_v38 = vpop.xlane.xlu0 %2466 }
 0x231   : > { %v1952_v17 = vpop.f32.mrf.mxu0  ;;  %11107 = vst [vmem:[#allocation38_spill] sm:$0xff] %v9142_v30  ;;  %v9145_v34 = vadd.f32 %v9130_v57, %v2467_v38 }
 0x232   : > { %11104 = vst [vmem:[#allocation34_spill] sm:$0xff] %v9128_v53  ;;  %v9133_v51 = vadd.f32 %v1952_v17, %v11082_v45  ;;  %v6450_v49 = vpop.f32.mrf.mxu1  ;;  %v2144_v37 = vmul.f32 0.044715, %v9128_v53 }
 0x233   : > { %v6408_v47 = vpop.f32.mrf.mxu0  ;;  %v2108_v13 = vadd.f32 %v6450_v49, %v11082_v45  ;;  %11108 = vst [vmem:[#allocation31_spill] sm:$0xff] %v9145_v34 }
 0x234   : > { %11105 = vst [vmem:[#allocation28_spill] sm:$0xff] %v9133_v51  ;;  %v9148_v2 = vadd.f32 %v6408_v47, %v11082_v45  ;;  %v2102_v6 = vpop.f32.mrf.mxu1  ;;  %v2143_v33 = vmul.f32 0.044715, %v9133_v51  ;;  %v9170_v41 = vmul.f32 %v2144_v37, %v9128_v53 }
 0x235   : > { %v2174_v11 = vmul.f32 0.044715, %v2108_v13  ;;  %v1962_v46 = vpop.f32.mrf.mxu0  ;;  %v2103_v12 = vadd.f32 %v2102_v6, %v11082_v45  ;;  %v9182_v40 = vmul.f32 0.5, %v2108_v13 }
 0x236   : > { %11109 = vst [vmem:[#allocation35_spill] sm:$0xff] %v9148_v2  ;;  %v2146_v58 = vmul.f32 0.044715, %v9148_v2  ;;  %v6505_v29 = vpop.f32.mrf.mxu1  ;;  %v9164_v50 = vadd.f32 %v1962_v46, %v11082_v45  ;;  %11113 = vst [vmem:[#allocation41_spill] sm:$0xff] %v9170_v41  ;;  %v9185_v23 = vmul.f32 %v2143_v33, %v9133_v51 }
 0x237   : > { %v2206_v1 = vmul.f32 %v2174_v11, %v2108_v13  ;;  %v2173_v63 = vmul.f32 0.044715, %v2103_v12  ;;  %v6411_v14 = vpop.f32.mrf.mxu0  ;;  %v9167_v3 = vadd.f32 %v6505_v29, %v9137_v36  ;;  %v9214_v11 = vmul.f32 0.5, %v2103_v12 }
 0x238   : > { %11112 = vst [vmem:[#allocation26_spill] sm:$0xff] %v9164_v50  ;;  %v9177_v5 = vadd.f32 %v6411_v14, %v11082_v45  ;;  %v4671_v59 = vpop.f32.mrf.mxu1  ;;  %11117 = vst [vmem:[#allocation45_spill] sm:$0xff] %v9185_v23  ;;  %v2178_v43 = vmul.f32 %v2146_v58, %v9148_v2  ;;  %v2145_v25 = vmul.f32 0.044715, %v9164_v50 }
 0x239   : > { %v2205_v22 = vmul.f32 %v2173_v63, %v2103_v12  ;;  %v1972_v35 = vpop.f32.mrf.mxu0  ;;  %v9180_v20 = vadd.f32 %v4671_v59, %v9137_v36  ;;  %v2238_v54 = vmul.f32 %v2206_v1, %v2108_v13  ;;  %v4863_v21 = vmul.f32 0.044715, %v9167_v3 }
 0x23a   : > { %11116 = vst [vmem:[#allocation46_spill] sm:$0xff] %v9177_v5  ;;  %v2148_v27 = vmul.f32 0.044715, %v9177_v5  ;;  %v9190_v55 = vadd.f32 %v1972_v35, %v11082_v45  ;;  %v6508_v42 = vpop.f32.mrf.mxu1  ;;  %v9208_v47 = vmul.f32 %v2178_v43, %v9148_v2  ;;  %v9217_v46 = vmul.f32 %v2145_v25, %v9164_v50 }
 0x23b   : > { %v6414_v18 = vpop.f32.mrf.mxu0  ;;  %v9195_v15 = vadd.f32 %v6508_v42, %v9137_v36  ;;  %v2270_v61 = vadd.f32 %v2238_v54, %v2108_v13  ;;  %v4862_v28 = vmul.f32 0.044715, %v9180_v20  ;;  %v2237_v19 = vmul.f32 %v2205_v22, %v2103_v12 }
 0x23c   : > { %11118 = vst [vmem:[#allocation29_spill] sm:$0xff] %v9190_v55  ;;  %v2180_v26 = vmul.f32 %v2148_v27, %v9177_v5  ;;  %v9200_v8 = vadd.f32 %v6414_v18, %v11082_v45  ;;  %v4681_v39 = vpop.f32.mrf.mxu1  ;;  %v2147_v52 = vmul.f32 0.044715, %v9190_v55  ;;  %11120 = vst [vmem:[#allocation51_spill] sm:$0xff] %v9208_v47  ;;  %v4895_v29 = vmul.f32 %v4863_v21, %v9167_v3 }
 0x23d   : > { %v4865_v17 = vmul.f32 0.044715, %v9195_v15  ;;  %v1982_v38 = vpop.f32.mrf.mxu0  ;;  %v9205_v49 = vadd.f32 %v4681_v39, %v9137_v36  ;;  %v2302_v10 = vmul.f32 0.7978846, %v2270_v61  ;;  %11122 = vst [vmem:[#allocation37_spill] sm:$0xff] %v9217_v46  ;;  %v9225_v1 = vmul.f32 %v4862_v28, %v9180_v20 }
 0x23e   : > { %11119 = vst [vmem:[#allocation49_spill] sm:$0xff] %v9200_v8  ;;  %v2150_v13 = vmul.f32 0.044715, %v9200_v8  ;;  %v9212_v37 = vadd.f32 %v1982_v38, %v11082_v45  ;;  %v6511_v6 = vpop.f32.mrf.mxu1  ;;  %v2269_v59 = vadd.f32 %v2237_v19, %v2103_v12  ;;  %v9231_v22 = vmul.f32 %v2180_v26, %v9177_v5 }
 0x23f   : > { %v4864_v31 = vmul.f32 0.044715, %v9205_v49  ;;  %v6417_v33 = vpop.f32.mrf.mxu0  ;;  %v9221_v58 = vadd.f32 %v6511_v6, %v9137_v36  ;;  %6897 = vtanh.f32 %v2302_v10  ;;  %v9234_v35 = vmul.f32 %v2147_v52, %v9190_v55 }
 0x240   : > { %11121 = vst [vmem:[#allocation33_spill] sm:$0xff] %v9212_v37  ;;  %v9228_v63 = vadd.f32 %v6417_v33, %v11082_v45  ;;  %v4691_v14 = vpop.f32.mrf.mxu1  ;;  %11124 = vst [vmem:[#allocation56_spill] sm:$0xff] %v9231_v22  ;;  %v9237_v54 = vmul.f32 %v4865_v17, %v9195_v15  ;;  %v2182_v42 = vmul.f32 %v2150_v13, %v9200_v8  ;;  %v2149_v25 = vmul.f32 0.044715, %v9212_v37 }
 0x241   : > { %11125 = vst [vmem:[#allocation40_spill] sm:$0xff] %v9234_v35  ;;  %v1992_v43 = vpop.f32.mrf.mxu0  ;;  %v9240_v27 = vadd.f32 %v4691_v14, %v9137_v36  ;;  %v9249_v61 = vmul.f32 %v4864_v31, %v9205_v49  ;;  %v4867_v26 = vmul.f32 0.044715, %v9221_v58  ;;  %v2301_v19 = vmul.f32 0.7978846, %v2269_v59 }
 0x242   : > { %11123 = vst [vmem:[#allocation53_spill] sm:$0xff] %v9228_v63  ;;  %v2152_v21 = vmul.f32 0.044715, %v9228_v63  ;;  %v9246_v12 = vadd.f32 %v1992_v43, %v11082_v45  ;;  %v6514_v18 = vpop.f32.mrf.mxu1  ;;  %v4927_v10 = vmul.f32 %v4895_v29, %v9167_v3  ;;  %v9266_v33 = vmul.f32 0.5, %v9167_v3 }
 0x243   : > { %v6455_v28 = vpop.f32.mrf.mxu0  ;;  %v9253_v39 = vadd.f32 %v6514_v18, %v9137_v36  ;;  %v4866_v17 = vmul.f32 0.044715, %v9240_v27  ;;  %6899 = vtanh.f32 %v2301_v19  ;;  %v9269_v14 = vmul.f32 %v2182_v42, %v9200_v8 }
 0x244   : > { %11126 = vst [vmem:[#allocation27_spill] sm:$0xff] %v9246_v12  ;;  %v2184_v52 = vmul.f32 %v2152_v21, %v9228_v63  ;;  %v9258_v38 = vadd.f32 %v6455_v28, %v9151_v62  ;;  %v4701_v45 = vpop.f32.mrf.mxu1  ;;  %v2151_v13 = vmul.f32 0.044715, %v9246_v12  ;;  %v9277_v18 = vmul.f32 %v2149_v25, %v9212_v37 }
 0x245   : > { %v3318_v6 = vpop.f32.mrf.mxu0  ;;  %v9263_v31 = vadd.f32 %v4701_v45, %v9137_v36  ;;  %11128 = vst [vmem:[#allocation22_spill] sm:$0xff] %v9269_v14  ;;  %v4869_v43 = vmul.f32 0.044715, %v9253_v39  ;;  %v9280_v28 = vmul.f32 %v4867_v26, %v9221_v58  ;;  %v4959_v42 = vadd.f32 %v4927_v10, %v9167_v3 }
 0x246   : > { %11127 = vst [vmem:[#allocation59_spill] sm:$0xff] %v9258_v38  ;;  %v3510_v59 = vmul.f32 0.044715, %v9258_v38  ;;  %v9274_v21 = vadd.f32 %v3318_v6, %v9151_v62  ;;  %v6517_v29 = vpop.f32.mrf.mxu1  ;;  %11130 = vst [vmem:[#allocation44_spill] sm:$0xff] %v9277_v18  ;;  %v9287_v56 = vmul.f32 %v2184_v52, %v9228_v63  ;;  %v9290_v60 = vmul.f32 %v4866_v17, %v9240_v27 }
 0x247   : > { %v6458_v19 = vpop.f32.mrf.mxu0  ;;  %v9283_v45 = vadd.f32 %v6517_v29, %v9137_v36  ;;  %v9297_v26 = vmul.f32 %v2151_v13, %v9246_v12  ;;  %v4868_v29 = vmul.f32 0.044715, %v9263_v31  ;;  %v4991_v52 = vmul.f32 0.7978846, %v4959_v42 }
 0x248   : > { %11129 = vst [vmem:[#allocation60_spill] sm:$0xff] %v9274_v21  ;;  %11131 = vst [vmem:[#allocation39_spill] sm:$0xff] %v9287_v56  ;;  %v3509_v6 = vmul.f32 0.044715, %v9274_v21  ;;  %v9294_v25 = vadd.f32 %v6458_v19, %v9151_v62  ;;  %v4711_v48 = vpop.f32.mrf.mxu1  ;;  %v3542_v10 = vmul.f32 %v3510_v59, %v9258_v38  ;;  %v9305_v17 = vmul.f32 %v4869_v43, %v9253_v39 }
 0x249   : > { %11133 = vst [vmem:[#allocation62_spill] sm:$0xff] %v9297_v26  ;;  %v3328_v24 = vpop.f32.mrf.mxu0  ;;  %v9301_v3 = vadd.f32 %v4711_v48, %v9137_v36  ;;  %v4871_v30 = vmul.f32 0.044715, %v9283_v45  ;;  %v9317_v42 = vmul.f32 0.5, %v9180_v20  ;;  %6901 = vtanh.f32 %v4991_v52 }
 0x24a   : > { %11132 = vst [vmem:[#allocation58_spill] sm:$0xff] %v9294_v25  ;;  %v3512_v9 = vmul.f32 0.044715, %v9294_v25  ;;  %v9309_v19 = vadd.f32 %v3328_v24, %v9151_v62  ;;  %v6520_v4 = vpop.f32.mrf.mxu1  ;;  %v3541_v13 = vmul.f32 %v3509_v6, %v9274_v21  ;;  %v9325_v6 = vmul.f32 %v4868_v29, %v9263_v31 }
 0x24b   : > { %v6461_v34 = vpop.f32.mrf.mxu0  ;;  %v9314_v48 = vadd.f32 %v6520_v4, %v9137_v36  ;;  %v4870_v16 = vmul.f32 0.044715, %v9301_v3  ;;  %v9332_v18 = vmul.f32 %v3542_v10, %v9258_v38  ;;  %v9340_v29 = vmul.f32 %v4871_v30, %v9283_v45 }
 0x24c   : > { %11134 = vst [vmem:[#allocation43_spill] sm:$0xff] %v9309_v19  ;;  %v6898_v59 = vpop.eup %6897  ;;  %v3511_v43 = vmul.f32 0.044715, %v9309_v19  ;;  %v9322_v24 = vadd.f32 %v6461_v34, %v9151_v62  ;;  %v4721_v26 = vpop.f32.mrf.mxu1  ;;  %v3544_v12 = vmul.f32 %v3512_v9, %v9294_v25 }
 0x24d   : > { %v3338_v4 = vpop.f32.mrf.mxu0  ;;  %v9329_v56 = vadd.f32 %v4721_v26, %v9137_v36  ;;  %v2366_v63 = vadd.f32 1.0, %v6898_v59  ;;  %11136 = vst [vmem:[#allocation32_spill] sm:$0xff] %v9332_v18  ;;  %v4873_v34 = vmul.f32 0.044715, %v9314_v48  ;;  %v9348_v59 = vmul.f32 %v3541_v13, %v9274_v21 }
 0x24e   : > { %11135 = vst [vmem:[#allocation69_spill] sm:$0xff] %v9322_v24  ;;  %v3543_v37 = vmul.f32 %v3511_v43, %v9309_v19  ;;  %v9337_v14 = vadd.f32 %v3338_v4, %v9151_v62  ;;  %v6523_v52 = vpop.f32.mrf.mxu1  ;;  %v3514_v9 = vmul.f32 0.044715, %v9322_v24  ;;  %v9351_v43 = vmul.f32 %v4870_v16, %v9301_v3 }
 0x24f   : > { %v6464_v8 = vpop.f32.mrf.mxu0  ;;  %v9344_v26 = vadd.f32 %v6523_v52, %v9137_v36  ;;  %v2398_v10 = vmul.f32 %v2366_v63, %v9182_v40  ;;  %11138 = vst [vmem:[#allocation63_spill] sm:$0xff] %v9348_v59  ;;  %v9358_v38 = vmul.f32 %v3544_v12, %v9294_v25  ;;  %v4872_v52 = vmul.f32 0.044715, %v9329_v56 }
 0x250   : > { %11137 = vst [vmem:[#allocation48_spill] sm:$0xff] %v9337_v14  ;;  %v3513_v4 = vmul.f32 0.044715, %v9337_v14  ;;  %v9355_v18 = vadd.f32 %v6464_v8, %v9151_v62  ;;  %v4731_v30 = vpop.f32.mrf.mxu1  ;;  %v6900_v13 = vpop.eup %6899  ;;  %v9366_v16 = vmul.f32 %v3543_v37, %v9309_v19  ;;  %v9369_v59 = vmul.f32 %v4873_v34, %v9314_v48 }
 0x251   : > { %11140 = vst [vmem:[#allocation68_spill] sm:$0xff] %v9358_v38  ;;  %v3348_v35 = vpop.f32.mrf.mxu0  ;;  %v9362_v40 = vadd.f32 %v4731_v30, %v9137_v36  ;;  %v2434_v63 = vmul.f32 %v11097_v44, %v2398_v10  ;;  %v3546_v25 = vmul.f32 %v3514_v9, %v9322_v24  ;;  %v4875_v30 = vmul.f32 0.044715, %v9344_v26 }
 0x252   : > { %11139 = vst [vmem:[#allocation19_spill] sm:$0xff] %v9355_v18  ;;  %11141 = vst [vmem:[#allocation54_spill] sm:$0xff] %v9366_v16  ;;  %v3516_v8 = vmul.f32 0.044715, %v9355_v18  ;;  %v9373_v12 = vadd.f32 %v3348_v35, %v9151_v62  ;;  %v6526_v38 = vpop.f32.mrf.mxu1  ;;  %v3545_v16 = vmul.f32 %v3513_v4, %v9337_v14  ;;  %v9388_v9 = vmul.f32 %v4872_v52, %v9329_v56 }
 0x253   : > { %v6467_v21 = vpop.f32.mrf.mxu0  ;;  %v9378_v10 = vadd.f32 %v6526_v38, %v9137_v36  ;;  %v2528_v37 = vsel %vm1789_vm1, %v2434_v63, 0.0  ;;  %v4874_v19 = vmul.f32 0.044715, %v9362_v40  ;;  %v2365_v63 = vadd.f32 1.0, %v6900_v13 }
 0x254   : > { %11142 = vst [vmem:[#allocation50_spill] sm:$0xff] %v9373_v12  ;;  %v3515_v34 = vmul.f32 0.044715, %v9373_v12  ;;  %v9385_v35 = vadd.f32 %v6467_v21, %v9151_v62  ;;  %2529 = vadd.xlane.f32.xlu1 %v2528_v37  ;;  %v4741_v55 = vpop.f32.mrf.mxu1  ;;  %v3548_v22 = vmul.f32 %v3516_v8, %v9355_v18  ;;  %v9401_v52 = vmul.f32 %v3546_v25, %v9322_v24 }
 0x255   : > { %v3358_v38 = vpop.f32.mrf.mxu0  ;;  %v9392_v5 = vadd.f32 %v4741_v55, %v9137_v36  ;;  %v4877_v50 = vmul.f32 0.044715, %v9378_v10  ;;  %v2397_v13 = vmul.f32 %v2365_v63, %v9214_v11  ;;  %v9412_v41 = vmul.f32 %v3545_v16, %v9337_v14 }
 0x256   : > { %11143 = vst [vmem:[#allocation25_spill] sm:$0xff] %v9385_v35  ;;  %v3547_v4 = vmul.f32 %v3515_v34, %v9373_v12  ;;  %v3518_v46 = vmul.f32 0.044715, %v9385_v35  ;;  %v9398_v21 = vadd.f32 %v3358_v38, %v9151_v62  ;;  %v6529_v37 = vpop.f32.mrf.mxu1  ;;  %11145 = vst [vmem:[#allocation65_spill] sm:$0xff] %v9401_v52  ;;  %v9415_v38 = vmul.f32 %v4875_v30, %v9344_v26  ;;  %v6902_v24 = vpop.eup %6901 }
 0x257   : > { %v2476_v47 = vpop.xlane.xlu1 %2475  ;;  %v4876_v8 = vmul.f32 0.044715, %v9392_v5  ;;  %v6470_v2 = vpop.f32.mrf.mxu0  ;;  %v9405_v55 = vadd.f32 %v6529_v37, %v9137_v36  ;;  %11148 = vst [vmem:[#allocation52_spill] sm:$0xff] %v9412_v41  ;;  %v9418_v25 = vmul.f32 %v4874_v19, %v9362_v40  ;;  %v9421_v37 = vmul.f32 %v3548_v22, %v9355_v18 }
 0x258   : > { %11144 = vst [vmem:[#allocation36_spill] sm:$0xff] %v9398_v21  ;;  %v9409_v34 = vadd.f32 %v9130_v57, %v2476_v47  ;;  %v4751_v52 = vpop.f32.mrf.mxu1  ;;  %v3517_v11 = vmul.f32 0.044715, %v9398_v21  ;;  %v9425_v47 = vadd.f32 %v6470_v2, %v9151_v62  ;;  %v2433_v16 = vmul.f32 %v11097_v44, %v2397_v13 }
 0x259   : > { %11146 = vst [vmem:[#allocation30_spill] sm:$0xff] %v9405_v55  ;;  %v2473_v53 = vpop.xlane.xlu0 %2472  ;;  %11149 = vst [vmem:[#allocation55_spill] sm:$0xff] %v9421_v37  ;;  %v3368_v63 = vpop.f32.mrf.mxu0  ;;  %v9429_v30 = vmul.f32 %v3547_v4, %v9373_v12  ;;  %v3550_v19 = vmul.f32 %v3518_v46, %v9385_v35  ;;  %v9433_v41 = vmul.f32 %v4877_v50, %v9378_v10  ;;  %v4879_v2 = vmul.f32 0.044715, %v9405_v55 }
 0x25a   : > { %11147 = vst [vmem:[#allocation67_spill] sm:$0xff] %v9409_v34  ;;  %11150 = vst [vmem:[#allocation71_spill] sm:$0xff] %v9425_v47  ;;  %v9436_v14 = vmul.f32 %v4876_v8, %v9392_v5  ;;  %v6532_v22 = vpop.f32.mrf.mxu1  ;;  %v3520_v37 = vmul.f32 0.044715, %v9425_v47  ;;  %v2525_v18 = vsel %vm1789_vm1, %v2433_v16, 0.0  ;;  %v9442_v13 = vadd.f32 %v3368_v63, %v9151_v62 }
 0x25b   : > { %11151 = vst [vmem:[#allocation47_spill] sm:$0xff] %v9429_v30  ;;  %v6473_v4 = vpop.f32.mrf.mxu0  ;;  %v9447_v50 = vadd.f32 %v9130_v57, %v2473_v53  ;;  %2526 = vadd.xlane.f32.xlu0 %v2525_v18  ;;  %v5055_v8 = vadd.f32 1.0, %v6902_v24  ;;  %v9450_v30 = vadd.f32 %v4751_v52, %v9137_v36  ;;  %v3549_v44 = vmul.f32 %v3517_v11, %v9398_v21 }
 0x25c   : > { %11152 = vst [vmem:[#allocation57_spill] sm:$0xff] %v9442_v13  ;;  %v4761_v12 = vpop.f32.mrf.mxu1  ;;  %v3519_v16 = vmul.f32 0.044715, %v9442_v13  ;;  %v9455_v63 = vadd.f32 %v6473_v4, %v9151_v62  ;;  %v9458_v23 = vadd.f32 %v6532_v22, %v9137_v36  ;;  %v9461_v53 = vmul.f32 %v3550_v19, %v9385_v35 }
 0x25d   : > { %11153 = vst [vmem:[#allocation61_spill] sm:$0xff] %v9447_v50  ;;  %v3378_v46 = vpop.f32.mrf.mxu0  ;;  %v5087_v18 = vmul.f32 %v5055_v8, %v9266_v33  ;;  %v4926_v24 = vmul.f32 %v9225_v1, %v9180_v20  ;;  %v3552_v11 = vmul.f32 %v3520_v37, %v9425_v47  ;;  %v9471_v4 = vmul.f32 %v4879_v2, %v9405_v55 }
 0x25e   : > { %11154 = vst [vmem:[#allocation64_spill] sm:$0xff] %v9455_v63  ;;  %11155 = vst [vmem:[#allocation66_spill] sm:$0xff] %v9461_v53  ;;  %v9467_v52 = vadd.f32 %v3378_v46, %v9151_v62  ;;  %v4878_v22 = vmul.f32 0.044715, %v9450_v30  ;;  %v3522_v34 = vmul.f32 0.044715, %v9455_v63  ;;  %v6535_v19 = vpop.f32.mrf.mxu1  ;;  %v3551_v53 = vmul.f32 %v3519_v16, %v9442_v13 }
 0x25f   : > { %11157 = vst [vmem:[#allocation21_spill] sm:$0xff] %v9471_v4  ;;  %v6476_v51 = vpop.f32.mrf.mxu0  ;;  %v5123_v33 = vmul.f32 %v9159_v7, %v5087_v18  ;;  %v4958_v1 = vadd.f32 %v4926_v24, %v9180_v20  ;;  %v9482_v2 = vmul.f32 %v3549_v44, %v9398_v21  ;;  %v4881_v35 = vmul.f32 0.044715, %v9458_v23 }
 0x260   : > { %11156 = vst [vmem:[#allocation70_spill] sm:$0xff] %v9467_v52  ;;  %v3521_v46 = vmul.f32 0.044715, %v9467_v52  ;;  %v3554_v8 = vmul.f32 %v3522_v34, %v9455_v63  ;;  %v4929_v20 = vmul.f32 %v9237_v54, %v9195_v15  ;;  %v9491_v24 = vmul.f32 %v3552_v11, %v9425_v47 }
 0x261   : > { %11158 = vst [vmem:[#allocation72_spill] sm:$0xff] %v9482_v2  ;;  %v5157_v4 = vsel %vm1789_vm1, %v5123_v33, 0.0  ;;  %v4990_v55 = vmul.f32 0.7978846, %v4958_v1  ;;  %v3388_v18 = vpop.f32.mrf.mxu0  ;;  %v9494_v44 = vadd.f32 %v4761_v12, %v9137_v36  ;;  %v9497_v34 = vadd.f32 %v6476_v51, %v9151_v62  ;;  %v4771_v33 = vpop.f32.mrf.mxu1 }
 0x262   : > { %v3553_v16 = vmul.f32 %v3521_v46, %v9467_v52  ;;  %11159 = vst [vmem:[#allocation73_spill] sm:$0xff] %v9491_v24  ;;  %5158 = vadd.xlane.f32.xlu1 %v5157_v4  ;;  %v9500_v37 = vadd.f32 %v6535_v19, %v9137_v36  ;;  %v9503_v1 = vmul.f32 %v3551_v53, %v9442_v13  ;;  %v9513_v51 = vmul.f32 0.5, %v9195_v15 }
 0x263   : > { %11160 = vst [vmem:[#allocation74_spill] sm:$0xff] %v9497_v34  ;;  %v9506_v54 = vmul.f32 %v4878_v22, %v9450_v30  ;;  %6903 = vtanh.f32 %v4990_v55  ;;  %v4961_v11 = vadd.f32 %v4929_v20, %v9195_v15  ;;  %v9510_v12 = vmul.f32 %v4881_v35, %v9458_v23  ;;  %v6479_v35 = vpop.f32.mrf.mxu0  ;;  %v6538_v13 = vpop.f32.mrf.mxu1 }
 0x264   : > { %11161 = vst [vmem:[#allocation75_spill] sm:$0xff] %v9503_v1  ;;  %v3524_v19 = vmul.f32 0.044715, %v9497_v34  ;;  %v4928_v46 = vmul.f32 %v9249_v61, %v9205_v49  ;;  %v9519_v53 = vmul.f32 %v3554_v8, %v9455_v63  ;;  %v9522_v22 = vmul.f32 %v3553_v16, %v9467_v52 }
 0x265   : > { %v2482_v4 = vpop.xlane.xlu1 %2481  ;;  %v4993_v55 = vmul.f32 0.7978846, %v4961_v11  ;;  %v9525_v20 = vadd.f32 %v3388_v18, %v9151_v62  ;;  %v4880_v50 = vmul.f32 0.044715, %v9494_v44  ;;  %v4883_v15 = vmul.f32 0.044715, %v9500_v37 }
 0x266   : > { %11162 = vst [vmem:[#allocation76_spill] sm:$0xff] %v9519_v53  ;;  %11163 = vst [vmem:[#allocation77_spill] sm:$0xff] %v9522_v22  ;;  %v9530_v1 = vmul.f32 0.5, %v9205_v49  ;;  %v4960_v61 = vadd.f32 %v4928_v46, %v9205_v49  ;;  %v9534_v8 = vadd.f32 %v9130_v57, %v2482_v4  ;;  %v4931_v18 = vmul.f32 %v9280_v28, %v9221_v58 }
 0x267   : > { %11164 = vst [vmem:[#allocation78_spill] sm:$0xff] %v9525_v20  ;;  %v2479_v16 = vpop.xlane.xlu0 %2478  ;;  %6905 = vtanh.f32 %v4993_v55  ;;  %v3523_v11 = vmul.f32 0.044715, %v9525_v20  ;;  %v3556_v52 = vmul.f32 %v3524_v19, %v9497_v34  ;;  %v9544_v63 = vadd.f32 %v4771_v33, %v9137_v36 }
 0x268   : > { %11165 = vst [vmem:[#allocation79_spill] sm:$0xff] %v9534_v8  ;;  %v9540_v22 = vadd.f32 %v9130_v57, %v2479_v16  ;;  %v4992_v53 = vmul.f32 0.7978846, %v4960_v61  ;;  %v4963_v46 = vadd.f32 %v4931_v18, %v9221_v58  ;;  %v9549_v55 = vadd.f32 %v6479_v35, %v9151_v62  ;;  %v3398_v16 = vpop.f32.mrf.mxu0 }
 0x269   : > { %v3555_v4 = vmul.f32 %v3523_v11, %v9525_v20  ;;  %v9552_v28 = vadd.f32 %v6538_v13, %v9137_v36  ;;  %v9558_v33 = vmul.f32 0.5, %v9221_v58  ;;  %v9561_v11 = vmul.f32 %v4880_v50, %v9494_v44  ;;  %v4781_v50 = vpop.f32.mrf.mxu1 }
 0x26a   : > { %11166 = vst [vmem:[#allocation80_spill] sm:$0xff] %v9540_v22  ;;  %v2488_v49 = vpop.xlane.xlu1 %2487  ;;  %6907 = vtanh.f32 %v4992_v53  ;;  %v9564_v18 = vmul.f32 %v4883_v15, %v9500_v37  ;;  %v4995_v35 = vmul.f32 0.7978846, %v4963_v46  ;;  %v4882_v13 = vmul.f32 0.044715, %v9544_v63  ;;  %v6482_v24 = vpop.f32.mrf.mxu0 }
 0x26b   : > { %11167 = vst [vmem:[#allocation81_spill] sm:$0xff] %v9552_v28  ;;  %v2552_v61 = vadd.f32 %v9130_v57, %v2488_v49  ;;  %v9570_v19 = vmul.f32 %v3556_v52, %v9497_v34  ;;  %v9573_v53 = vmul.f32 %v3555_v4, %v9525_v20  ;;  %v4930_v58 = vmul.f32 %v9290_v60, %v9240_v27 }
 0x26c   : > { %6909 = vtanh.f32 %v4995_v35  ;;  %v3526_v15 = vmul.f32 0.044715, %v9549_v55  ;;  %v4885_v46 = vmul.f32 0.044715, %v9552_v28  ;;  %v9580_v22 = vadd.f32 %v3398_v16, %v9151_v62 }
 0x26d   : > { %11168 = vst [vmem:[#allocation82_spill] sm:$0xff] %v9570_v19  ;;  %11169 = vst [vmem:[#allocation83_spill] sm:$0xff] %v9573_v53  ;;  %v2692_v52 = vrot.slane %v2552_v61, %v11114_v32  ;;  %v4962_v53 = vadd.f32 %v4930_v58, %v9240_v27  ;;  %v4933_v60 = vmul.f32 %v9305_v17, %v9253_v39  ;;  %v9605_v2 = vmul.f32 0.5, %v9240_v27  ;;  %v3408_v27 = vpop.f32.mrf.mxu0 }
 0x26e   : > { %v2485_v49 = vpop.xlane.xlu0 %2484  ;;  %11170 = vst [vmem:[#allocation84_spill] sm:$0xff] %v9580_v22  ;;  %v9589_v20 = vmul.f32 %v4882_v13, %v9544_v63  ;;  %v3525_v19 = vmul.f32 0.044715, %v9580_v22  ;;  %v9593_v16 = vadd.f32 %v4781_v50, %v9137_v36  ;;  %v9598_v58 = vadd.f32 %v6482_v24, %v9151_v62  ;;  %v6541_v50 = vpop.f32.mrf.mxu1 }
 0x26f   : > { %v2551_v4 = vadd.f32 %v9130_v57, %v2485_v49  ;;  %v2494_v8 = vpop.xlane.xlu1 %2493  ;;  %v4994_v49 = vmul.f32 0.7978846, %v4962_v53  ;;  %v4965_v47 = vadd.f32 %v4933_v60, %v9253_v39  ;;  %v9602_v13 = vmul.f32 %v4885_v46, %v9552_v28 }
 0x270   : > { %v2554_v35 = vadd.f32 %v9130_v57, %v2494_v8  ;;  %11171 = vst [vmem:[#allocation85_spill] sm:$0xff] %v9589_v20  ;;  %v6904_v34 = vpop.eup %6903  ;;  %11172 = vst [vmem:[#allocation86_spill] sm:$0xff] %v9598_v58  ;;  %v3558_v8 = vmul.f32 %v3526_v15, %v9549_v55  ;;  %v3557_v53 = vmul.f32 %v3525_v19, %v9580_v22  ;;  %v9613_v46 = vmul.f32 0.5, %v9253_v39 }
 0x271   : > { %v2688_v61 = vrot.slane %v2551_v4, %v11115_v0  ;;  %v5054_v17 = vadd.f32 1.0, %v6904_v34  ;;  %11173 = vst [vmem:[#allocation87_spill] sm:$0xff] %v9602_v13  ;;  %6911 = vtanh.f32 %v4994_v49  ;;  %v4997_v4 = vmul.f32 0.7978846, %v4965_v47 }
 0x272   : > { %v2491_v20 = vpop.xlane.xlu0 %2490  ;;  %v2701_v24 = vrot.slane %v2554_v35, %v11114_v32  ;;  %v9618_v49 = vadd.f32 %v6541_v50, %v9137_v36  ;;  %v4932_v39 = vmul.f32 %v9325_v6, %v9263_v31  ;;  %v9632_v50 = vadd.f32 %v3408_v27, %v9151_v62  ;;  %v6485_v27 = vpop.f32.mrf.mxu0 }
 0x273   : > { %v2693_v21 = vsel %vm2620_vm3, %v2692_v52, %v2688_v61  ;;  %v2553_v34 = vadd.f32 %v9130_v57, %v2491_v20  ;;  %v5086_v15 = vmul.f32 %v5054_v17, %v9317_v42  ;;  %6913 = vtanh.f32 %v4997_v4 }
 0x274   : > { %v6906_v60 = vpop.eup %6905  ;;  %v4884_v52 = vmul.f32 0.044715, %v9593_v16  ;;  %v3528_v61 = vmul.f32 0.044715, %v9598_v58  ;;  %v2500_v19 = vpop.xlane.xlu1 %2499  ;;  %v9626_v17 = vmul.f32 %v3558_v8, %v9549_v55  ;;  %v9629_v4 = vmul.f32 %v3557_v53, %v9580_v22 }
 0x275   : > { %v2697_v47 = vrot.slane %v2553_v34, %v11115_v0  ;;  %v5122_v20 = vmul.f32 %v9159_v7, %v5086_v15  ;;  %v5057_v35 = vadd.f32 1.0, %v6906_v60  ;;  %v2556_v42 = vadd.f32 %v9130_v57, %v2500_v19 }
 0x276   : > { %11174 = vst [vmem:[#allocation88_spill] sm:$0xff] %v9626_v17  ;;  %11175 = vst [vmem:[#allocation89_spill] sm:$0xff] %v9629_v4  ;;  %v2497_v60 = vpop.xlane.xlu0 %2496  ;;  %v4964_v19 = vadd.f32 %v4932_v39, %v9263_v31  ;;  %v9641_v4 = vmul.f32 %v4884_v52, %v9593_v16  ;;  %v4791_v52 = vpop.f32.mrf.mxu1 }
 0x277   : > { %v6908_v34 = vpop.eup %6907  ;;  %v2702_v13 = vsel %vm2620_vm3, %v2701_v24, %v2697_v47  ;;  %v5154_v15 = vsel %vm1789_vm1, %v5122_v20, 0.0  ;;  %v5089_v6 = vmul.f32 %v5057_v35, %v9513_v51  ;;  %v2555_v8 = vadd.f32 %v9130_v57, %v2497_v60 }
 0x278   : > { %v2771_v28 = vsel %vm2757_vm4, %v2702_v13, %v2693_v21  ;;  %5155 = vadd.xlane.f32.xlu0 %v5154_v15  ;;  %v5056_v53 = vadd.f32 1.0, %v6908_v34  ;;  %v2506_v24 = vpop.xlane.xlu1 %2505  ;;  %v3560_v47 = vmul.f32 %v3528_v61, %v9598_v58  ;;  %v4887_v20 = vmul.f32 0.044715, %v9618_v49 }
 0x279   : > { %v5125_v22 = vmul.f32 %v9159_v7, %v5089_v6  ;;  %v4996_v51 = vmul.f32 0.7978846, %v4964_v19  ;;  %v6910_v35 = vpop.eup %6909  ;;  %v2710_v39 = vrot.slane %v2556_v42, %v11114_v32  ;;  %v2706_v21 = vrot.slane %v2555_v8, %v11115_v0 }
 0x27a   : > { %v2558_v13 = vadd.f32 %v9130_v57, %v2506_v24  ;;  %v5088_v34 = vmul.f32 %v5056_v53, %v9530_v1  ;;  %v2503_v60 = vpop.xlane.xlu0 %2502  ;;  %v5059_v6 = vadd.f32 1.0, %v6910_v35  ;;  %v3527_v61 = vmul.f32 0.044715, %v9632_v50  ;;  %v3418_v24 = vpop.f32.mrf.mxu0 }
 0x27b   : > { %v5163_v15 = vsel %vm1789_vm1, %v5125_v22, 0.0  ;;  %6915 = vtanh.f32 %v4996_v51  ;;  %v2711_v17 = vsel %vm2620_vm3, %v2710_v39, %v2706_v21  ;;  %v2557_v8 = vadd.f32 %v9130_v57, %v2503_v60 }
 0x27c   : > { %5164 = vadd.xlane.f32.xlu1 %v5163_v15  ;;  %v2719_v19 = vrot.slane %v2558_v13, %v11114_v32  ;;  %v5124_v42 = vmul.f32 %v9159_v7, %v5088_v34  ;;  %v2772_v1 = vsel %vm2759_vm5, %v2711_v17, %v2771_v28  ;;  %v5091_v53 = vmul.f32 %v5059_v6, %v9558_v33  ;;  %v6544_v34 = vpop.f32.mrf.mxu1 }
 0x27d   : > { %v9659_v22 = vmul.f32 0.5, %v9263_v31  ;;  %v4935_v51 = vmul.f32 %v9340_v29, %v9283_v45  ;;  %v2715_v39 = vrot.slane %v2557_v8, %v11115_v0  ;;  %v9666_v21 = vmul.f32 %v3560_v47, %v9598_v58  ;;  %v6488_v8 = vpop.f32.mrf.mxu0 }
 0x27e   : > { %v5160_v35 = vsel %vm1789_vm1, %v5124_v42, 0.0  ;;  %v9669_v13 = vmul.f32 %v4887_v20, %v9618_v49  ;;  %v6912_v28 = vpop.eup %6911  ;;  %v5127_v33 = vmul.f32 %v9159_v7, %v5091_v53  ;;  %v3559_v17 = vmul.f32 %v3527_v61, %v9632_v50 }
 0x27f   : > { %11176 = vst [vmem:[#allocation90_spill] sm:$0xff] %v9666_v21  ;;  %5161 = vadd.xlane.f32.xlu0 %v5160_v35  ;;  %v2512_v31 = vpop.xlane.xlu1 %2511  ;;  %v4967_v29 = vadd.f32 %v4935_v51, %v9283_v45  ;;  %v9675_v15 = vadd.f32 %v6485_v27, %v9151_v62  ;;  %v2720_v60 = vsel %vm2620_vm3, %v2719_v19, %v2715_v39  ;;  %v5058_v6 = vadd.f32 1.0, %v6912_v28 }
 0x280   : > { %v2560_v47 = vadd.f32 %v9130_v57, %v2512_v31  ;;  %v2509_v20 = vpop.xlane.xlu0 %2508  ;;  %v9680_v42 = vadd.f32 %v4791_v52, %v9137_v36  ;;  %v6914_v35 = vpop.eup %6913  ;;  %v9683_v53 = vsel %vm2761_vm6, %v2720_v60, %v2772_v1  ;;  %v5169_v61 = vsel %vm1789_vm1, %v5127_v33, 0.0 }
 0x281   : > { %11177 = vst [vmem:[#allocation91_spill] sm:$0xff] %v9675_v15  ;;  %11178 = vst [vmem:[#allocation92_spill] sm:$0xff] %v9683_v53  ;;  %v2559_v51 = vadd.f32 %v9130_v57, %v2509_v20  ;;  %v4999_v27 = vmul.f32 0.7978846, %v4967_v29  ;;  %5170 = vadd.xlane.f32.xlu1 %v5169_v61  ;;  %v5090_v39 = vmul.f32 %v5058_v6, %v9605_v2  ;;  %v5061_v28 = vadd.f32 1.0, %v6914_v35  ;;  %v4801_v52 = vpop.f32.mrf.mxu1  ;;  %v3428_v6 = vpop.f32.mrf.mxu0 }
 0x282   : > { %v2728_v19 = vrot.slane %v2560_v47, %v11114_v32  ;;  %v9690_v31 = vmul.f32 0.5, %v9283_v45  ;;  %v3530_v1 = vmul.f32 0.044715, %v9675_v15  ;;  %v9695_v33 = vadd.f32 %v6544_v34, %v9137_v36 }
 0x283   : > { %v2724_v21 = vrot.slane %v2559_v51, %v11115_v0  ;;  %v2518_v58 = vpop.xlane.xlu1 %2517  ;;  %6917 = vtanh.f32 %v4999_v27  ;;  %v5126_v29 = vmul.f32 %v9159_v7, %v5090_v39  ;;  %v5093_v60 = vmul.f32 %v5061_v28, %v9613_v46  ;;  %v6547_v27 = vpop.f32.mrf.mxu1 }
 0x284   : > { %v2562_v2 = vadd.f32 %v9130_v57, %v2518_v58  ;;  %v4934_v45 = vmul.f32 %v9351_v43, %v9301_v3  ;;  %v2515_v47 = vpop.xlane.xlu0 %2514  ;;  %v9706_v35 = vmul.f32 %v3559_v17, %v9632_v50  ;;  %v4886_v34 = vmul.f32 0.044715, %v9680_v42 }
 0x285   : > { %v9703_v20 = vsel %vm2620_vm3, %v2728_v19, %v2724_v21  ;;  %v2561_v61 = vadd.f32 %v9130_v57, %v2515_v47  ;;  %v5166_v51 = vsel %vm1789_vm1, %v5126_v29, 0.0  ;;  %v5129_v46 = vmul.f32 %v9159_v7, %v5093_v60 }
 0x286   : > { %11179 = vst [vmem:[#allocation93_spill] sm:$0xff] %v9703_v20  ;;  %v2737_v58 = vrot.slane %v2562_v2, %v11114_v32  ;;  %v4966_v43 = vadd.f32 %v4934_v45, %v9301_v3  ;;  %5167 = vadd.xlane.f32.xlu0 %v5166_v51  ;;  %v3562_v21 = vmul.f32 %v3530_v1, %v9675_v15  ;;  %v4889_v19 = vmul.f32 0.044715, %v9695_v33  ;;  %v6491_v45 = vpop.f32.mrf.mxu0 }
 0x287   : > { %v2733_v17 = vrot.slane %v2561_v61, %v11115_v0  ;;  %v9718_v39 = vadd.f32 %v3418_v24, %v9151_v62  ;;  %v5175_v29 = vsel %vm1789_vm1, %v5129_v46, 0.0  ;;  %v4937_v60 = vmul.f32 %v9369_v59, %v9314_v48 }
 0x288   : > { %v6916_v28 = vpop.eup %6915  ;;  %v4998_v47 = vmul.f32 0.7978846, %v4966_v43  ;;  %v9724_v2 = vadd.f32 %v4801_v52, %v9137_v36  ;;  %5176 = vadd.xlane.f32.xlu1 %v5175_v29  ;;  %v9731_v24 = vadd.f32 %v6488_v8, %v9151_v62  ;;  %v9734_v46 = vmul.f32 0.5, %v9301_v3  ;;  %v4811_v43 = vpop.f32.mrf.mxu1 }
 0x289   : > { %v5060_v1 = vadd.f32 1.0, %v6916_v28  ;;  %v9727_v51 = vsel %vm2620_vm3, %v2737_v58, %v2733_v17  ;;  %v3529_v61 = vmul.f32 0.044715, %v9718_v39  ;;  %v4969_v59 = vadd.f32 %v4937_v60, %v9314_v48  ;;  %v3438_v60 = vpop.f32.mrf.mxu0 }
 0x28a   : > { %11180 = vst [vmem:[#allocation94_spill] sm:$0xff] %v9727_v51  ;;  %11181 = vst [vmem:[#allocation95_spill] sm:$0xff] %v9731_v24  ;;  %6919 = vtanh.f32 %v4998_v47  ;;  %v9738_v52 = vadd.f32 %v6547_v27, %v9137_v36  ;;  %v9742_v58 = vmul.f32 %v4886_v34, %v9680_v42  ;;  %v4888_v17 = vmul.f32 0.044715, %v9724_v2  ;;  %v6550_v20 = vpop.f32.mrf.mxu1 }
 0x28b   : > { %v5092_v28 = vmul.f32 %v5060_v1, %v9659_v22  ;;  %v3532_v8 = vmul.f32 0.044715, %v9731_v24  ;;  %v9747_v29 = vmul.f32 %v3562_v21, %v9675_v15  ;;  %v9750_v3 = vmul.f32 %v4889_v19, %v9695_v33  ;;  %v2524_v21 = vpop.xlane.xlu1 %2523 }
 0x28c   : > { %v5001_v47 = vmul.f32 0.7978846, %v4969_v59  ;;  %v4936_v27 = vmul.f32 %v9388_v9, %v9329_v56  ;;  %v3561_v34 = vmul.f32 %v3529_v61, %v9718_v39  ;;  %v9757_v1 = vmul.f32 0.5, %v9314_v48 }
 0x28d   : > { %11182 = vst [vmem:[#allocation96_spill] sm:$0xff] %v9747_v29  ;;  %v5128_v22 = vmul.f32 %v9159_v7, %v5092_v28  ;;  %v9760_v51 = vadd.f32 %v3428_v6, %v9151_v62  ;;  %v4891_v19 = vmul.f32 0.044715, %v9738_v52  ;;  %v9764_v59 = vmul.f32 0.5, %v9329_v56 }
 0x28e   : > { %6921 = vtanh.f32 %v5001_v47  ;;  %v4968_v9 = vadd.f32 %v4936_v27, %v9329_v56  ;;  %v9769_v61 = vmul.f32 %v4888_v17, %v9724_v2  ;;  %v3564_v48 = vmul.f32 %v3532_v8, %v9731_v24  ;;  %v6494_v27 = vpop.f32.mrf.mxu0 }
 0x28f   : > { %v5172_v28 = vsel %vm1789_vm1, %v5128_v22, 0.0  ;;  %v3531_v6 = vmul.f32 0.044715, %v9760_v51  ;;  %v9774_v29 = vadd.f32 %v9130_v57, %v2524_v21  ;;  %v4939_v15 = vmul.f32 %v9415_v38, %v9344_v26 }
 0x290   : > { %v6918_v53 = vpop.eup %6917  ;;  %5173 = vadd.xlane.f32.xlu0 %v5172_v28  ;;  %v5000_v47 = vmul.f32 0.7978846, %v4968_v9  ;;  %v9779_v56 = vadd.f32 %v4811_v43, %v9137_v36  ;;  %v9782_v17 = vmul.f32 %v3561_v34, %v9718_v39  ;;  %v9785_v8 = vadd.f32 %v6491_v45, %v9151_v62 }
 0x291   : > { %11183 = vst [vmem:[#allocation97_spill] sm:$0xff] %v9774_v29  ;;  %v5063_v22 = vadd.f32 1.0, %v6918_v53  ;;  %v9788_v28 = vadd.f32 %v6550_v20, %v9137_v36  ;;  %v9791_v21 = vmul.f32 %v4891_v19, %v9738_v52  ;;  %v3563_v38 = vmul.f32 %v3531_v6, %v9760_v51  ;;  %v2521_v20 = vpop.xlane.xlu0 %2520  ;;  %v3448_v6 = vpop.f32.mrf.mxu0 }
 0x292   : > { %11184 = vst [vmem:[#allocation98_spill] sm:$0xff] %v9782_v17  ;;  %6923 = vtanh.f32 %v5000_v47  ;;  %v4971_v43 = vadd.f32 %v4939_v15, %v9344_v26  ;;  %v9797_v53 = vmul.f32 %v3564_v48, %v9731_v24  ;;  %v9800_v34 = vmul.f32 0.5, %v9344_v26 }
 0x293   : > { %v5095_v9 = vmul.f32 %v5063_v22, %v9690_v31  ;;  %v4890_v45 = vmul.f32 0.044715, %v9779_v56  ;;  %v3534_v47 = vmul.f32 0.044715, %v9785_v8  ;;  %v4938_v15 = vmul.f32 %v9418_v25, %v9362_v40 }
 0x294   : > { %11185 = vst [vmem:[#allocation99_spill] sm:$0xff] %v9797_v53  ;;  %v5003_v17 = vmul.f32 0.7978846, %v4971_v43  ;;  %v4893_v48 = vmul.f32 0.044715, %v9788_v28  ;;  %v9811_v26 = vmul.f32 0.5, %v9362_v40  ;;  %v9814_v22 = vadd.f32 %v3438_v60, %v9151_v62  ;;  %v4821_v53 = vpop.f32.mrf.mxu1 }
 0x295   : > { %v5131_v31 = vmul.f32 %v9159_v7, %v5095_v9  ;;  %v9817_v19 = vmul.f32 %v3563_v38, %v9760_v51  ;;  %v4970_v43 = vadd.f32 %v4938_v15, %v9362_v40  ;;  %v9821_v25 = vadd.f32 %v9130_v57, %v2521_v20  ;;  %v6497_v20 = vpop.f32.mrf.mxu0 }
 0x296   : > { %11186 = vst [vmem:[#allocation100_spill] sm:$0xff] %v9814_v22  ;;  %6925 = vtanh.f32 %v5003_v17  ;;  %v9825_v32 = vmul.f32 %v4890_v45, %v9779_v56  ;;  %v3533_v24 = vmul.f32 0.044715, %v9814_v22  ;;  %v4941_v60 = vmul.f32 %v9433_v41, %v9378_v10 }
 0x297   : > { %11187 = vst [vmem:[#allocation101_spill] sm:$0xff] %v9817_v19  ;;  %11188 = vst [vmem:[#allocation102_spill] sm:$0xff] %v9821_v25  ;;  %v6920_v29 = vpop.eup %6919  ;;  %v5181_v9 = vsel %vm1789_vm1, %v5131_v31, 0.0  ;;  %v3566_v17 = vmul.f32 %v3534_v47, %v9785_v8  ;;  %v5002_v19 = vmul.f32 0.7978846, %v4970_v43  ;;  %v9832_v40 = vadd.f32 %v4821_v53, %v9137_v36 }
 0x298   : > { %5182 = vadd.xlane.f32.xlu1 %v5181_v9  ;;  %v5062_v38 = vadd.f32 1.0, %v6920_v29  ;;  %v9835_v15 = vmul.f32 %v4893_v48, %v9788_v28  ;;  %v4973_v45 = vadd.f32 %v4941_v60, %v9378_v10  ;;  %v9839_v31 = vadd.f32 %v6494_v27, %v9151_v62 }
 0x299   : > { %v4940_v41 = vmul.f32 %v9436_v14, %v9392_v5  ;;  %6927 = vtanh.f32 %v5002_v19  ;;  %v3565_v36 = vmul.f32 %v3533_v24, %v9814_v22  ;;  %v4892_v48 = vmul.f32 0.044715, %v9832_v40 }
 0x29a   : > { %v5094_v29 = vmul.f32 %v5062_v38, %v9734_v46  ;;  %v5005_v43 = vmul.f32 0.7978846, %v4973_v45  ;;  %v9850_v27 = vadd.f32 %v3448_v6, %v9151_v62  ;;  %v9854_v46 = vmul.f32 %v3566_v17, %v9785_v8  ;;  %v3458_v38 = vpop.f32.mrf.mxu0  ;;  %v11190_v17 = vld [vmem:[#allocation30_spill] sm:$0xff] }
 0x29b   : > { %v6922_v53 = vpop.eup %6921  ;;  %v4972_v9 = vadd.f32 %v4940_v41, %v9392_v5  ;;  %v9857_v19 = vmul.f32 0.5, %v9378_v10  ;;  %v3536_v24 = vmul.f32 0.044715, %v9839_v31  ;;  %v9861_v45 = vmul.f32 0.5, %v9392_v5 }
 0x29c   : > { %v5130_v60 = vmul.f32 %v9159_v7, %v5094_v29  ;;  %v5065_v14 = vadd.f32 1.0, %v6922_v53  ;;  %6929 = vtanh.f32 %v5005_v43  ;;  %v9866_v29 = vmul.f32 %v3565_v36, %v9814_v22  ;;  %v11191_v53 = vld [vmem:[#allocation21_spill] sm:$0xff] }
 0x29d   : > { %v5004_v41 = vmul.f32 0.7978846, %v4972_v9  ;;  %v4943_v25 = vmul.f32 %v11191_v53, %v11190_v17  ;;  %v9871_v43 = vmul.f32 %v4892_v48, %v9832_v40  ;;  %v3535_v5 = vmul.f32 0.044715, %v9850_v27  ;;  %v6500_v53 = vpop.f32.mrf.mxu0 }
 0x29e   : > { %v5178_v6 = vsel %vm1789_vm1, %v5130_v60, 0.0  ;;  %v5097_v47 = vmul.f32 %v5065_v14, %v9757_v1  ;;  %11189 = vst [vmem:[#allocation103_spill] sm:$0xff] %v9866_v29  ;;  %v9875_v9 = vadd.f32 %v6497_v20, %v9151_v62  ;;  %v4942_v14 = vmul.f32 %v9506_v54, %v9450_v30 }
 0x29f   : > { %v6924_v10 = vpop.eup %6923  ;;  %5179 = vadd.xlane.f32.xlu0 %v5178_v6  ;;  %6931 = vtanh.f32 %v5004_v41  ;;  %v4975_v36 = vadd.f32 %v4943_v25, %v11190_v17  ;;  %v3568_v6 = vmul.f32 %v3536_v24, %v9839_v31  ;;  %v9883_v48 = vmul.f32 0.5, %v11190_v17 }
 0x2a0   : > { %v5133_v60 = vmul.f32 %v9159_v7, %v5097_v47  ;;  %v5064_v1 = vadd.f32 1.0, %v6924_v10  ;;  %v3538_v41 = vmul.f32 0.044715, %v9875_v9  ;;  %v9887_v0 = vadd.f32 %v3458_v38, %v9151_v62 }
 0x2a1   : > { %v5007_v10 = vmul.f32 0.7978846, %v4975_v36  ;;  %v4974_v25 = vadd.f32 %v4942_v14, %v9450_v30  ;;  %v3567_v54 = vmul.f32 %v3535_v5, %v9850_v27  ;;  %v4945_v17 = vmul.f32 %v9510_v12, %v9458_v23 }
 0x2a2   : > { %v5187_v20 = vsel %vm1789_vm1, %v5133_v60, 0.0  ;;  %v5096_v47 = vmul.f32 %v5064_v1, %v9764_v59  ;;  %v3537_v24 = vmul.f32 0.044715, %v9887_v0  ;;  %v9897_v22 = vadd.f32 %v6500_v53, %v9151_v62 }
 0x2a3   : > { %v6926_v29 = vpop.eup %6925  ;;  %5188 = vadd.xlane.f32.xlu1 %v5187_v20  ;;  %6933 = vtanh.f32 %v5007_v10  ;;  %v5006_v59 = vmul.f32 0.7978846, %v4974_v25  ;;  %v9901_v1 = vmul.f32 %v3568_v6, %v9839_v31  ;;  %v3570_v36 = vmul.f32 %v3538_v41, %v9875_v9  ;;  %v3468_v20 = vpop.f32.mrf.mxu0 }
 0x2a4   : > { %v5132_v38 = vmul.f32 %v9159_v7, %v5096_v47  ;;  %v5067_v60 = vadd.f32 1.0, %v6926_v29  ;;  %v9905_v5 = vmul.f32 0.5, %v9450_v30  ;;  %v4977_v14 = vadd.f32 %v4945_v17, %v9458_v23 }
 0x2a5   : > { %6935 = vtanh.f32 %v5006_v59  ;;  %v3540_v29 = vmul.f32 0.044715, %v9897_v22  ;;  %v9912_v6 = vmul.f32 %v3567_v54, %v9850_v27  ;;  %v9915_v41 = vmul.f32 0.5, %v9458_v23 }
 0x2a6   : > { %v5184_v12 = vsel %vm1789_vm1, %v5132_v38, 0.0  ;;  %v5099_v53 = vmul.f32 %v5067_v60, %v9800_v34  ;;  %v6928_v47 = vpop.eup %6927  ;;  %v5009_v30 = vmul.f32 0.7978846, %v4977_v14  ;;  %v4944_v10 = vmul.f32 %v9561_v11, %v9494_v44 }
 0x2a7   : > { %5185 = vadd.xlane.f32.xlu0 %v5184_v12  ;;  %v5066_v17 = vadd.f32 1.0, %v6928_v47  ;;  %v3569_v34 = vmul.f32 %v3537_v24, %v9887_v0  ;;  %v9922_v38 = vadd.f32 %v3468_v20, %v9151_v62  ;;  %v9925_v60 = vmul.f32 %v3570_v36, %v9875_v9 }
 0x2a8   : > { %v5135_v25 = vmul.f32 %v9159_v7, %v5099_v53  ;;  %6937 = vtanh.f32 %v5009_v30  ;;  %v4976_v54 = vadd.f32 %v4944_v10, %v9494_v44  ;;  %v4947_v23 = vmul.f32 %v9564_v18, %v9500_v37  ;;  %v11192_v53 = vld [vmem:[#allocation85_spill] sm:$0xff] }
 0x2a9   : > { %v6930_v59 = vpop.eup %6929  ;;  %v5098_v14 = vmul.f32 %v5066_v17, %v9811_v26  ;;  %v3572_v12 = vmul.f32 %v3540_v29, %v9897_v22  ;;  %v9934_v24 = vmul.f32 0.5, %v9494_v44  ;;  %v4946_v47 = vmul.f32 %v11192_v53, %v9544_v63  ;;  %v11194_v29 = vld [vmem:[#allocation81_spill] sm:$0xff] }
 0x2aa   : > { %v5193_v11 = vsel %vm1789_vm1, %v5135_v25, 0.0  ;;  %v5069_v62 = vadd.f32 1.0, %v6930_v59  ;;  %v5008_v36 = vmul.f32 0.7978846, %v4976_v54  ;;  %v4979_v20 = vadd.f32 %v4947_v23, %v9500_v37  ;;  %v11195_v25 = vld [vmem:[#allocation87_spill] sm:$0xff] }
 0x2ab   : > { %5194 = vadd.xlane.f32.xlu1 %v5193_v11  ;;  %v5134_v18 = vmul.f32 %v9159_v7, %v5098_v14  ;;  %v9941_v10 = vmul.f32 %v3569_v34, %v9887_v0  ;;  %v3539_v26 = vmul.f32 0.044715, %v9922_v38  ;;  %v4949_v44 = vmul.f32 %v11195_v25, %v11194_v29 }
 0x2ac   : > { %v6932_v30 = vpop.eup %6931  ;;  %v5101_v17 = vmul.f32 %v5069_v62, %v9857_v19  ;;  %6939 = vtanh.f32 %v5008_v36  ;;  %v5011_v54 = vmul.f32 0.7978846, %v4979_v20  ;;  %v9949_v11 = vmul.f32 0.5, %v9500_v37 }
 0x2ad   : > { %11193 = vst [vmem:[#allocation30_spill] sm:$0xff] %v9941_v10  ;;  %v5068_v59 = vadd.f32 1.0, %v6932_v30  ;;  %v5190_v23 = vsel %vm1789_vm1, %v5134_v18, 0.0  ;;  %v4978_v14 = vadd.f32 %v4946_v47, %v9544_v63  ;;  %v4981_v34 = vadd.f32 %v4949_v44, %v11194_v29 }
 0x2ae   : > { %5191 = vadd.xlane.f32.xlu0 %v5190_v23  ;;  %v5137_v53 = vmul.f32 %v9159_v7, %v5101_v17  ;;  %v9956_v25 = vmul.f32 %v3572_v12, %v9897_v22  ;;  %6941 = vtanh.f32 %v5011_v54  ;;  %v9959_v19 = vmul.f32 0.5, %v9544_v63 }
 0x2af   : > { %v5100_v10 = vmul.f32 %v5068_v59, %v9861_v45  ;;  %v5010_v62 = vmul.f32 0.7978846, %v4978_v14  ;;  %v5013_v36 = vmul.f32 0.7978846, %v4981_v34  ;;  %v4948_v37 = vmul.f32 %v9641_v4, %v9593_v16 }
 0x2b0   : > { %v6934_v20 = vpop.eup %6933  ;;  %v5199_v47 = vsel %vm1789_vm1, %v5137_v53, 0.0  ;;  %v3571_v18 = vmul.f32 %v3539_v26, %v9922_v38  ;;  %v4951_v45 = vmul.f32 %v9669_v13, %v9618_v49  ;;  %v4950_v44 = vmul.f32 %v9742_v58, %v9680_v42 }
 0x2b1   : > { %v5136_v30 = vmul.f32 %v9159_v7, %v5100_v10  ;;  %5200 = vadd.xlane.f32.xlu1 %v5199_v47  ;;  %v5071_v12 = vadd.f32 1.0, %v6934_v20  ;;  %6943 = vtanh.f32 %v5010_v62  ;;  %v4980_v63 = vadd.f32 %v4948_v37, %v9593_v16 }
 0x2b2   : > { %v6936_v17 = vpop.eup %6935  ;;  %v9973_v59 = vmul.f32 0.5, %v11194_v29  ;;  %6945 = vtanh.f32 %v5013_v36  ;;  %v4983_v10 = vadd.f32 %v4951_v45, %v9618_v49  ;;  %v4982_v23 = vadd.f32 %v4950_v44, %v9680_v42 }
 0x2b3   : > { %v5196_v4 = vsel %vm1789_vm1, %v5136_v30, 0.0  ;;  %v5103_v13 = vmul.f32 %v5071_v12, %v9883_v48  ;;  %v5070_v26 = vadd.f32 1.0, %v6936_v17  ;;  %v5012_v54 = vmul.f32 0.7978846, %v4980_v63 }
 0x2b4   : > { %5197 = vadd.xlane.f32.xlu0 %v5196_v4  ;;  %v9979_v14 = vmul.f32 %v3571_v18, %v9922_v38  ;;  %v5015_v58 = vmul.f32 0.7978846, %v4983_v10  ;;  %v4953_v34 = vmul.f32 %v9750_v3, %v9695_v33  ;;  %v4952_v29 = vmul.f32 %v9769_v61, %v9724_v2 }
 0x2b5   : > { %v6938_v53 = vpop.eup %6937  ;;  %v5139_v62 = vmul.f32 %v9159_v7, %v5103_v13  ;;  %v5102_v36 = vmul.f32 %v5070_v26, %v9905_v5  ;;  %6947 = vtanh.f32 %v5012_v54  ;;  %v5014_v48 = vmul.f32 0.7978846, %v4982_v23 }
 0x2b6   : > { %v5073_v37 = vadd.f32 1.0, %v6938_v53  ;;  %6949 = vtanh.f32 %v5015_v58  ;;  %v4985_v20 = vadd.f32 %v4953_v34, %v9695_v33  ;;  %v4984_v47 = vadd.f32 %v4952_v29, %v9724_v2 }
 0x2b7   : > { %v5205_v30 = vsel %vm1789_vm1, %v5139_v62, 0.0  ;;  %v5138_v3 = vmul.f32 %v9159_v7, %v5102_v36  ;;  %v9992_v18 = vmul.f32 0.5, %v9593_v16  ;;  %6951 = vtanh.f32 %v5014_v48  ;;  %v11196_v48 = vld [vmem:[#allocation28_spill] sm:$0xff] }
 0x2b8   : > { %5206 = vadd.xlane.f32.xlu1 %v5205_v30  ;;  %v5105_v61 = vmul.f32 %v5073_v37, %v9915_v41  ;;  %v5017_v5 = vmul.f32 0.7978846, %v4985_v20  ;;  %v5016_v45 = vmul.f32 0.7978846, %v4984_v47  ;;  %v4955_v12 = vmul.f32 %v9791_v21, %v9738_v52 }
 0x2b9   : > { %v6940_v63 = vpop.eup %6939  ;;  %v5202_v44 = vsel %vm1789_vm1, %v5138_v3, 0.0  ;;  %v9999_v17 = vmul.f32 0.5, %v9618_v49  ;;  %v10002_v4 = vmul.f32 0.5, %v9680_v42  ;;  %v4954_v16 = vmul.f32 %v9825_v32, %v9779_v56 }
 0x2ba   : > { %5203 = vadd.xlane.f32.xlu0 %v5202_v44  ;;  %v5141_v41 = vmul.f32 %v9159_v7, %v5105_v61  ;;  %v5072_v10 = vadd.f32 1.0, %v6940_v63  ;;  %6953 = vtanh.f32 %v5017_v5  ;;  %v4987_v13 = vadd.f32 %v4955_v12, %v9738_v52 }
 0x2bb   : > { %v6942_v21 = vpop.eup %6941  ;;  %v10009_v26 = vmul.f32 0.5, %v9695_v33  ;;  %6955 = vtanh.f32 %v5016_v45  ;;  %v4986_v49 = vadd.f32 %v4954_v16, %v9779_v56  ;;  %v4957_v42 = vmul.f32 %v9835_v15, %v9788_v28 }
 0x2bc   : > { %v5211_v54 = vsel %vm1789_vm1, %v5141_v41, 0.0  ;;  %v5104_v32 = vmul.f32 %v5072_v10, %v9934_v24  ;;  %v5075_v23 = vadd.f32 1.0, %v6942_v21  ;;  %v5019_v58 = vmul.f32 0.7978846, %v4987_v13  ;;  %v11197_v24 = vld [vmem:[#allocation45_spill] sm:$0xff]  ;;  %v11198_v10 = vld [vmem:[#allocation34_spill] sm:$0xff] }
 0x2bd   : > { %5212 = vadd.xlane.f32.xlu1 %v5211_v54  ;;  %v10017_v34 = vmul.f32 0.5, %v9724_v2  ;;  %v5018_v29 = vmul.f32 0.7978846, %v4986_v49  ;;  %v4989_v33 = vadd.f32 %v4957_v42, %v9788_v28  ;;  %v4956_v53 = vmul.f32 %v9871_v43, %v9832_v40  ;;  %v11199_v13 = vld [vmem:[#allocation41_spill] sm:$0xff] }
 0x2be   : > { %v6944_v62 = vpop.eup %6943  ;;  %v5140_v36 = vmul.f32 %v9159_v7, %v5104_v32  ;;  %v5107_v15 = vmul.f32 %v5075_v23, %v9949_v11  ;;  %6957 = vtanh.f32 %v5019_v58  ;;  %v2207_v37 = vmul.f32 %v11197_v24, %v11196_v48 }
 0x2bf   : > { %v6946_v20 = vpop.eup %6945  ;;  %v5074_v47 = vadd.f32 1.0, %v6944_v62  ;;  %6959 = vtanh.f32 %v5018_v29  ;;  %v5021_v2 = vmul.f32 0.7978846, %v4989_v33  ;;  %v4988_v30 = vadd.f32 %v4956_v53, %v9832_v40  ;;  %v11200_v53 = vld [vmem:[#allocation35_spill] sm:$0xff] }
 0x2c0   : > { %v5208_v3 = vsel %vm1789_vm1, %v5140_v36, 0.0  ;;  %v5143_v61 = vmul.f32 %v9159_v7, %v5107_v15  ;;  %v5077_v43 = vadd.f32 1.0, %v6946_v20  ;;  %v2239_v5 = vadd.f32 %v2207_v37, %v11196_v48  ;;  %v11201_v62 = vld [vmem:[#allocation51_spill] sm:$0xff] }
 0x2c1   : > { %5209 = vadd.xlane.f32.xlu0 %v5208_v3  ;;  %v5106_v11 = vmul.f32 %v5074_v47, %v9959_v19  ;;  %v10032_v45 = vmul.f32 0.5, %v9738_v52  ;;  %6961 = vtanh.f32 %v5021_v2  ;;  %v5020_v12 = vmul.f32 0.7978846, %v4988_v30  ;;  %v11203_v3 = vld [vmem:[#allocation37_spill] sm:$0xff] }
 0x2c2   : > { %v6948_v63 = vpop.eup %6947  ;;  %v5217_v44 = vsel %vm1789_vm1, %v5143_v61, 0.0  ;;  %v5109_v16 = vmul.f32 %v5077_v43, %v9973_v59  ;;  %v2271_v41 = vmul.f32 0.7978846, %v2239_v5  ;;  %v2208_v21 = vmul.f32 %v11199_v13, %v11198_v10  ;;  %v11205_v13 = vld [vmem:[#allocation56_spill] sm:$0xff] }
 0x2c3   : > { %v6950_v49 = vpop.eup %6949  ;;  %5218 = vadd.xlane.f32.xlu1 %v5217_v44  ;;  %v5142_v42 = vmul.f32 %v9159_v7, %v5106_v11  ;;  %v5076_v54 = vadd.f32 1.0, %v6948_v63  ;;  %v4858_v19 = vmul.f32 0.5, %v9779_v56  ;;  %6963 = vtanh.f32 %v5020_v12 }
 0x2c4   : > { %v6952_v52 = vpop.eup %6951  ;;  %v5145_v32 = vmul.f32 %v9159_v7, %v5109_v16  ;;  %v5079_v23 = vadd.f32 1.0, %v6950_v49  ;;  %6965 = vtanh.f32 %v2271_v41  ;;  %v2240_v58 = vadd.f32 %v2208_v21, %v11198_v10  ;;  %v11204_v41 = vld [vmem:[#allocation46_spill] sm:$0xff] }
 0x2c5   : > { %v5214_v59 = vsel %vm1789_vm1, %v5142_v42, 0.0  ;;  %v5108_v29 = vmul.f32 %v5076_v54, %v9992_v18  ;;  %v5078_v33 = vadd.f32 1.0, %v6952_v52  ;;  %v2242_v36 = vadd.f32 %v11201_v62, %v11200_v53  ;;  %v11202_v18 = vld [vmem:[#allocation26_spill] sm:$0xff]  ;;  %v11206_v52 = vld [vmem:[#allocation29_spill] sm:$0xff] }
 0x2c6   : > { %5215 = vadd.xlane.f32.xlu0 %v5214_v59  ;;  %v5223_v15 = vsel %vm1789_vm1, %v5145_v32, 0.0  ;;  %v5111_v56 = vmul.f32 %v5079_v23, %v9999_v17  ;;  %v4861_v24 = vmul.f32 0.5, %v9788_v28  ;;  %v2272_v37 = vmul.f32 0.7978846, %v2240_v58  ;;  %v11207_v32 = vld [vmem:[#allocation40_spill] sm:$0xff] }
 0x2c7   : > { %v6954_v20 = vpop.eup %6953  ;;  %5224 = vadd.xlane.f32.xlu1 %v5223_v15  ;;  %v5144_v47 = vmul.f32 %v9159_v7, %v5108_v29  ;;  %v5110_v2 = vmul.f32 %v5078_v33, %v10002_v4  ;;  %v2274_v30 = vmul.f32 0.7978846, %v2242_v36  ;;  %v2209_v61 = vmul.f32 %v11203_v3, %v11202_v18 }
 0x2c8   : > { %v6956_v43 = vpop.eup %6955  ;;  %v5147_v5 = vmul.f32 %v9159_v7, %v5111_v56  ;;  %v5081_v11 = vadd.f32 1.0, %v6954_v20  ;;  %v4860_v12 = vmul.f32 0.5, %v9832_v40  ;;  %6967 = vtanh.f32 %v2272_v37  ;;  %v11208_v20 = vld [vmem:[#allocation49_spill] sm:$0xff] }
 0x2c9   : > { %v5220_v28 = vsel %vm1789_vm1, %v5144_v47, 0.0  ;;  %v5146_v17 = vmul.f32 %v9159_v7, %v5110_v2  ;;  %v5080_v63 = vadd.f32 1.0, %v6956_v43  ;;  %6969 = vtanh.f32 %v2274_v30  ;;  %v11209_v47 = vld [vmem:[#allocation22_spill] sm:$0xff] }
 0x2ca   : > { %5221 = vadd.xlane.f32.xlu0 %v5220_v28  ;;  %v5229_v4 = vsel %vm1789_vm1, %v5147_v5, 0.0  ;;  %v5113_v44 = vmul.f32 %v5081_v11, %v10009_v26  ;;  %v2241_v16 = vadd.f32 %v2209_v61, %v11202_v18  ;;  %v2244_v21 = vadd.f32 %v11205_v13, %v11204_v41 }
 0x2cb   : > { %v6958_v49 = vpop.eup %6957  ;;  %5230 = vadd.xlane.f32.xlu1 %v5229_v4  ;;  %v5226_v40 = vsel %vm1789_vm1, %v5146_v17, 0.0  ;;  %v5112_v42 = vmul.f32 %v5080_v63, %v10017_v34  ;;  %v2111_v54 = vmul.f32 0.5, %v11196_v48  ;;  %v2211_v23 = vmul.f32 %v11207_v32, %v11206_v52 }
 0x2cc   : > { %v6960_v58 = vpop.eup %6959  ;;  %v5149_v59 = vmul.f32 %v9159_v7, %v5113_v44  ;;  %v5083_v26 = vadd.f32 1.0, %v6958_v49  ;;  %v2273_v29 = vmul.f32 0.7978846, %v2241_v16  ;;  %v2276_v33 = vmul.f32 0.7978846, %v2244_v21  ;;  %v11210_v44 = vld [vmem:[#allocation33_spill] sm:$0xff] }
 0x2cd   : > { %v5148_v62 = vmul.f32 %v9159_v7, %v5112_v42  ;;  %v5082_v36 = vadd.f32 1.0, %v6960_v58  ;;  %v2112_v15 = vmul.f32 0.5, %v11198_v10  ;;  %v2243_v56 = vadd.f32 %v2211_v23, %v11206_v52  ;;  %v11211_v16 = vld [vmem:[#allocation44_spill] sm:$0xff]  ;;  %v11212_v58 = vld [vmem:[#allocation53_spill] sm:$0xff] }
 0x2ce   : > { %v6962_v37 = vpop.eup %6961  ;;  %5227 = vadd.xlane.f32.xlu0 %v5226_v40  ;;  %v5235_v34 = vsel %vm1789_vm1, %v5149_v59, 0.0  ;;  %v5115_v48 = vmul.f32 %v5083_v26, %v10032_v45  ;;  %6971 = vtanh.f32 %v2273_v29  ;;  %v2246_v2 = vadd.f32 %v11209_v47, %v11208_v20  ;;  %v11213_v59 = vld [vmem:[#allocation39_spill] sm:$0xff] }
 0x2cf   : > { %5236 = vadd.xlane.f32.xlu1 %v5235_v34  ;;  %v5232_v30 = vsel %vm1789_vm1, %v5148_v62, 0.0  ;;  %v5114_v3 = vmul.f32 %v5082_v36, %v4858_v19  ;;  %v5085_v61 = vadd.f32 1.0, %v6962_v37  ;;  %6973 = vtanh.f32 %v2276_v33  ;;  %v11214_v36 = vld [vmem:[#allocation27_spill] sm:$0xff] }
 0x2d0   : > { %v6964_v43 = vpop.eup %6963  ;;  %v5151_v10 = vmul.f32 %v9159_v7, %v5115_v48  ;;  %v2114_v5 = vmul.f32 0.5, %v11200_v53  ;;  %v2275_v11 = vmul.f32 0.7978846, %v2243_v56  ;;  %v2278_v28 = vmul.f32 0.7978846, %v2246_v2  ;;  %v11215_v56 = vld [vmem:[#allocation62_spill] sm:$0xff] }
 0x2d1   : > { %v6966_v17 = vpop.eup %6965  ;;  %v5150_v45 = vmul.f32 %v9159_v7, %v5114_v3  ;;  %v5117_v63 = vmul.f32 %v5085_v61, %v4861_v24  ;;  %v5084_v4 = vadd.f32 1.0, %v6964_v43  ;;  %v2213_v13 = vmul.f32 %v11211_v16, %v11210_v44  ;;  %v11217_v3 = vld [vmem:[#allocation59_spill] sm:$0xff] }
 0x2d2   : > { %5233 = vadd.xlane.f32.xlu0 %v5232_v30  ;;  %v5241_v19 = vsel %vm1789_vm1, %v5151_v10, 0.0  ;;  %v2335_v21 = vadd.f32 1.0, %v6966_v17  ;;  %v2113_v49 = vmul.f32 0.5, %v11202_v18  ;;  %6975 = vtanh.f32 %v2275_v11  ;;  %v11220_v16 = vld [vmem:[#allocation63_spill] sm:$0xff] }
 0x2d3   : > { %5242 = vadd.xlane.f32.xlu1 %v5241_v19  ;;  %v5238_v53 = vsel %vm1789_vm1, %v5150_v45, 0.0  ;;  %v5153_v40 = vmul.f32 %v9159_v7, %v5117_v63  ;;  %v5116_v42 = vmul.f32 %v5084_v4, %v4860_v12  ;;  %6977 = vtanh.f32 %v2278_v28  ;;  %v11219_v4 = vld [vmem:[#allocation60_spill] sm:$0xff]  ;;  %v7061_v19 = vld [vmem:[%s8664_s24] sm:$0x7]  ;;  %s867_s24 = scalar_lea.vmem %s10773_s6, %s7340_s22  ;;  %s6105_s22 = sshll.u32 %s7381_s20, 3 }
 0x2d4   : > { %v2367_v32 = vmul.f32 %v2335_v21, %v2111_v54  ;;  %v2116_v24 = vmul.f32 0.5, %v11204_v41  ;;  %v2245_v23 = vadd.f32 %v2213_v13, %v11210_v44  ;;  %v2248_v26 = vadd.f32 %v11213_v59, %v11212_v58  ;;  %v11216_v54 = vld [vmem:[#allocation20_spill] sm:$0xff]  ;;  %s833_s20 = scalar_lea.vmem [#allocation2], %s7791_s13 }
 0x2d5   : > { %v6968_v29 = vpop.eup %6967  ;;  %v5247_v33 = vsel %vm1789_vm1, %v5153_v40, 0.0  ;;  %v5152_v18 = vmul.f32 %v9159_v7, %v5116_v42  ;;  %v10092_v62 = vmul.f32 0.5, %v11206_v52  ;;  %v2215_v12 = vmul.f32 %v11215_v56, %v11214_v36  ;;  %v11218_v52 = vld [vmem:[#allocation32_spill] sm:$0xff] }
 0x2d6   : > { %v6970_v37 = vpop.eup %6969  ;;  %5239 = vadd.xlane.f32.xlu0 %v5238_v53  ;;  %v2403_v41 = vmul.f32 %v11216_v54, %v2367_v32  ;;  %v2336_v34 = vadd.f32 1.0, %v6968_v29  ;;  %v2277_v48 = vmul.f32 0.7978846, %v2245_v23  ;;  %v2280_v47 = vmul.f32 0.7978846, %v2248_v26  ;;  %v11222_v42 = vld [vmem:[#allocation68_spill] sm:$0xff] }
 0x2d7   : > { %5248 = vadd.xlane.f32.xlu1 %v5247_v33  ;;  %v5244_v2 = vsel %vm1789_vm1, %v5152_v18, 0.0  ;;  %v2338_v30 = vadd.f32 1.0, %v6970_v37  ;;  %v2247_v7 = vadd.f32 %v2215_v12, %v11214_v36  ;;  %v3606_v61 = vadd.f32 %v11218_v52, %v11217_v3 }
 0x2d8   : > { %v2435_v43 = vsel %vm1789_vm1, %v2403_v41, 0.0  ;;  %v2368_v10 = vmul.f32 %v2336_v34, %v2112_v15  ;;  %v2118_v11 = vmul.f32 0.5, %v11208_v20  ;;  %6979 = vtanh.f32 %v2277_v48  ;;  %v11223_v41 = vld [vmem:[#allocation43_spill] sm:$0xff]  ;;  %v11224_v34 = vld [vmem:[#allocation54_spill] sm:$0xff] }
 0x2d9   : > { %v2370_v28 = vmul.f32 %v2338_v30, %v2114_v5  ;;  %6981 = vtanh.f32 %v2280_v47  ;;  %v2279_v17 = vmul.f32 0.7978846, %v2247_v7  ;;  %v3638_v45 = vmul.f32 0.7978846, %v3606_v61  ;;  %v11221_v5 = vld [vmem:[#allocation58_spill] sm:$0xff]  ;;  %v11225_v30 = vld [vmem:[#allocation69_spill] sm:$0xff] }
 0x2da   : > { %5245 = vadd.xlane.f32.xlu0 %v5244_v2  ;;  %v2404_v63 = vmul.f32 %v11216_v54, %v2368_v10  ;;  %v3605_v13 = vadd.f32 %v11220_v16, %v11219_v4  ;;  %v3897_v21 = vrot.slane %v7061_v19, 1  ;;  %v5250_v53 = vrot.slane %v7061_v19, 2 }
 0x2db   : > { %v6972_v40 = vpop.eup %6971  ;;  %2436 = vadd.xlane.f32.xlu1 %v2435_v43  ;;  %v2406_v15 = vmul.f32 %v11216_v54, %v2370_v28  ;;  %v10109_v20 = vmul.f32 0.5, %v11210_v44  ;;  %6983 = vtanh.f32 %v2279_v17  ;;  %v3608_v32 = vadd.f32 %v11222_v42, %v11221_v5  ;;  %v11228_v28 = vld [vmem:[#allocation52_spill] sm:$0xff] }
 0x2dc   : > { %v6974_v23 = vpop.eup %6973  ;;  %v2337_v59 = vadd.f32 1.0, %v6972_v40  ;;  %v10114_v26 = vmul.f32 0.5, %v11212_v58  ;;  %6985 = vtanh.f32 %v3638_v45  ;;  %v3637_v29 = vmul.f32 0.7978846, %v3605_v13  ;;  %6575 = vpush %v3897_v21  ;;  %v11229_v40 = vld [vmem:[#allocation19_spill] sm:$0xff] }
 0x2dd   : > { %v2438_v33 = vsel %vm1789_vm1, %v2404_v63, 0.0  ;;  %v2340_v18 = vadd.f32 1.0, %v6974_v23  ;;  %v10118_v56 = vmul.f32 0.5, %v11214_v36  ;;  %6577 = vpush %v5250_v53  ;;  %v3640_v44 = vmul.f32 0.7978846, %v3608_v32  ;;  %v11226_v36 = vld [vmem:[#allocation65_spill] sm:$0xff] }
 0x2de   : > { %2439 = vadd.xlane.f32.xlu0 %v2438_v33  ;;  %v2444_v12 = vsel %vm1789_vm1, %v2406_v15, 0.0  ;;  %v2369_v37 = vmul.f32 %v2337_v59, %v2113_v49  ;;  %6987 = vtanh.f32 %v3637_v29  ;;  %v3607_v58 = vadd.f32 %v11224_v34, %v11223_v41  ;;  %v11227_v49 = vld [vmem:[#allocation48_spill] sm:$0xff]  ;;  %v11230_v15 = vld [vmem:[#allocation55_spill] sm:$0xff]  ;;  %v11231_v23 = vld [vmem:[#allocation50_spill] sm:$0xff] }
 0x2df   : > { %v6976_v48 = vpop.eup %6975  ;;  %2445 = vadd.xlane.f32.xlu1 %v2444_v12  ;;  %v2372_v47 = vmul.f32 %v2340_v18, %v2116_v24  ;;  %v10124_v2 = vmul.f32 0.5, %v11217_v3  ;;  %6989 = vtanh.f32 %v3640_v44  ;;  %v3610_v7 = vadd.f32 %v11226_v36, %v11225_v30  ;;  %v11232_v59 = vld [vmem:[#allocation47_spill] sm:$0xff]  ;;  %v11233_v44 = vld [vmem:[#allocation25_spill] sm:$0xff]  ;;  %v11234_v12 = vld [vmem:[#allocation66_spill] sm:$0xff] }
 0x2e0   : > { %v6978_v52 = vpop.eup %6977  ;;  %v2405_v61 = vmul.f32 %v11216_v54, %v2369_v37  ;;  %v2339_v43 = vadd.f32 1.0, %v6976_v48  ;;  %v3639_v10 = vmul.f32 0.7978846, %v3607_v58  ;;  %v3609_v17 = vadd.f32 %v11228_v28, %v11227_v49  ;;  %v11236_v28 = vld [vmem:[#allocation72_spill] sm:$0xff] }
 0x2e1   : > { %v2408_v45 = vmul.f32 %v11216_v54, %v2372_v47  ;;  %v2342_v63 = vadd.f32 1.0, %v6978_v52  ;;  %v10133_v24 = vmul.f32 0.5, %v11219_v4  ;;  %v3642_v3 = vmul.f32 0.7978846, %v3610_v7 }
 0x2e2   : > { %v2441_v16 = vsel %vm1789_vm1, %v2405_v61, 0.0  ;;  %v2371_v13 = vmul.f32 %v2339_v43, %v10092_v62  ;;  %6991 = vtanh.f32 %v3639_v10  ;;  %v3641_v19 = vmul.f32 0.7978846, %v3609_v17  ;;  %v11235_v10 = vld [vmem:[#allocation36_spill] sm:$0xff] }
 0x2e3   : > { %2442 = vadd.xlane.f32.xlu0 %v2441_v16  ;;  %v2450_v21 = vsel %vm1789_vm1, %v2408_v45, 0.0  ;;  %v2374_v53 = vmul.f32 %v2342_v63, %v2118_v11  ;;  %6993 = vtanh.f32 %v3642_v3  ;;  %v3612_v42 = vadd.f32 %v11230_v15, %v11229_v40  ;;  %v11237_v3 = vld [vmem:[#allocation71_spill] sm:$0xff]  ;;  %v11238_v16 = vld [vmem:[#allocation73_spill] sm:$0xff] }
 0x2e4   : > { %2451 = vadd.xlane.f32.xlu1 %v2450_v21  ;;  %v2407_v32 = vmul.f32 %v11216_v54, %v2371_v13  ;;  %v3480_v4 = vmul.f32 0.5, %v11221_v5  ;;  %6995 = vtanh.f32 %v3641_v19  ;;  %v3611_v29 = vadd.f32 %v11232_v59, %v11231_v23  ;;  %v11239_v59 = vld [vmem:[#allocation57_spill] sm:$0xff] }
 0x2e5   : > { %v6980_v62 = vpop.eup %6979  ;;  %v2410_v33 = vmul.f32 %v11216_v54, %v2374_v53  ;;  %v10146_v18 = vmul.f32 0.5, %v11223_v41  ;;  %v3644_v11 = vmul.f32 0.7978846, %v3612_v42  ;;  %v3614_v37 = vadd.f32 %v11234_v12, %v11233_v44 }
 0x2e6   : > { %v6982_v34 = vpop.eup %6981  ;;  %v2447_v58 = vsel %vm1789_vm1, %v2407_v32, 0.0  ;;  %v2341_v48 = vadd.f32 1.0, %v6980_v62  ;;  %v10152_v5 = vmul.f32 0.5, %v11225_v30  ;;  %v3643_v47 = vmul.f32 0.7978846, %v3611_v29 }
 0x2e7   : > { %2448 = vadd.xlane.f32.xlu0 %v2447_v58  ;;  %v2456_v36 = vsel %vm1789_vm1, %v2410_v33, 0.0  ;;  %v2344_v7 = vadd.f32 1.0, %v6982_v34  ;;  %6997 = vtanh.f32 %v3644_v11  ;;  %v3646_v52 = vmul.f32 0.7978846, %v3614_v37 }
 0x2e8   : > { %v6984_v41 = vpop.eup %6983  ;;  %2457 = vadd.xlane.f32.xlu1 %v2456_v36  ;;  %v2373_v61 = vmul.f32 %v2341_v48, %v10109_v20  ;;  %v3481_v43 = vmul.f32 0.5, %v11227_v49  ;;  %6999 = vtanh.f32 %v3643_v47  ;;  %v3613_v17 = vadd.f32 %v11236_v28, %v11235_v10  ;;  %v11243_v28 = vld [vmem:[#allocation76_spill] sm:$0xff] }
 0x2e9   : > { %v6986_v45 = vpop.eup %6985  ;;  %v2376_v30 = vmul.f32 %v2344_v7, %v10114_v26  ;;  %v2343_v63 = vadd.f32 1.0, %v6984_v41  ;;  %7001 = vtanh.f32 %v3646_v52  ;;  %v3616_v13 = vadd.f32 %v11238_v16, %v11237_v3  ;;  %v11240_v26 = vld [vmem:[#allocation75_spill] sm:$0xff] }
 0x2ea   : > { %v2409_v19 = vmul.f32 %v11216_v54, %v2373_v61  ;;  %v3702_v21 = vadd.f32 1.0, %v6986_v45  ;;  %v10164_v53 = vmul.f32 0.5, %v11229_v40  ;;  %v3645_v20 = vmul.f32 0.7978846, %v3613_v17  ;;  %v11242_v61 = vld [vmem:[#allocation64_spill] sm:$0xff] }
 0x2eb   : > { %v6988_v49 = vpop.eup %6987  ;;  %v2412_v15 = vmul.f32 %v11216_v54, %v2376_v30  ;;  %v2375_v42 = vmul.f32 %v2343_v63, %v10118_v56  ;;  %v3648_v32 = vmul.f32 0.7978846, %v3616_v13  ;;  %v3615_v29 = vadd.f32 %v11240_v26, %v11239_v59  ;;  %v11241_v56 = vld [vmem:[#allocation24_spill] sm:$0xff] }
 0x2ec   : > { %v6990_v62 = vpop.eup %6989  ;;  %v2453_v33 = vsel %vm1789_vm1, %v2409_v19, 0.0  ;;  %v3734_v11 = vmul.f32 %v3702_v21, %v10124_v2  ;;  %v3701_v12 = vadd.f32 1.0, %v6988_v49  ;;  %7003 = vtanh.f32 %v3645_v20  ;;  %v11244_v19 = vld [vmem:[#allocation70_spill] sm:$0xff] }
 0x2ed   : > { %2454 = vadd.xlane.f32.xlu0 %v2453_v33  ;;  %v2462_v40 = vsel %vm1789_vm1, %v2412_v15, 0.0  ;;  %v2411_v37 = vmul.f32 %v11216_v54, %v2375_v42  ;;  %v3704_v34 = vadd.f32 1.0, %v6990_v62  ;;  %7005 = vtanh.f32 %v3648_v32 }
 0x2ee   : > { %2463 = vadd.xlane.f32.xlu1 %v2462_v40  ;;  %v3770_v58 = vmul.f32 %v11241_v56, %v3734_v11  ;;  %v3733_v48 = vmul.f32 %v3701_v12, %v10133_v24  ;;  %v3483_v47 = vmul.f32 0.5, %v11231_v23  ;;  %v3647_v36 = vmul.f32 0.7978846, %v3615_v29  ;;  %v11246_v12 = vld [vmem:[#allocation74_spill] sm:$0xff] }
 0x2ef   : > { %v6992_v7 = vpop.eup %6991  ;;  %v2459_v2 = vsel %vm1789_vm1, %v2411_v37, 0.0  ;;  %v3736_v52 = vmul.f32 %v3704_v34, %v3480_v4  ;;  %v3486_v41 = vmul.f32 0.5, %v11233_v44  ;;  %v3618_v17 = vadd.f32 %v11243_v28, %v11242_v61  ;;  %v11245_v4 = vld [vmem:[#allocation77_spill] sm:$0xff]  ;;  %v11247_v40 = vld [vmem:[#allocation82_spill] sm:$0xff] }
 0x2f0   : > { %v6994_v54 = vpop.eup %6993  ;;  %v3804_v45 = vsel %vm1789_vm1, %v3770_v58, 0.0  ;;  %v3769_v30 = vmul.f32 %v11241_v56, %v3733_v48  ;;  %v3703_v63 = vadd.f32 1.0, %v6992_v7  ;;  %7007 = vtanh.f32 %v3647_v36  ;;  %v11248_v34 = vld [vmem:[#allocation78_spill] sm:$0xff]  ;;  %v11249_v58 = vld [vmem:[#allocation83_spill] sm:$0xff] }
 0x2f1   : > { %v6996_v24 = vpop.eup %6995  ;;  %2460 = vadd.xlane.f32.xlu0 %v2459_v2  ;;  %v3772_v23 = vmul.f32 %v11241_v56, %v3736_v52  ;;  %v3706_v16 = vadd.f32 1.0, %v6994_v54  ;;  %v3650_v13 = vmul.f32 0.7978846, %v3618_v17  ;;  %v3617_v21 = vadd.f32 %v11245_v4, %v11244_v19 }
 0x2f2   : > { %3805 = vadd.xlane.f32.xlu1 %v3804_v45  ;;  %v3735_v44 = vmul.f32 %v3703_v63, %v10146_v18  ;;  %v3705_v20 = vadd.f32 1.0, %v6996_v24  ;;  %v3485_v49 = vmul.f32 0.5, %v11235_v10  ;;  %v3488_v15 = vmul.f32 0.5, %v11237_v3 }
 0x2f3   : > { %v3801_v42 = vsel %vm1789_vm1, %v3769_v30, 0.0  ;;  %v3738_v32 = vmul.f32 %v3706_v16, %v10152_v5  ;;  %7009 = vtanh.f32 %v3650_v13  ;;  %v3649_v26 = vmul.f32 0.7978846, %v3617_v21 }
 0x2f4   : > { %v6998_v29 = vpop.eup %6997  ;;  %v3810_v62 = vsel %vm1789_vm1, %v3772_v23, 0.0  ;;  %v3771_v33 = vmul.f32 %v11241_v56, %v3735_v44  ;;  %v3737_v11 = vmul.f32 %v3705_v20, %v3481_v43  ;;  %v3620_v18 = vadd.f32 %v11247_v40, %v11246_v12  ;;  %v11251_v44 = vld [vmem:[#allocation84_spill] sm:$0xff] }
 0x2f5   : > { %v7000_v37 = vpop.eup %6999  ;;  %3802 = vadd.xlane.f32.xlu0 %v3801_v42  ;;  %v3774_v10 = vmul.f32 %v11241_v56, %v3738_v32  ;;  %v3708_v3 = vadd.f32 1.0, %v6998_v29  ;;  %7011 = vtanh.f32 %v3649_v26  ;;  %v3619_v5 = vadd.f32 %v11249_v58, %v11248_v34 }
 0x2f6   : > { %v7002_v48 = vpop.eup %7001  ;;  %3811 = vadd.xlane.f32.xlu1 %v3810_v62  ;;  %v3707_v36 = vadd.f32 1.0, %v7000_v37  ;;  %v3487_v7 = vmul.f32 0.5, %v11239_v59  ;;  %v3490_v2 = vmul.f32 0.5, %v11242_v61  ;;  %v3652_v43 = vmul.f32 0.7978846, %v3620_v18  ;;  %v11250_v61 = vld [vmem:[#allocation88_spill] sm:$0xff] }
 0x2f7   : > { %v3807_v52 = vsel %vm1789_vm1, %v3771_v33, 0.0  ;;  %v3740_v28 = vmul.f32 %v3708_v3, %v10164_v53  ;;  %v3710_v17 = vadd.f32 1.0, %v7002_v48  ;;  %v3651_v54 = vmul.f32 0.7978846, %v3619_v5  ;;  %v11253_v18 = vld [vmem:[#allocation86_spill] sm:$0xff] }
 0x2f8   : > { %v3816_v45 = vsel %vm1789_vm1, %v3774_v10, 0.0  ;;  %v3773_v30 = vmul.f32 %v11241_v56, %v3737_v11  ;;  %v3739_v63 = vmul.f32 %v3707_v36, %v3483_v47  ;;  %7013 = vtanh.f32 %v3652_v43  ;;  %v11252_v47 = vld [vmem:[#allocation89_spill] sm:$0xff]  ;;  %v11254_v37 = vld [vmem:[#allocation90_spill] sm:$0xff] }
 0x2f9   : > { %v7004_v24 = vpop.eup %7003  ;;  %3808 = vadd.xlane.f32.xlu0 %v3807_v52  ;;  %v3776_v23 = vmul.f32 %v11241_v56, %v3740_v28  ;;  %v3742_v59 = vmul.f32 %v3710_v17, %v3486_v41  ;;  %7015 = vtanh.f32 %v3651_v54  ;;  %v3622_v16 = vadd.f32 %v11250_v61, %v9549_v55  ;;  %v11255_v28 = vld [vmem:[#allocation91_spill] sm:$0xff]  ;;  %v11256_v17 = vld [vmem:[#allocation96_spill] sm:$0xff]  ;;  %v11257_v61 = vld [vmem:[#allocation98_spill] sm:$0xff] }
 0x2fa   : > { %v7006_v13 = vpop.eup %7005  ;;  %3817 = vadd.xlane.f32.xlu1 %v3816_v45  ;;  %v3709_v53 = vadd.f32 1.0, %v7004_v24  ;;  %v3489_v4 = vmul.f32 0.5, %v11244_v19  ;;  %v10209_v21 = vmul.f32 0.5, %v11246_v12  ;;  %v3621_v20 = vadd.f32 %v11252_v47, %v11251_v44  ;;  %v11259_v47 = vld [vmem:[#allocation99_spill] sm:$0xff] }
 0x2fb   : > { %v3775_v42 = vmul.f32 %v11241_v56, %v3739_v63  ;;  %v3712_v32 = vadd.f32 1.0, %v7006_v13  ;;  %v10215_v41 = vmul.f32 0.5, %v11248_v34  ;;  %v3654_v26 = vmul.f32 0.7978846, %v3622_v16  ;;  %v2530_v16 = vpop.xlane.xlu1 %2529 }
 0x2fc   : > { %v3813_v29 = vsel %vm1789_vm1, %v3773_v30, 0.0  ;;  %v3822_v62 = vsel %vm1789_vm1, %v3776_v23, 0.0  ;;  %v3741_v33 = vmul.f32 %v3709_v53, %v3485_v49  ;;  %v3653_v11 = vmul.f32 0.7978846, %v3621_v20 }
 0x2fd   : > { %v7008_v19 = vpop.eup %7007  ;;  %3814 = vadd.xlane.f32.xlu0 %v3813_v29  ;;  %v3778_v12 = vmul.f32 %v11241_v56, %v3742_v59  ;;  %v3744_v40 = vmul.f32 %v3712_v32, %v3488_v15  ;;  %7017 = vtanh.f32 %v3654_v26  ;;  %v3624_v10 = vadd.f32 %v11254_v37, %v11253_v18  ;;  %v2527_v37 = vpop.xlane.xlu0 %2526 }
 0x2fe   : > { %3823 = vadd.xlane.f32.xlu1 %v3822_v62  ;;  %v3711_v3 = vadd.f32 1.0, %v7008_v19  ;;  %v10223_v34 = vmul.f32 0.5, %v9549_v55  ;;  %v10226_v58 = vmul.f32 0.5, %v11251_v44  ;;  %7019 = vtanh.f32 %v3653_v11  ;;  %v11258_v44 = vld [vmem:[#allocation95_spill] sm:$0xff]  ;;  %v11260_v11 = vld [vmem:[#allocation101_spill] sm:$0xff] }
 0x2ff   : > { %v3819_v49 = vsel %vm1789_vm1, %v3775_v42, 0.0  ;;  %v10230_v5 = vmul.f32 0.5, %v11253_v18  ;;  %v3656_v48 = vmul.f32 0.7978846, %v3624_v10  ;;  %v3623_v15 = vadd.f32 %v9706_v35, %v9632_v50 }
 0x300   : > { %v7010_v36 = vpop.eup %7009  ;;  %v3777_v43 = vmul.f32 %v11241_v56, %v3741_v33  ;;  %v3780_v52 = vmul.f32 %v11241_v56, %v3744_v40  ;;  %v3743_v55 = vmul.f32 %v3711_v3, %v3487_v7  ;;  %v3626_v54 = vadd.f32 %v11256_v17, %v11255_v28  ;;  %v11262_v17 = vld [vmem:[#allocation103_spill] sm:$0xff] }
 0x301   : > { %3820 = vadd.xlane.f32.xlu0 %v3819_v49  ;;  %v3828_v45 = vsel %vm1789_vm1, %v3778_v12, 0.0  ;;  %v3714_v30 = vadd.f32 1.0, %v7010_v36  ;;  %7021 = vtanh.f32 %v3656_v48  ;;  %v3655_v63 = vmul.f32 0.7978846, %v3623_v15 }
 0x302   : > { %v7012_v24 = vpop.eup %7011  ;;  %3829 = vadd.xlane.f32.xlu1 %v3828_v45  ;;  %v3779_v23 = vmul.f32 %v11241_v56, %v3743_v55  ;;  %v10241_v35 = vmul.f32 0.5, %v9632_v50  ;;  %v3658_v59 = vmul.f32 0.7978846, %v3626_v54  ;;  %v3625_v7 = vadd.f32 %v11257_v61, %v9718_v39 }
 0x303   : > { %v3746_v13 = vmul.f32 %v3714_v30, %v3490_v2  ;;  %v3713_v53 = vadd.f32 1.0, %v7012_v24  ;;  %7023 = vtanh.f32 %v3655_v63  ;;  %v3628_v20 = vadd.f32 %v11259_v47, %v11258_v44  ;;  %v11263_v30 = vld [vmem:[#allocation15_spill] sm:$0xff]  ;;  %v5156_v47 = vpop.xlane.xlu0 %5155 }
 0x304   : > { %v3825_v42 = vsel %vm1789_vm1, %v3777_v43, 0.0  ;;  %v3834_v32 = vsel %vm1789_vm1, %v3780_v52, 0.0  ;;  %7025 = vtanh.f32 %v3658_v59  ;;  %v3657_v26 = vmul.f32 0.7978846, %v3625_v7  ;;  %v5159_v43 = vpop.xlane.xlu1 %5158 }
 0x305   : > { %v7014_v29 = vpop.eup %7013  ;;  %3826 = vadd.xlane.f32.xlu0 %v3825_v42  ;;  %v3782_v50 = vmul.f32 %v11241_v56, %v3746_v13  ;;  %v3745_v62 = vmul.f32 %v3713_v53, %v3489_v4  ;;  %v3660_v33 = vmul.f32 0.7978846, %v3628_v20  ;;  %v3627_v2 = vadd.f32 %v11260_v11, %v9760_v51  ;;  %v11264_v13 = vld [vmem:[#allocation14_spill] sm:$0xff] }
 0x306   : > { %v7016_v19 = vpop.eup %7015  ;;  %3835 = vadd.xlane.f32.xlu1 %v3834_v32  ;;  %v3716_v12 = vadd.f32 1.0, %v7014_v29  ;;  %v10253_v40 = vmul.f32 0.5, %v11255_v28  ;;  %7027 = vtanh.f32 %v3657_v26  ;;  %v3630_v18 = vadd.f32 %v9854_v46, %v9785_v8  ;;  %v11261_v28 = vld [vmem:[#allocation100_spill] sm:$0xff] }
 0x307   : > { %v3831_v10 = vsel %vm1789_vm1, %v3779_v23, 0.0  ;;  %v3781_v3 = vmul.f32 %v11241_v56, %v3745_v62  ;;  %v3715_v4 = vadd.f32 1.0, %v7016_v19  ;;  %7029 = vtanh.f32 %v3660_v33 }
 0x308   : > { %v3748_v49 = vmul.f32 %v3716_v12, %v10209_v21  ;;  %v3659_v48 = vmul.f32 0.7978846, %v3627_v2  ;;  %v3662_v15 = vmul.f32 0.7978846, %v3630_v18  ;;  %v10261_v36 = vadd.f32 %v9130_v57, %v2530_v16 }
 0x309   : > { %3832 = vadd.xlane.f32.xlu0 %v3831_v10  ;;  %v3840_v52 = vsel %vm1789_vm1, %v3782_v50, 0.0  ;;  %v3747_v46 = vmul.f32 %v3715_v4, %v10215_v41  ;;  %v10266_v55 = vmul.f32 0.5, %v9718_v39  ;;  %v3629_v54 = vadd.f32 %v11262_v17, %v11261_v28 }
 0x30a   : > { %v7018_v45 = vpop.eup %7017  ;;  %3841 = vadd.xlane.f32.xlu1 %v3840_v52  ;;  %v3784_v21 = vmul.f32 %v11241_v56, %v3748_v49  ;;  %7031 = vtanh.f32 %v3659_v48  ;;  %v2755_v63 = vrot.slane %v10261_v36, %v11263_v30  ;;  %v10274_v24 = vadd.f32 %v9130_v57, %v2527_v37  ;;  %v11277_v36 = vld [vmem:[#allocation61_spill] sm:$0xff] }
 0x30b   : > { %v7020_v23 = vpop.eup %7019  ;;  %v3783_v41 = vmul.f32 %v11241_v56, %v3747_v46  ;;  %v3718_v59 = vadd.f32 1.0, %v7018_v45  ;;  %7033 = vtanh.f32 %v3662_v15  ;;  %v3661_v39 = vmul.f32 0.7978846, %v3629_v54  ;;  %v5162_v15 = vpop.xlane.xlu0 %5161 }
 0x30c   : > { %v3837_v61 = vsel %vm1789_vm1, %v3781_v3, 0.0  ;;  %v3717_v7 = vadd.f32 1.0, %v7020_v23  ;;  %v3500_v16 = vmul.f32 0.5, %v11258_v44  ;;  %v2751_v53 = vrot.slane %v10274_v24, %v11264_v13 }
 0x30d   : > { %3838 = vadd.xlane.f32.xlu0 %v3837_v61  ;;  %v3846_v20 = vsel %vm1789_vm1, %v3784_v21, 0.0  ;;  %v3750_v42 = vmul.f32 %v3718_v59, %v10223_v34  ;;  %7035 = vtanh.f32 %v3661_v39  ;;  %s10283_s0 = spop %6575  ;;  %v3632_v32 = vadd.f32 %v9901_v1, %v9839_v31  ;;  %v5165_v34 = vpop.xlane.xlu1 %5164 }
 0x30e   : > { %v7022_v26 = vpop.eup %7021  ;;  %3847 = vadd.xlane.f32.xlu1 %v3846_v20  ;;  %v3843_v29 = vsel %vm1789_vm1, %v3783_v41, 0.0  ;;  %v3749_v44 = vmul.f32 %v3717_v7, %v10226_v58  ;;  %v10290_v50 = vmul.f32 0.5, %v9760_v51  ;;  %s6578_s28 = spop %6577  ;;  %v3631_v62 = vadd.f32 %v9912_v6, %v9850_v27 }
 0x30f   : > { %v3786_v33 = vmul.f32 %v11241_v56, %v3750_v42  ;;  %v3720_v11 = vadd.f32 1.0, %v7022_v26  ;;  %v10295_v2 = vstv %s6578_s28  ;;  %v3664_v1 = vmul.f32 0.7978846, %v3632_v32  ;;  %s886_s28 = scalar_lea.vmem %s10779_s12, %s6105_s22 }
 0x310   : > { %v7024_v19 = vpop.eup %7023  ;;  %v3785_v12 = vmul.f32 %v11241_v56, %v3749_v44  ;;  %v5255_v18 = vadd.f32 %v10295_v2, %v5159_v43  ;;  %v3663_v58 = vmul.f32 0.7978846, %v3631_v62  ;;  %v5254_v51 = vadd.f32 %v10295_v2, %v5156_v47 }
 0x311   : > { %v7026_v37 = vpop.eup %7025  ;;  %3844 = vadd.xlane.f32.xlu0 %v3843_v29  ;;  %v3852_v10 = vsel %vm1789_vm1, %v3786_v33, 0.0  ;;  %v3752_v6 = vmul.f32 %v3720_v11, %v10230_v5  ;;  %v3719_v3 = vadd.f32 1.0, %v7024_v19  ;;  %7037 = vtanh.f32 %v3664_v1  ;;  %v5171_v41 = vpop.xlane.xlu1 %5170  ;;  %v11265_v29 = vld [vmem:[#allocation30_spill] sm:$0xff] }
 0x312   : > { %3853 = vadd.xlane.f32.xlu1 %v3852_v10  ;;  %v3722_v4 = vadd.f32 1.0, %v7026_v37  ;;  %v3502_v49 = vmul.f32 0.5, %v9785_v8  ;;  %v5333_v48 = vrot.slane %v5255_v18, %v11263_v30  ;;  %7039 = vtanh.f32 %v3663_v58 }
 0x313   : > { %v7028_v43 = vpop.eup %7027  ;;  %v3849_v52 = vsel %vm1789_vm1, %v3785_v12, 0.0  ;;  %v3788_v46 = vmul.f32 %v11241_v56, %v3752_v6  ;;  %v3751_v17 = vmul.f32 %v3719_v3, %v10241_v35  ;;  %v5329_v54 = vrot.slane %v5254_v51, %v11264_v13 }
 0x314   : > { %v7030_v5 = vpop.eup %7029  ;;  %v3754_v45 = vmul.f32 %v3722_v4, %v10253_v40  ;;  %v3721_v21 = vadd.f32 1.0, %v7028_v43  ;;  %v3634_v8 = vadd.f32 %v9925_v60, %v9875_v9  ;;  %v5257_v23 = vadd.f32 %v10295_v2, %v5165_v34 }
 0x315   : > { %3850 = vadd.xlane.f32.xlu0 %v3849_v52  ;;  %v3858_v59 = vsel %vm1789_vm1, %v3788_v46, 0.0  ;;  %v3787_v39 = vmul.f32 %v11241_v56, %v3751_v17  ;;  %v3724_v61 = vadd.f32 1.0, %v7030_v5  ;;  %v5334_v35 = vsel %vm2620_vm3, %v5333_v48, %v5329_v54  ;;  %v5177_v10 = vpop.xlane.xlu1 %5176 }
 0x316   : > { %3859 = vadd.xlane.f32.xlu1 %v3858_v59  ;;  %v3790_v7 = vmul.f32 %v11241_v56, %v3754_v45  ;;  %v3753_v40 = vmul.f32 %v3721_v21, %v10266_v55  ;;  %v3666_v47 = vmul.f32 0.7978846, %v3634_v8  ;;  %v5342_v20 = vrot.slane %v5257_v23, %v11263_v30  ;;  %v5168_v55 = vpop.xlane.xlu0 %5167 }
 0x317   : > { %v7032_v60 = vpop.eup %7031  ;;  %v3855_v42 = vsel %vm1789_vm1, %v3787_v39, 0.0  ;;  %v3756_v32 = vmul.f32 %v3724_v61, %v3500_v16  ;;  %v3501_v26 = vmul.f32 0.5, %v11261_v28  ;;  %v3633_v44 = vadd.f32 %v11265_v29, %v9887_v0 }
 0x318   : > { %v7034_v62 = vpop.eup %7033  ;;  %v3864_v34 = vsel %vm1789_vm1, %v3790_v7, 0.0  ;;  %v3789_v33 = vmul.f32 %v11241_v56, %v3753_v40  ;;  %v3723_v11 = vadd.f32 1.0, %v7032_v60  ;;  %7041 = vtanh.f32 %v3666_v47 }
 0x319   : > { %3856 = vadd.xlane.f32.xlu0 %v3855_v42  ;;  %v3792_v1 = vmul.f32 %v11241_v56, %v3756_v32  ;;  %v3726_v19 = vadd.f32 1.0, %v7034_v62  ;;  %v3665_v12 = vmul.f32 0.7978846, %v3633_v44  ;;  %v5256_v16 = vadd.f32 %v10295_v2, %v5162_v15 }
 0x31a   : > { %v7036_v18 = vpop.eup %7035  ;;  %3865 = vadd.xlane.f32.xlu1 %v3864_v34  ;;  %v3755_v28 = vmul.f32 %v3723_v11, %v10290_v50  ;;  %v3504_v58 = vmul.f32 0.5, %v9839_v31  ;;  %v3503_v51 = vmul.f32 0.5, %v9850_v27  ;;  %v3636_v37 = vadd.f32 %v9956_v25, %v9897_v22  ;;  %v5174_v5 = vpop.xlane.xlu0 %5173 }
 0x31b   : > { %v3861_v6 = vsel %vm1789_vm1, %v3789_v33, 0.0  ;;  %v3758_v3 = vmul.f32 %v3726_v19, %v3502_v49  ;;  %v3725_v4 = vadd.f32 1.0, %v7036_v18  ;;  %7043 = vtanh.f32 %v3665_v12 }
 0x31c   : > { %v3791_v48 = vmul.f32 %v11241_v56, %v3755_v28  ;;  %v5338_v15 = vrot.slane %v5256_v16, %v11264_v13  ;;  %v3668_v43 = vmul.f32 0.7978846, %v3636_v37  ;;  %v5259_v50 = vadd.f32 %v10295_v2, %v5171_v41  ;;  %v11266_v37 = vld [vmem:[#allocation102_spill] sm:$0xff] }
 0x31d   : > { %3862 = vadd.xlane.f32.xlu0 %v3861_v6  ;;  %v3870_v31 = vsel %vm1789_vm1, %v3792_v1, 0.0  ;;  %v3794_v27 = vmul.f32 %v11241_v56, %v3758_v3  ;;  %v3757_v52 = vmul.f32 %v3725_v4, %v3501_v26  ;;  %v3635_v25 = vadd.f32 %v9979_v14, %v9922_v38  ;;  %v11268_v6 = vld [vmem:[#allocation97_spill] sm:$0xff] }
 0x31e   : > { %v7038_v46 = vpop.eup %7037  ;;  %3871 = vadd.xlane.f32.xlu1 %v3870_v31  ;;  %v3506_v49 = vmul.f32 0.5, %v9875_v9  ;;  %v5343_v17 = vsel %vm2620_vm3, %v5342_v20, %v5338_v15  ;;  %7045 = vtanh.f32 %v3668_v43  ;;  %v5351_v54 = vrot.slane %v5259_v50, %v11263_v30  ;;  %v11270_v50 = vld [vmem:[#allocation92_spill] sm:$0xff]  ;;  %v11271_v31 = vld [vmem:[#allocation93_spill] sm:$0xff] }
 0x31f   : > { %v7040_v45 = vpop.eup %7039  ;;  %v3867_v21 = vsel %vm1789_vm1, %v3791_v48, 0.0  ;;  %v3793_v8 = vmul.f32 %v11241_v56, %v3757_v52  ;;  %v3728_v23 = vadd.f32 1.0, %v7038_v46  ;;  %v5470_v41 = vsel %vm2757_vm4, %v5343_v17, %v5334_v35 }
 0x320   : > { %v3727_v59 = vadd.f32 1.0, %v7040_v45  ;;  %v3667_v14 = vmul.f32 0.7978846, %v3635_v25  ;;  %v5258_v39 = vadd.f32 %v10295_v2, %v5168_v55  ;;  %v5261_v9 = vadd.f32 %v10295_v2, %v5177_v10  ;;  %v11272_v25 = vld [vmem:[#allocation94_spill] sm:$0xff] }
 0x321   : > { %v5183_v61 = vpop.xlane.xlu1 %5182  ;;  %3868 = vadd.xlane.f32.xlu0 %v3867_v21  ;;  %v3876_v7 = vsel %vm1789_vm1, %v3794_v27, 0.0  ;;  %v3760_v40 = vmul.f32 %v3728_v23, %v3504_v58  ;;  %v5260_v47 = vadd.f32 %v10295_v2, %v5174_v5  ;;  %v3873_v44 = vsel %vm1789_vm1, %v3793_v8, 0.0 }
 0x322   : > { %v5263_v20 = vadd.f32 %v10295_v2, %v5183_v61  ;;  %3877 = vadd.xlane.f32.xlu1 %v3876_v7  ;;  %v3759_v60 = vmul.f32 %v3727_v59, %v3503_v51  ;;  %7047 = vtanh.f32 %v3667_v14  ;;  %v5347_v35 = vrot.slane %v5258_v39, %v11264_v13  ;;  %v11281_v59 = vld [vmem:[#allocation80_spill] sm:$0xff]  ;;  %v11283_v39 = vld [vmem:[#allocation79_spill] sm:$0xff] }
 0x323   : > { %v5360_v42 = vrot.slane %v5261_v9, %v11263_v30  ;;  %v3796_v32 = vmul.f32 %v11241_v56, %v3760_v40  ;;  %v5356_v26 = vrot.slane %v5260_v47, %v11264_v13  ;;  %v7158_v33 = vmov 1  }
 0x324   : > { %v5369_v29 = vrot.slane %v5263_v20, %v11263_v30  ;;  %v3795_v62 = vmul.f32 %v11241_v56, %v3759_v60  ;;  %v5352_v34 = vsel %vm2620_vm3, %v5351_v54, %v5347_v35  ;;  %6656 = vset.pattern.permute.xlu1 %v7158_v33  ;;  %v3505_v16 = vmul.f32 0.5, %v9887_v0  ;;  %v11275_v54 = vld [vmem:[#allocation38_spill] sm:$0xff] }
 0x325   : > { %v7042_v11 = vpop.eup %7041  ;;  %3874 = vadd.xlane.f32.xlu0 %v3873_v44  ;;  %v3882_v55 = vsel %vm1789_vm1, %v3796_v32, 0.0  ;;  %v5471_v1 = vsel %vm2759_vm5, %v5352_v34, %v5470_v41  ;;  %v5361_v19 = vsel %vm2620_vm3, %v5360_v42, %v5356_v26  ;;  %v7159_v28 = vmov 0  }
 0x326   : > { %3883 = vadd.xlane.f32.xlu1 %v3882_v55  ;;  %v3730_v12 = vadd.f32 1.0, %v7042_v11  ;;  %v10364_v18 = vsel %vm2761_vm6, %v5361_v19, %v5471_v1  ;;  %6655 = vset.pattern.permute.xlu0 %v7159_v28  ;;  %v3879_v58 = vsel %vm1789_vm1, %v3795_v62, 0.0  ;;  %v11267_v10 = vrot.slane %v11266_v37, %v11264_v13 }
 0x327   : > { %v11269_v3 = vrot.slane %v11268_v6, %v11263_v30  ;;  %v2756_v43 = vsel %vm2620_vm3, %v2755_v63, %v2751_v53  ;;  %v2774_v27 = vsel %vm2763_vm7, %v11271_v31, %v11270_v50  ;;  %v11276_v24 = vrot.slane %v11275_v54, %v11263_v30  ;;  %v11279_v53 = vld [vmem:[#allocation67_spill] sm:$0xff] }
 0x328   : > { %v5180_v51 = vpop.xlane.xlu0 %5179  ;;  %v7044_v4 = vpop.eup %7043  ;;  %v3762_v48 = vmul.f32 %v3730_v12, %v3506_v49  ;;  %v2775_v46 = vsel %vm2765_vm8, %v11272_v25, %v2774_v27  ;;  %v11273_v49 = vld [vmem:[#allocation31_spill] sm:$0xff]  ;;  %v11278_v63 = vrot.slane %v11277_v36, %v11264_v13  ;;  %v11280_v45 = vrot.slane %v11279_v53, %v11263_v30 }
 0x329   : > { %v2747_v0 = vsel %vm2620_vm3, %v11269_v3, %v11267_v10  ;;  %v5262_v15 = vadd.f32 %v10295_v2, %v5180_v51  ;;  %3880 = vadd.xlane.f32.xlu0 %v3879_v58  ;;  %v3729_v52 = vadd.f32 1.0, %v7044_v4  ;;  %v11274_v17 = vrot.slane %v11273_v49, %v11264_v13 }
 0x32a   : > { %v10404_v21 = vsel %vm2620_vm3, %v11280_v45, %v11278_v63  ;;  %v3798_v8 = vmul.f32 %v11241_v56, %v3762_v48  ;;  %v2776_v41 = vsel %vm2767_vm9, %v2747_v0, %v2775_v46  ;;  %v11282_v14 = vrot.slane %v11281_v59, %v11264_v13 }
 0x32b   : > { %v10395_v5 = vsel %vm2620_vm3, %v11276_v24, %v11274_v17  ;;  %v5365_v23 = vrot.slane %v5262_v15, %v11264_v13  ;;  %v11284_v9 = vrot.slane %v11283_v39, %v11263_v30  ;;  %v7046_v7 = vpop.eup %7045  ;;  %v3761_v40 = vmul.f32 %v3729_v52, %v3505_v16  ;;  %v7062_v17 = vld [vmem:[%s8534_s26] sm:$0xff] }
 0x32c   : > { %v3508_v47 = vmul.f32 0.5, %v9897_v22  ;;  %v5189_v20 = vpop.xlane.xlu1 %5188  ;;  %v10420_v60 = vsel %vm2769_vm10, %v2756_v43, %v2776_v41  ;;  %v3888_v35 = vsel %vm1789_vm1, %v3798_v8, 0.0  ;;  %v3732_v42 = vadd.f32 1.0, %v7046_v7  ;;  %v7063_v8 = vld [vmem:[%s8534_s26 + $0x8] sm:$0xff] }
 0x32d   : > { %v10416_v61 = vsel %vm2620_vm3, %v11284_v9, %v11282_v14  ;;  %v5370_v32 = vsel %vm2620_vm3, %v5369_v29, %v5365_v23  ;;  %v5265_v26 = vadd.f32 %v10295_v2, %v5189_v20  ;;  %3889 = vadd.xlane.f32.xlu1 %v3888_v35  ;;  %v3797_v44 = vmul.f32 %v11241_v56, %v3761_v40 }
 0x32e   : > { %v3764_v62 = vmul.f32 %v3732_v42, %v3508_v47  ;;  %v3507_v19 = vmul.f32 0.5, %v9922_v38  ;;  %v5473_v40 = vsel %vm2763_vm7, %v5370_v32, %v10364_v18  ;;  %v7160_v18 = vmov 2  }
 0x32f   : > { %v5378_v34 = vrot.slane %v5265_v26, %v11263_v30  ;;  %v7048_v11 = vpop.eup %7047  ;;  %v3885_v22 = vsel %vm1789_vm1, %v3797_v44, 0.0 }
 0x330   : > { %v5186_v55 = vpop.xlane.xlu0 %5185  ;;  %3886 = vadd.xlane.f32.xlu0 %v3885_v22  ;;  %v3800_v1 = vmul.f32 %v11241_v56, %v3764_v62  ;;  %v3731_v12 = vadd.f32 1.0, %v7048_v11 }
 0x331   : > { %v5264_v29 = vadd.f32 %v10295_v2, %v5186_v55 }
 0x332   : > { %v3894_v16 = vsel %vm1789_vm1, %v3800_v1, 0.0  ;;  %v3763_v58 = vmul.f32 %v3731_v12, %v3507_v19 }
 0x333   : > { %v5374_v51 = vrot.slane %v5264_v29, %v11264_v13  ;;  %3895 = vadd.xlane.f32.xlu1 %v3894_v16 }
 0x334   : > { %v5195_v37 = vpop.xlane.xlu1 %5194  ;;  %v3799_v10 = vmul.f32 %v11241_v56, %v3763_v58 }
 0x335   : > { %v5379_v6 = vsel %vm2620_vm3, %v5378_v34, %v5374_v51  ;;  %v5267_v3 = vadd.f32 %v10295_v2, %v5195_v37 }
 0x336   : > { %v3891_v0 = vsel %vm1789_vm1, %v3799_v10, 0.0  ;;  %v5474_v42 = vsel %vm2765_vm8, %v5379_v6, %v5473_v40 }
 0x337   : > { %v5387_v38 = vrot.slane %v5267_v3, %v11263_v30  ;;  %3892 = vadd.xlane.f32.xlu0 %v3891_v0  ;;  %v5192_v4 = vpop.xlane.xlu0 %5191 }
 0x338   : > { %v5266_v48 = vadd.f32 %v10295_v2, %v5192_v4 }
 0x33a   : > { %v5383_v15 = vrot.slane %v5266_v48, %v11264_v13  ;;  %v5201_v43 = vpop.xlane.xlu1 %5200 }
 0x33b   : > { %v5269_v50 = vadd.f32 %v10295_v2, %v5201_v43 }
 0x33d   : > { %v5198_v31 = vpop.xlane.xlu0 %5197  ;;  %v5396_v56 = vrot.slane %v5269_v50, %v11263_v30 }
 0x33e   : > { %v5268_v27 = vadd.f32 %v10295_v2, %v5198_v31 }
 0x340   : > { %v5392_v52 = vrot.slane %v5268_v27, %v11264_v13 }
 0x341   : > { %v5207_v25 = vpop.xlane.xlu1 %5206 }
 0x342   : > { %v5271_v46 = vadd.f32 %v10295_v2, %v5207_v25  ;;  %v5397_v7 = vsel %vm2620_vm3, %v5396_v56, %v5392_v52 }
 0x343   : > { %v5204_v49 = vpop.xlane.xlu0 %5203 }
 0x344   : > { %3934 = vperm.xlu1 %6656, %v7062_v17   ;;  %v5405_v54 = vrot.slane %v5271_v46, %v11263_v30  ;;  %v5270_v24 = vadd.f32 %v10295_v2, %v5204_v49 }
 0x346   : > { %v5401_v36 = vrot.slane %v5270_v24, %v11264_v13  ;;  %v5213_v63 = vpop.xlane.xlu1 %5212 }
 0x347   : > { %v5273_v53 = vadd.f32 %v10295_v2, %v5213_v63 }
 0x348   : > { %6657 = vset.pattern.permute.xlu1 %v7159_v28  ;;  %v5406_v45 = vsel %vm2620_vm3, %v5405_v54, %v5401_v36  ;;  %v5388_v28 = vsel %vm2620_vm3, %v5387_v38, %v5383_v15 }
 0x349   : > { %2574 = vperm.xlu1 %6657, %v7063_v8   ;;  %v5414_v23 = vrot.slane %v5273_v53, %v11263_v30  ;;  %v5475_v62 = vsel %vm2767_vm9, %v5388_v28, %v5474_v42 }
 0x34a   : > { %v5210_v41 = vpop.xlane.xlu0 %5209  ;;  %v10470_v11 = vsel %vm2769_vm10, %v5397_v7, %v5475_v62 }
 0x34b   : > { %v5272_v59 = vadd.f32 %v10295_v2, %v5210_v41 }
 0x34c   : > { %v5219_v14 = vpop.xlane.xlu1 %5218 }
 0x34d   : > { %2569 = vperm.xlu0 %6655, %v7062_v17   ;;  %6658 = vset.pattern.permute.xlu1 %v7158_v33  ;;  %v5410_v39 = vrot.slane %v5272_v59, %v11264_v13  ;;  %v5275_v9 = vadd.f32 %v10295_v2, %v5219_v14 }
 0x34e   : > { %3938 = vperm.xlu1 %6658, %v7063_v8  }
 0x34f   : > { %v5415_v47 = vsel %vm2620_vm3, %v5414_v23, %v5410_v39  ;;  %v5423_v20 = vrot.slane %v5275_v9, %v11263_v30  ;;  %v5216_v35 = vpop.xlane.xlu0 %5215 }
 0x350   : > { %v5477_v33 = vsel %vm2757_vm4, %v5415_v47, %v5406_v45  ;;  %v5274_v26 = vadd.f32 %v10295_v2, %v5216_v35  ;;  %v5225_v44 = vpop.xlane.xlu1 %5224 }
 0x351   : > { %v5277_v34 = vadd.f32 %v10295_v2, %v5225_v44  ;;  %6660 = vset.pattern.permute.xlu0 %v7160_v18 }
 0x352   : > { %6659 = vset.pattern.permute.xlu1 %v7160_v18  ;;  %v5419_v32 = vrot.slane %v5274_v26, %v11264_v13 }
 0x353   : > { %5287 = vperm.xlu1 %6659, %v7062_v17   ;;  %v5432_v22 = vrot.slane %v5277_v34, %v11263_v30  ;;  %v5222_v55 = vpop.xlane.xlu0 %5221 }
 0x354   : > { %v5424_v1 = vsel %vm2620_vm3, %v5423_v20, %v5419_v32  ;;  %v5276_v19 = vadd.f32 %v10295_v2, %v5222_v55  ;;  %v5231_v12 = vpop.xlane.xlu1 %5230 }
 0x355   : > { %v5478_v29 = vsel %vm2759_vm5, %v5424_v1, %v5477_v33  ;;  %v5279_v16 = vadd.f32 %v10295_v2, %v5231_v12 }
 0x356   : > { %v5428_v58 = vrot.slane %v5276_v19, %v11264_v13 }
 0x357   : > { %5291 = vperm.xlu1 %6659, %v7063_v8   ;;  %v5441_v51 = vrot.slane %v5279_v16, %v11263_v30  ;;  %v5228_v37 = vpop.xlane.xlu0 %5227 }
 0x358   : > { %v5433_v10 = vsel %vm2620_vm3, %v5432_v22, %v5428_v58  ;;  %v5278_v6 = vadd.f32 %v10295_v2, %v5228_v37  ;;  %v5237_v3 = vpop.xlane.xlu1 %5236 }
 0x359   : > { %v5479_v0 = vsel %vm2761_vm6, %v5433_v10, %v5478_v29  ;;  %v5281_v38 = vadd.f32 %v10295_v2, %v5237_v3 }
 0x35a   : > { %v5437_v4 = vrot.slane %v5278_v6, %v11264_v13 }
 0x35b   : > { %v5450_v48 = vrot.slane %v5281_v38, %v11263_v30  ;;  %v5234_v15 = vpop.xlane.xlu0 %5233 }
 0x35c   : > { %v5442_v43 = vsel %vm2620_vm3, %v5441_v51, %v5437_v4  ;;  %v5280_v50 = vadd.f32 %v10295_v2, %v5234_v15  ;;  %v5243_v31 = vpop.xlane.xlu1 %5242  ;;  %v10529_v4 = vstv %s10283_s0 }
 0x35d   : > { %v5283_v56 = vadd.f32 %v10295_v2, %v5243_v31  ;;  %v5480_v27 = vsel %vm2763_vm7, %v5442_v43, %v5479_v0 }
 0x35e   : > { %v5446_v52 = vrot.slane %v5280_v50, %v11264_v13 }
 0x35f   : > { %v5459_v25 = vrot.slane %v5283_v56, %v11263_v30  ;;  %v5240_v46 = vpop.xlane.xlu0 %5239 }
 0x360   : > { %v5451_v49 = vsel %vm2620_vm3, %v5450_v48, %v5446_v52  ;;  %v5282_v17 = vadd.f32 %v10295_v2, %v5240_v46  ;;  %v5249_v54 = vpop.xlane.xlu1 %5248 }
 0x361   : > { %v5285_v24 = vadd.f32 %v10295_v2, %v5249_v54  ;;  %v5481_v36 = vsel %vm2765_vm8, %v5451_v49, %v5480_v27 }
 0x362   : > { %v5455_v63 = vrot.slane %v5282_v17, %v11264_v13 }
 0x363   : > { %v5468_v53 = vrot.slane %v5285_v24, %v11263_v30  ;;  %v5246_v45 = vpop.xlane.xlu0 %5245 }
 0x364   : > { %v5284_v8 = vadd.f32 %v10295_v2, %v5246_v45  ;;  %v2437_v23 = vpop.xlane.xlu1 %2436  ;;  %v5460_v41 = vsel %vm2620_vm3, %v5459_v25, %v5455_v63 }
 0x365   : > { %v2535_v59 = vadd.f32 %v9130_v57, %v2437_v23  ;;  %v5482_v14 = vsel %vm2767_vm9, %v5460_v41, %v5481_v36 }
 0x366   : > { %v5464_v39 = vrot.slane %v5284_v8, %v11264_v13 }
 0x367   : > { %v2614_v9 = vrot.slane %v2535_v59, %v11264_v13  ;;  %v2440_v28 = vpop.xlane.xlu0 %2439 }
 0x368   : > { %v2536_v7 = vadd.f32 %v9130_v57, %v2440_v28  ;;  %v2446_v40 = vpop.xlane.xlu1 %2445  ;;  %v5469_v47 = vsel %vm2620_vm3, %v5468_v53, %v5464_v39 }
 0x369   : > { %v2538_v20 = vadd.f32 %v9130_v57, %v2446_v40  ;;  %v10508_v2 = vsel %vm2769_vm10, %v5469_v47, %v5482_v14 }
 0x36a   : > { %v2619_v35 = vrot.slane %v2536_v7, %v11263_v30 }
 0x36b   : > { %v2629_v42 = vrot.slane %v2538_v20, %v11263_v30 }
 0x36c   : > { %v2621_v33 = vsel %vm2620_vm3, %v2619_v35, %v2614_v9  ;;  %v2443_v26 = vpop.xlane.xlu0 %2442 }
 0x36d   : > { %v2537_v44 = vadd.f32 %v9130_v57, %v2443_v26  ;;  %v2452_v62 = vpop.xlane.xlu1 %2451 }
 0x36e   : > { %v2540_v34 = vadd.f32 %v9130_v57, %v2452_v62 }
 0x36f   : > { %v2625_v18 = vrot.slane %v2537_v44, %v11264_v13 }
 0x370   : > { %v2638_v32 = vrot.slane %v2540_v34, %v11263_v30  ;;  %v2449_v22 = vpop.xlane.xlu0 %2448 }
 0x371   : > { %v2630_v55 = vsel %vm2620_vm3, %v2629_v42, %v2625_v18  ;;  %v2539_v1 = vadd.f32 %v9130_v57, %v2449_v22  ;;  %v2458_v19 = vpop.xlane.xlu1 %2457 }
 0x372   : > { %v2758_v12 = vsel %vm2757_vm4, %v2630_v55, %v2621_v33  ;;  %v2542_v29 = vadd.f32 %v9130_v57, %v2458_v19 }
 0x373   : > { %v2634_v16 = vrot.slane %v2539_v1, %v11264_v13 }
 0x374   : > { %v2647_v58 = vrot.slane %v2542_v29, %v11263_v30 }
 0x375   : > { %v2639_v51 = vsel %vm2620_vm3, %v2638_v32, %v2634_v16 }
 0x376   : > { %v2760_v37 = vsel %vm2759_vm5, %v2639_v51, %v2758_v12  ;;  %v2455_v10 = vpop.xlane.xlu0 %2454 }
 0x377   : > { %v2541_v6 = vadd.f32 %v9130_v57, %v2455_v10  ;;  %v2464_v3 = vpop.xlane.xlu1 %2463 }
 0x378   : > { %v2544_v0 = vadd.f32 %v9130_v57, %v2464_v3 }
 0x379   : > { %v2643_v38 = vrot.slane %v2541_v6, %v11264_v13 }
 0x37a   : > { %v2656_v48 = vrot.slane %v2544_v0, %v11263_v30  ;;  %v2461_v15 = vpop.xlane.xlu0 %2460 }
 0x37b   : > { %v2648_v43 = vsel %vm2620_vm3, %v2647_v58, %v2643_v38  ;;  %v2543_v50 = vadd.f32 %v9130_v57, %v2461_v15  ;;  %v3806_v31 = vpop.xlane.xlu1 %3805 }
 0x37c   : > { %v2762_v56 = vsel %vm2761_vm6, %v2648_v43, %v2760_v37  ;;  %v3902_v52 = vadd.f32 %v10529_v4, %v3806_v31 }
 0x37d   : > { %v2652_v27 = vrot.slane %v2543_v50, %v11264_v13 }
 0x37e   : > { %v3803_v25 = vpop.xlane.xlu0 %3802  ;;  %v3980_v24 = vrot.slane %v3902_v52, %v11263_v30 }
 0x37f   : > { %v2657_v46 = vsel %vm2620_vm3, %v2656_v48, %v2652_v27  ;;  %v3901_v49 = vadd.f32 %v10529_v4, %v3803_v25  ;;  %v3812_v17 = vpop.xlane.xlu1 %3811 }
 0x380   : > { %v2764_v54 = vsel %vm2763_vm7, %v2657_v46, %v2762_v56  ;;  %v3904_v57 = vadd.f32 %v10529_v4, %v3812_v17  ;;  %v10591_v17 = vld [vmem:[%s862_s29] sm:$0x7] }
 0x381   : > { %v3976_v36 = vrot.slane %v3901_v49, %v11264_v13  ;;  %v2766_v63 = vsel %vm2765_vm8, %v10395_v5, %v2764_v54 }
 0x382   : > { %v3809_v53 = vpop.xlane.xlu0 %3808  ;;  %v2768_v45 = vsel %vm2767_vm9, %v10404_v21, %v2766_v63  ;;  %v3989_v14 = vrot.slane %v3904_v57, %v11263_v30 }
 0x383   : > { %v3981_v8 = vsel %vm2620_vm3, %v3980_v24, %v3976_v36  ;;  %v3903_v23 = vadd.f32 %v10529_v4, %v3809_v53  ;;  %v3818_v41 = vpop.xlane.xlu1 %3817  ;;  %v10551_v59 = vsel %vm2769_vm10, %v10416_v61, %v2768_v45  ;;  %v11285_v53 = vld [vmem:[#allocation17_spill] sm:$0xff] }
 0x384   : > { %v3906_v9 = vadd.f32 %v10529_v4, %v3818_v41  ;;  %v10600_v45 = vrot.slane %v10591_v17, %v11285_v53 }
 0x385   : > { %v3985_v39 = vrot.slane %v3903_v23, %v11264_v13  ;;  %v11286_v23 = vld [vmem:[#allocation16_spill] sm:$0xff] }
 0x386   : > { %v3815_v5 = vpop.xlane.xlu0 %3814  ;;  %v3998_v47 = vrot.slane %v3906_v9, %v11263_v30  ;;  %v10604_v41 = vrot.slane %v10591_v17, %v11286_v23 }
 0x387   : > { %v3990_v28 = vsel %vm2620_vm3, %v3989_v14, %v3985_v39  ;;  %v3905_v21 = vadd.f32 %v10529_v4, %v3815_v5  ;;  %v3824_v7 = vpop.xlane.xlu1 %3823  ;;  %v11287_v5 = vld [vmem:[#allocation18_spill] sm:$0xff] }
 0x388   : > { %v4117_v40 = vsel %vm2757_vm4, %v3990_v28, %v3981_v8  ;;  %v3908_v61 = vadd.f32 %v10529_v4, %v3824_v7  ;;  %v10610_v28 = vrot.slane %v10591_v17, %v11287_v5  ;;  %v2788_v7 = vmul.f32 %v10604_v41, %v10551_v59 }
 0x389   : > { %v3994_v20 = vrot.slane %v3905_v21, %v11264_v13 }
 0x38a   : > { %v3821_v35 = vpop.xlane.xlu0 %3820  ;;  %v4007_v62 = vrot.slane %v3908_v61, %v11263_v30 }
 0x38b   : > { %v3999_v42 = vsel %vm2620_vm3, %v3998_v47, %v3994_v20  ;;  %v3907_v33 = vadd.f32 %v10529_v4, %v3821_v35  ;;  %v3830_v26 = vpop.xlane.xlu1 %3829 }
 0x38c   : > { %v4118_v44 = vsel %vm2759_vm5, %v3999_v42, %v4117_v40  ;;  %v3910_v18 = vadd.f32 %v10529_v4, %v3830_v26 }
 0x38d   : > { %v4003_v34 = vrot.slane %v3907_v33, %v11264_v13 }
 0x38e   : > { %v3827_v32 = vpop.xlane.xlu0 %3826  ;;  %v4016_v12 = vrot.slane %v3910_v18, %v11263_v30 }
 0x38f   : > { %v4008_v22 = vsel %vm2620_vm3, %v4007_v62, %v4003_v34  ;;  %v3909_v55 = vadd.f32 %v10529_v4, %v3827_v32  ;;  %v3836_v1 = vpop.xlane.xlu1 %3835  ;;  %v5494_v62 = vmul.f32 %v10610_v28, %v10470_v11 }
 0x390   : > { %v4119_v19 = vsel %vm2761_vm6, %v4008_v22, %v4118_v44  ;;  %v3912_v16 = vadd.f32 %v10529_v4, %v3836_v1 }
 0x391   : > { %v4012_v29 = vrot.slane %v3909_v55, %v11264_v13 }
 0x392   : > { %v3833_v58 = vpop.xlane.xlu0 %3832  ;;  %v4025_v3 = vrot.slane %v3912_v16, %v11263_v30 }
 0x393   : > { %v4017_v51 = vsel %vm2620_vm3, %v4016_v12, %v4012_v29  ;;  %v3911_v37 = vadd.f32 %v10529_v4, %v3833_v58  ;;  %v3842_v10 = vpop.xlane.xlu1 %3841 }
 0x394   : > { %v4120_v6 = vsel %vm2763_vm7, %v4017_v51, %v4119_v19  ;;  %v3914_v38 = vadd.f32 %v10529_v4, %v3842_v10 }
 0x395   : > { %v4021_v0 = vrot.slane %v3911_v37, %v11264_v13 }
 0x396   : > { %v3839_v48 = vpop.xlane.xlu0 %3838  ;;  %v4034_v56 = vrot.slane %v3914_v38, %v11263_v30 }
 0x397   : > { %v4026_v15 = vsel %vm2620_vm3, %v4025_v3, %v4021_v0  ;;  %v3913_v43 = vadd.f32 %v10529_v4, %v3839_v48  ;;  %v3848_v50 = vpop.xlane.xlu1 %3847 }
 0x398   : > { %v4121_v31 = vsel %vm2765_vm8, %v4026_v15, %v4120_v6  ;;  %v3916_v52 = vadd.f32 %v10529_v4, %v3848_v50 }
 0x399   : > { %v4030_v27 = vrot.slane %v3913_v43, %v11264_v13 }
 0x39a   : > { %v3845_v25 = vpop.xlane.xlu0 %3844  ;;  %v4043_v36 = vrot.slane %v3916_v52, %v11263_v30 }
 0x39b   : > { %v3915_v46 = vadd.f32 %v10529_v4, %v3845_v25  ;;  %v3854_v49 = vpop.xlane.xlu1 %3853  ;;  %v4035_v54 = vsel %vm2620_vm3, %v4034_v56, %v4030_v27 }
 0x39c   : > { %v4122_v24 = vsel %vm2767_vm9, %v4035_v54, %v4121_v31  ;;  %v3918_v63 = vadd.f32 %v10529_v4, %v3854_v49 }
 0x39d   : > { %v4039_v57 = vrot.slane %v3915_v46, %v11264_v13 }
 0x39e   : > { %v3851_v8 = vpop.xlane.xlu0 %3850  ;;  %v4052_v40 = vrot.slane %v3918_v63, %v11263_v30 }
 0x39f   : > { %v3917_v14 = vadd.f32 %v10529_v4, %v3851_v8  ;;  %v3860_v39 = vpop.xlane.xlu1 %3859  ;;  %v4044_v9 = vsel %vm2620_vm3, %v4043_v36, %v4039_v57 }
 0x3a0   : > { %v10613_v21 = vsel %vm2769_vm10, %v4044_v9, %v4122_v24  ;;  %v3920_v20 = vadd.f32 %v10529_v4, %v3860_v39  ;;  %v1234_v39 = vsel %vm1233_vm11, %v10591_v17, 0.0 }
 0x3a1   : > { %v4048_v47 = vrot.slane %v3917_v14, %v11264_v13  ;;  %v4141_v61 = vmul.f32 %v10600_v45, %v10613_v21 }
 0x3a2   : > { %v3857_v35 = vpop.xlane.xlu0 %3856  ;;  %v4061_v34 = vrot.slane %v3920_v20, %v11263_v30 }
 0x3a3   : > { %v4053_v42 = vsel %vm2620_vm3, %v4052_v40, %v4048_v47  ;;  %v3919_v33 = vadd.f32 %v10529_v4, %v3857_v35  ;;  %v3866_v26 = vpop.xlane.xlu1 %3865  ;;  %v4143_v44 = vadd.f32 %v4141_v61, %v2788_v7  ;;  %v1235_v7 = vrot.slane %v1234_v39, 4 }
 0x3a4   : > { %v3922_v32 = vadd.f32 %v10529_v4, %v3866_v26 }
 0x3a5   : > { %v4057_v18 = vrot.slane %v3919_v33, %v11264_v13  ;;  %v10629_v22 = vadd.f32 %v5494_v62, %v4143_v44  ;;  %v1236_v33 = vadd.f32 %v1235_v7, %v1234_v39 }
 0x3a6   : > { %v3863_v55 = vpop.xlane.xlu0 %3862  ;;  %v4070_v16 = vrot.slane %v3922_v32, %v11263_v30 }
 0x3a7   : > { %v4062_v1 = vsel %vm2620_vm3, %v4061_v34, %v4057_v18  ;;  %v3921_v19 = vadd.f32 %v10529_v4, %v3863_v55  ;;  %v3872_v12 = vpop.xlane.xlu1 %3871  ;;  %v1237_v18 = vrot.slane %v1236_v33, 2 }
 0x3a8   : > { %v4124_v29 = vsel %vm2757_vm4, %v4062_v1, %v4053_v42  ;;  %v3924_v51 = vadd.f32 %v10529_v4, %v3872_v12 }
 0x3a9   : > { %v4066_v58 = vrot.slane %v3921_v19, %v11264_v13  ;;  %v2789_v19 = vmul.f32 %v10604_v41, %v10420_v60 }
 0x3aa   : > { %v3869_v37 = vpop.xlane.xlu0 %3868  ;;  %v4079_v38 = vrot.slane %v3924_v51, %v11263_v30  ;;  %v5495_v51 = vmul.f32 %v10610_v28, %v10508_v2  ;;  %v11288_v28 = vld [vmem:[#allocation42_spill] sm:$0xff] }
 0x3ab   : > { %v4071_v10 = vsel %vm2620_vm3, %v4070_v16, %v4066_v58  ;;  %v3923_v6 = vadd.f32 %v10529_v4, %v3869_v37  ;;  %v3878_v3 = vpop.xlane.xlu1 %3877 }
 0x3ac   : > { %v4125_v0 = vsel %vm2759_vm5, %v4071_v10, %v4124_v29  ;;  %v3926_v15 = vadd.f32 %v10529_v4, %v3878_v3  ;;  %v1238_v29 = vadd.f32 %v1237_v18, %v1236_v33 }
 0x3ad   : > { %v4075_v48 = vrot.slane %v3923_v6, %v11264_v13 }
 0x3ae   : > { %v3875_v43 = vpop.xlane.xlu0 %3874  ;;  %v4088_v52 = vrot.slane %v3926_v15, %v11263_v30  ;;  %v1239_v3 = vrot.slane %v1238_v29, 1  ;;  %v6557_v15 = vpop.f32.mrf.mxu0 }
 0x3af   : > { %v4080_v50 = vsel %vm2620_vm3, %v4079_v38, %v4075_v48  ;;  %v3925_v31 = vadd.f32 %v10529_v4, %v3875_v43  ;;  %v3884_v56 = vpop.xlane.xlu1 %3883 }
 0x3b0   : > { %v4126_v27 = vsel %vm2761_vm6, %v4080_v50, %v4125_v0  ;;  %v3928_v46 = vadd.f32 %v10529_v4, %v3884_v56  ;;  %v1240_v38 = vadd.f32 %v1239_v3, %v1238_v29 }
 0x3b1   : > { %v4084_v25 = vrot.slane %v3925_v31, %v11264_v13 }
 0x3b2   : > { %v3881_v49 = vpop.xlane.xlu0 %3880  ;;  %v4097_v57 = vrot.slane %v3928_v46, %v11263_v30  ;;  %v11289_v46 = vld [vmem:[#allocation23_spill] sm:$0xff] }
 0x3b3   : > { %v4089_v54 = vsel %vm2620_vm3, %v4088_v52, %v4084_v25  ;;  %v3927_v24 = vadd.f32 %v10529_v4, %v3881_v49  ;;  %v5580_v52 = vpop.f32.mrf.mxu0 }
 0x3b4   : > { %v4127_v36 = vsel %vm2763_vm7, %v4089_v54, %v4126_v27  ;;  %v923_v27 = vld [vmem:[%s867_s24] sm:$0xff] }
 0x3b5   : > { %v4093_v63 = vrot.slane %v3927_v24, %v11264_v13  ;;  %vm5595_vm12 = vcmp.gt.f32.partialorder %v923_v27, 0.0 }
 0x3b6   : > { %v3890_v53 = vpop.xlane.xlu1 %3889 }
 0x3b7   : > { %v4098_v8 = vsel %vm2620_vm3, %v4097_v57, %v4093_v63  ;;  %v3930_v23 = vadd.f32 %v10529_v4, %v3890_v53 }
 0x3b8   : > { %v4128_v14 = vsel %vm2765_vm8, %v4098_v8, %v4127_v36  ;;  %v924_v36 = vld [vmem:[%s867_s24 + $0x8] sm:$0xff] }
 0x3b9   : > { %v3887_v9 = vpop.xlane.xlu0 %3886  ;;  %v4106_v40 = vrot.slane %v3930_v23, %v11263_v30  ;;  %vm5596_vm14 = vcmp.gt.f32.partialorder %v924_v36, 0.0 }
 0x3ba   : > { %v3929_v5 = vadd.f32 %v10529_v4, %v3887_v9 }
 0x3bc   : > { %v4102_v47 = vrot.slane %v3929_v5, %v11264_v13  ;;  %v3896_v20 = vpop.xlane.xlu1 %3895 }
 0x3bd   : > { %v3932_v35 = vadd.f32 %v10529_v4, %v3896_v20 }
 0x3be   : > { %v4107_v61 = vsel %vm2620_vm3, %v4106_v40, %v4102_v47 }
 0x3bf   : > { %v4129_v42 = vsel %vm2767_vm9, %v4107_v61, %v4128_v14  ;;  %v4115_v62 = vrot.slane %v3932_v35, %v11263_v30  ;;  %v5705_v35 = vld [vmem:[%s886_s28] sm:$0xff] }
 0x3c0   : > { %v3893_v26 = vpop.xlane.xlu0 %3892  ;;  %v3935_v44 = vpop.permute.xlu1 %3934  ;;  %6565 = vmatprep.subr.mxu0 %v5705_v35 }
 0x3c1   : > { %v3931_v17 = vadd.f32 %v10529_v4, %v3893_v26  ;;  %v4133_v58 = vmul.f32 %v10613_v21, %v3935_v44 }
 0x3c3   : > { %v4111_v34 = vrot.slane %v3931_v17, %v11264_v13 }
 0x3c4   : > { %v2575_v32 = vpop.permute.xlu1 %2574 }
 0x3c5   : > { %v4116_v55 = vsel %vm2620_vm3, %v4115_v62, %v4111_v34  ;;  %v2781_v37 = vmul.f32 %v10420_v60, %v2575_v32  ;;  %v5500_v60 = vmul.f32 %v10629_v22, %v11288_v28 }
 0x3c6   : > { %v4130_v1 = vsel %vm2769_vm10, %v4116_v55, %v4129_v42 }
 0x3c7   : > { %v4142_v12 = vmul.f32 %v10600_v45, %v4130_v1 }
 0x3c8   : > { %v2570_v16 = vpop.permute.xlu0 %2569 }
 0x3c9   : > { %v2780_v4 = vmul.f32 %v10551_v59, %v2570_v16  ;;  %v3939_v30 = vpop.permute.xlu1 %3938  ;;  %v4144_v13 = vadd.f32 %v4142_v12, %v2789_v19 }
 0x3ca   : > { %v4134_v10 = vmul.f32 %v4130_v1, %v3939_v30 }
 0x3cb   : > { %v4135_v6 = vadd.f32 %v4133_v58, %v2780_v4  ;;  %v5497_v41 = vadd.f32 %v5495_v51, %v4144_v13 }
 0x3cc   : > { %v4136_v0 = vadd.f32 %v4134_v10, %v2781_v37 }
 0x3ce   : > { %v5288_v45 = vpop.permute.xlu1 %5287 }
 0x3cf   : > { %v5486_v48 = vmul.f32 %v10470_v11, %v5288_v45  ;;  %v5501_v11 = vmul.f32 %v5497_v41, %v11289_v46 }
 0x3d1   : > { %v5488_v21 = vadd.f32 %v5486_v48, %v4135_v6 }
 0x3d2   : > { %v5292_v59 = vpop.permute.xlu1 %5291 }
 0x3d3   : > { %v5498_v43 = vmul.f32 %v5488_v21, %v1240_v38  ;;  %v5487_v50 = vmul.f32 %v10508_v2, %v5292_v59 }
 0x3d5   : > { %v5589_v31 = vmul.f32 %v5500_v60, %v5498_v43  ;;  %v5489_v56 = vadd.f32 %v5487_v50, %v4136_v0 }
 0x3d7   : > { %v5499_v25 = vmul.f32 %v5489_v56, %v1240_v38  ;;  %v5591_v49 = vmul.f32 %v5589_v31, %v5580_v52 }
 0x3d9   : > { %v5590_v54 = vmul.f32 %v5501_v11, %v5499_v25  ;;  %v5593_v24 = vmul.f32 0.35355338, %v5591_v49 }
 0x3db   : > { %v5597_v57 = vsel %vm5595_vm12, -1e+30, %v5593_v24  ;;  %v5592_v63 = vmul.f32 %v6557_v15, %v5590_v54 }
 0x3dc   : > { %v5600_v53 = vsel %vm5599_vm13, %v5597_v57, -inf }
 0x3dd   : > { %5601 = vmax.xlane.f32.xlu1 %v5600_v53  ;;  %v5594_v2 = vmul.f32 0.35355338, %v5592_v63 }
 0x3df   : > { %v5598_v22 = vsel %vm5596_vm14, -1e+30, %v5594_v2 }
 0x3e0   : > { %v5603_v8 = vsel %vm5599_vm13, %v5598_v22, -inf }
 0x3e1   : > { %5604 = vmax.xlane.f32.xlu0 %v5603_v8 }
 0x466   : > { %v5602_v23 = vpop.xlane.xlu1 %5601 }
 0x467   : > { %v5606_v14 = vsub.f32 %v5597_v57, %v5602_v23 }
 0x469   : > { %v5608_v39 = vmul.f32 1.442695, %v5606_v14 }
 0x46a   : > { %v5605_v9 = vpop.xlane.xlu0 %5604 }
 0x46b   : > { %7049 = vpow2.f32 %v5608_v39  ;;  %v5607_v5 = vsub.f32 %v5598_v22, %v5605_v9 }
 0x46d   : > { %v5610_v7 = vmul.f32 1.442695, %v5607_v5 }
 0x46f   : > { %7051 = vpow2.f32 %v5610_v7 }
 0x478   : > { %v7050_v40 = vpop.eup %7049 }
 0x479   : > { %v5612_v47 = vsel %vm5599_vm13, %v7050_v40, 0.0 }
 0x47a   : > { %5613 = vadd.xlane.f32.xlu1 %v5612_v47 }
 0x47c   : > { %v7052_v20 = vpop.eup %7051 }
 0x47d   : > { %v5615_v61 = vsel %vm5599_vm13, %v7052_v20, 0.0 }
 0x47e   : > { %5616 = vadd.xlane.f32.xlu0 %v5615_v61 }
 0x503   : > { %v5614_v42 = vpop.xlane.xlu1 %5613 }
 0x504   : > { %7053 = vrcp.f32 %v5614_v42 }
 0x507   : > { %v5617_v33 = vpop.xlane.xlu0 %5616 }
 0x508   : > { %7055 = vrcp.f32 %v5617_v33 }
 0x511   : > { %v7054_v26 = vpop.eup %7053 }
 0x512   : > { %v5619_v44 = vmul.f32 %v7054_v26, %v7050_v40 }
 0x514   : > { %v5622_v17 = vmul.f32 %v5619_v44, %v5500_v60 }
 0x515   : > { %v7056_v62 = vpop.eup %7055 }
 0x516   : > { %v5621_v34 = vmul.f32 %v7056_v62, %v7052_v20  ;;  %6562 = vmatprep.mubr.msk.f32.mxu0 %vm5599_vm13, %v5622_v17 }
 0x518   : > { %v5623_v18 = vmul.f32 %v5621_v34, %v5501_v11 }
 0x51a   : > { %6563 = vmatmul.mubr.msk.f32.vlgmr.msra.gmra.mxu0 %vm5599_vm13, %v5623_v18 }
 0x51b   : > { %6566 = vmatpush3.msra.mxu0 %v5705_v35 }
 0x5da   : > { %v6564_v32 = vpop.f32.mrf.mxu0 }
 0x5dc   : > { %v5696_v55 = vpop.f32.mrf.mxu0 }
 0x5dd   : > { %6567 = vmatprep.mubr.msk.f32.mxu0 %vm1789_vm1, %v5696_v55 }
 0x5de   : > { %6568 = vmatmul.mubr.msk.f32.vlgmr.msra.gmra.mxu0 %vm1789_vm1, %v6564_v32 }
 0x69c   : > { %5790 = sbr.rel (%p6224_p0) target bundleno = 1699 (0x6a3), region = 100 }
 0x69e   : > { %v6569_v1 = vpop.f32.mrf.mxu0 }
 0x6a0   : > { %v5778_v19 = vpop.f32.mrf.mxu0 }
 0x6a1   : > { %v5791_v12 = vld [vmem:[%s7350_s2] sm:$0xff]  ;;  %v5792_v29 = vld [vmem:[%s7350_s2 + $0x8] sm:$0xff] }
 0x6a2   : > { %5793 = vst.msk [vmem:[%s833_s20] sm:$0xff] %vm925_vm0, %v5791_v12  ;;  %5794 = vst.msk [vmem:[%s833_s20 + $0x8] sm:$0xff] %vm925_vm0, %v5792_v29 }
 0x6a3 PF: > { %s6239_s19 = sshll.u32 %s7144_s1, 8  ;;  %s11290_s3 = sld [smem:[#allocation110_spill]] }
 0x6a4   : > { %s5815_s29 = sshll.u32 %s833_s20, 4  ;;  %s11291_s2 = sand.u32 1, %s7132_s30   ;;  %s10710_s29 = int_to_ptr.vmem [resolvable:$true] %s5815_s29 }
 0x6a5   : > { %s10716_s25 = scalar_lea.sflag [#allocation3], %s11291_s2  ;;  %s7064_s1 = scalar_lea.vmem %s10710_s29, 256 }
 0x6a6   : > { %p7065_p1 = scmp.ne.s32.totalorder %s10710_s29, %s7064_s1  ;;  %s7161_s23 = smov [#allocation2]  }
 0x6a7   : > { %s7068_s24 = sshll.u32 %s7161_s23, 4  ;;  %s7069_s24 = int_to_ptr.vmem [resolvable:$false] %s7068_s24 }
 0x6a8   : > { %p7066_p2 = pnand %p7065_p1, %p7313_p3  ;;  %s7070_s22 = scalar_lea.vmem %s7069_s24, 512 }
 0x6a9   : > { %v5795_v16 = vld [vmem:[%s833_s20] sm:$0xff]  ;;  %v5796_v58 = vld [vmem:[%s833_s20 + $0x8] sm:$0xff]  ;;  %s10708_s26 = scalar_lea.hbm %s11290_s3, %s6239_s19  ;;  %p7071_p5 = scmp.lt.s32.totalorder %s10710_s29, %s7069_s24 }
 0x6aa   : > { %v5797_v4 = vadd.f32 %v5795_v16, %v5778_v19  ;;  %v5798_v30 = vadd.f32 %v6569_v1, %v5796_v58  ;;  %p7067_p4 = pneg %p7066_p2  ;;  %p7072_p6 = scmp.lt.s32.totalorder %s7070_s22, %s7064_s1 }
 0x6ac   : > { %5799 = vst.msk [vmem:[%s833_s20] sm:$0xff] %vm925_vm0, %v5797_v4  ;;  %5800 = vst.msk [vmem:[%s833_s20 + $0x8] sm:$0xff] %vm925_vm0, %v5798_v30  ;;  %p7073_p7 = por %p7072_p6, %p7071_p5 }
 0x6ae   : > { %p7074_p8 = pnand %p7073_p7, %p7067_p4 }
 0x6b0   : > { %7077 = shalt.err (!%p7074_p8)
}
 0x6b1   : > { %s7078_s10 = scalar_lea.hbm %s10708_s26, 256  ;;  %s7082_s20 = scalar_lea.hbm %s11290_s3, 512 }
 0x6b2   : > { %p7079_p10 = scmp.ne.s32.totalorder %s10708_s26, %s7078_s10  ;;  %p7083_p13 = scmp.lt.s32.totalorder %s10708_s26, %s11290_s3 }
 0x6b3   : > { %p7084_p0 = scmp.lt.s32.totalorder %s7082_s20, %s7078_s10 }
 0x6b4   : > { %p7080_p11 = pnand %p7079_p10, %p7313_p3 }
 0x6b5   : > { %p7085_p1 = por %p7084_p0, %p7083_p13 }
 0x6b6   : > { %p7081_p12 = pneg %p7080_p11 }
 0x6b8   : > { %p7086_p2 = pnand %p7085_p1, %p7081_p12 }
 0x6ba   : > { %7089 = shalt.err (!%p7086_p2)
}
 0x6bb   : > { %s7162_s21 = smov 128   ;;  %s7163_s2 = smov 8  }
 0x6bc   : > { %6579 = dma.vmem_to_hbm [thread:$0]  (%p7313_p3), %s10710_s29, 256, %s10708_s26, %s10716_s25, %s7162_s21, %s7162_s21, %s7163_s2  }
 0x6bd PF: > { %s11292_s1 = sld [smem:[#allocation9_spill]] }
 0x6be   : > { %s11293_s23 = sld [smem:[#allocation5_spill]] }
 0x6c3   : > { %p6585_p4 = scmp.ge.s32.totalorder %s11292_s1, 2 }
 0x6c4   : > { %s5830_s22 = sand.u32 1, %s11293_s23  }
 0x6c5   : > { %p6582_p5 = pnand %p6585_p4, %p7323_p9  ;;  %s5831_s10 = scalar_lea.sflag [#allocation3], %s5830_s22 }
 0x6c7   : > { %p6583_p6 = pneg %p6582_p5 }
 0x6c9   : > { %7123 = dma.done.wait (%p6583_p6), %s5831_s10, 256  }
 0x6ca   : > { %7125 = vsyncadd (%p6583_p6), %s5831_s10, 4294967040  ;;  %s32_s23 = sadd.s32 1, %s11292_s1   ;;  %s11295_s28 = sld [smem:[#allocation6_spill]] }
 0x6cb   : > { %p29_p7 = scmp.ge.s32.totalorder %s32_s23, 6   ;;  %s11296_s20 = sld [smem:[#allocation13_spill]] }
 0x6cc   : > { %s11297_s21 = sld [smem:[#allocation7_spill]]  ;;  %s11301_s0 = smov %s7132_s30 }
 0x6cd   : > { %s11298_s1 = sld [smem:[#allocation8_spill]]  ;;  %31 = sbr.rel (!%p29_p7) target bundleno = 13 (0xd), region = 183 }
 0x6ce   : > { %s11299_s22 = sld [smem:[#allocation10_spill]] }
 0x6cf   : > { %s11300_s2 = sld [smem:[#allocation11_spill]] }
 0x6d0   : > { %s11302_s30 = smov %s11295_s28 }
 0x6d2   :  { %5836 = vsyncpa [#allocation3], 1 }
 0x6d3   :  { %5838 = vsyncpa [#allocation3 + $0x1], 1 }

</bundles_post_ra>
